<compile_context>
chip_gen: v7x
topology: tpu7x:2x2x1
jax: 0.10.0
libtpu: 0.0.40
codegen_flags: <defaults>
</compile_context>

<pallas_src>
import math

import jax
import jax.numpy as jnp
from jax.experimental import pallas as pl
from jax.experimental.pallas import tpu as pltpu


def _round_up(x, m):
    return ((x + m - 1) // m) * m


def _cdiv(a, b):
    return -(-a // b)


def _num_tensorcores():
    """Physical TensorCores per chip: 2 on v4/v5p/v7x (megacore), 1 on v5e/v6e."""
    try:
        info = pltpu.get_tpu_info()
        for attr in ("num_cores", "core_count", "num_tensorcores",
                     "tensorcore_count", "num_tensor_cores"):
            v = getattr(info, attr, None)
            if isinstance(v, int) and 0 < v <= 8:
                return min(int(v), 2)
    except Exception:
        pass
    try:
        kind = jax.devices()[0].device_kind.lower()
        if ("v7" in kind) or ("7x" in kind) or ("v4" in kind) or ("v5p" in kind):
            return 2
    except Exception:
        pass
    return 1


def _make_loss_kernel(tile_rows, n_cols, acc_rows, blocks_per_core, total_rows):
    n_strips = tile_rows // acc_rows

    def loss_kernel(out_ref, lab_ref, ret_ref, main_ref, osum_ref,
                    acc_ref, oacc_ref):
        c = pl.program_id(0)   # core axis ("parallel")
        j = pl.program_id(1)   # sequential reduction axis ("arbitrary")

        @pl.when(j == 0)
        def _init():
            acc_ref[...] = jnp.zeros_like(acc_ref)
            oacc_ref[...] = jnp.zeros_like(oacc_ref)

        # Upcast in-register (VPU); avoids an HBM-side f32 copy for bf16 inputs.
        o = out_ref[...].astype(jnp.float32)
        l = lab_ref[...].astype(jnp.float32)
        r = ret_ref[...].astype(jnp.float32)

        # PyTorch BCELoss clamps log() at -100 for numerical safety.
        log_o = jnp.maximum(jnp.log(o), -100.0)
        log_1mo = jnp.maximum(jnp.log(1.0 - o), -100.0)
        bce = -(l * log_o + (1.0 - l) * log_1mo)

        # mean(bce) - mean(o*r) == mean(bce - o*r): fold into one accumulator.
        contrib = bce - o * r

        def accumulate(vals, ovals):
            # Strip-wise, tile-aligned static slices added into (acc_rows, N)
            # accumulators: pure vreg VPU adds, no reshape relayout / copy.
            a = acc_ref[...]
            oa = oacc_ref[...]
            for s in range(n_strips):
                lo = s * acc_rows
                a = a + vals[lo:lo + acc_rows, :]
                oa = oa + ovals[lo:lo + acc_rows, :]
            acc_ref[...] = a
            oacc_ref[...] = oa

        block = c * blocks_per_core + j
        rows_remaining = total_rows - block * tile_rows

        # Fast path: full in-range block -> no iota / compare / select work.
        @pl.when(rows_remaining >= tile_rows)
        def _full():
            accumulate(contrib, o)

        # Ragged tail (or fully clamped, re-read) block: mask invalid rows.
        @pl.when(rows_remaining < tile_rows)
        def _ragged():
            row_ids = jax.lax.broadcasted_iota(jnp.int32, (tile_rows, n_cols), 0)
            valid = row_ids < rows_remaining
            accumulate(jnp.where(valid, contrib, 0.0),
                       jnp.where(valid, o, 0.0))

        @pl.when(j == pl.num_programs(1) - 1)
        def _finalize():
            main_ref[0, 0] = jnp.sum(acc_ref[...])
            osum_ref[0, 0] = jnp.sum(oacc_ref[...])

    return loss_kernel


def custom_loss(outputs, labels, returns, *, tile_rows=1024, num_cores=None):
    assert outputs.shape == labels.shape == returns.shape
    assert outputs.ndim == 2
    T0, N0 = outputs.shape
    numel = T0 * N0

    # Lane-dense repack: the loss is a flat reduction, so if N is not a
    # multiple of 128 and the flat element count allows it, reshape to a
    # 128-multiple lane width (free in the wrapper) to recover HBM/vreg use.
    if N0 % 128 != 0:
        for w in (512, 256, 128):
            if numel % w == 0 and numel // w > 0:
                outputs = outputs.reshape(numel // w, w)
                labels = labels.reshape(numel // w, w)
                returns = returns.reshape(numel // w, w)
                break
    T, N = outputs.shape

    if num_cores is None:
        num_cores = _num_tensorcores()
    # Never give a core only clamped / fully-masked blocks.
    num_cores = max(1, min(int(num_cores), _cdiv(T, 64)))

    # VMEM-budgeted tile: 3 inputs x 2 pipeline buffers must fit well under
    # the smallest physical VMEM (v7x: 64 MiB). >=512 rows already saturates
    # the HBM roofline, so also cap at the user-supplied tile_rows.
    itemsize = max(jnp.dtype(outputs.dtype).itemsize,
                   jnp.dtype(labels.dtype).itemsize,
                   jnp.dtype(returns.dtype).itemsize)
    vmem_budget = 36 << 20
    budget_rows = max(64, (vmem_budget // (6 * N * itemsize)) // 64 * 64)
    cap_rows = max(16, min(int(tile_rows), budget_rows))

    # Balanced split across cores: both TCs on megacore parts finish together
    # and masking is confined to at most one tail block per core.
    rows_per_core = _cdiv(T, num_cores)
    blocks_per_core = max(1, _cdiv(rows_per_core, cap_rows))
    base = _cdiv(rows_per_core, blocks_per_core)
    eff_tile = _round_up(base, 64) if base >= 64 else _round_up(base, 16)
    acc_rows = math.gcd(eff_tile, 64)

    blocks_covering = max(1, _cdiv(T, eff_tile))

    kernel = _make_loss_kernel(eff_tile, N, acc_rows, blocks_per_core, T)

    def row_index_map(c, j):
        # Clamp so any block past the end of the array stays in bounds; its
        # contribution is fully masked out inside the kernel.
        return (jnp.minimum(c * blocks_per_core + j, blocks_covering - 1), 0)

    row_spec = pl.BlockSpec((eff_tile, N), row_index_map)
    part_spec = pl.BlockSpec((1, 1), lambda c, j: (c, 0),
                             memory_space=pltpu.SMEM)

    # VMEM limit tied to actual buffer need (3 inputs x 2 buffers + accs),
    # plus headroom for Pallas internals; stays well under v7x's 64 MiB.
    block_bytes = eff_tile * N * itemsize
    acc_bytes = 2 * acc_rows * N * 4
    vmem_limit = int(6 * block_bytes + acc_bytes + (8 << 20))

    main_parts, osum_parts = pl.pallas_call(
        kernel,
        out_shape=(jax.ShapeDtypeStruct((num_cores, 1), jnp.float32),
                   jax.ShapeDtypeStruct((num_cores, 1), jnp.float32)),
        grid_spec=pltpu.PrefetchScalarGridSpec(
            num_scalar_prefetch=0,
            grid=(num_cores, blocks_per_core),
            in_specs=[row_spec, row_spec, row_spec],
            out_specs=[part_spec, part_spec],
            scratch_shapes=[pltpu.VMEM((acc_rows, N), jnp.float32),
                            pltpu.VMEM((acc_rows, N), jnp.float32)],
        ),
        compiler_params=pltpu.CompilerParams(
            dimension_semantics=("parallel", "arbitrary"),
            vmem_limit_bytes=vmem_limit),
    )(outputs, labels, returns)

    total = jnp.sum(main_parts) / numel
    o_sum = jnp.sum(osum_parts)
    # if sum(outputs) < 20: total += total * 0.2
    return jnp.where(o_sum < 20.0, total * 1.2, total)


def custom_loss_ref(outputs, labels, returns):
    # Pure-JAX reference of the PyTorch forward.
    o = outputs.astype(jnp.float32)
    l = labels.astype(jnp.float32)
    r = returns.astype(jnp.float32)
    log_o = jnp.maximum(jnp.log(o), -100.0)
    log_1mo = jnp.maximum(jnp.log(1.0 - o), -100.0)
    bce = jnp.mean(-(l * log_o + (1.0 - l) * log_1mo))
    reward = jnp.mean(o * r)
    total = bce - reward
    return jnp.where(jnp.sum(o) < 20.0, total * 1.2, total)


if __name__ == "__main__":
    key = jax.random.PRNGKey(0)
    k1, k2 = jax.random.split(key)

    # (days, assets); T deliberately not a multiple of any tile size.
    T, N = 600, 128
    outputs = jax.nn.sigmoid(jax.random.normal(k1, (T, N), dtype=jnp.float32))
    returns = 0.05 * jax.random.normal(k2, (T, N), dtype=jnp.float32)
    labels = (returns > 0).astype(jnp.float32)

    ref = custom_loss_ref(outputs, labels, returns)

    # 1) Default path: VMEM-budgeted tile, balanced across available cores.
    loss = custom_loss(outputs, labels, returns)
    jax.block_until_ready(loss)
    assert jnp.allclose(loss, ref, rtol=1e-5, atol=1e-5), (loss, ref)

    # 2) Multi-block path: sequential accumulation + ragged tail block.
    loss2 = custom_loss(outputs, labels, returns, tile_rows=128)
    jax.block_until_ready(loss2)
    assert jnp.allclose(loss2, ref, rtol=1e-5, atol=1e-5), (loss2, ref)

    # 3) bf16 inputs: upcast happens in-register inside the kernel.
    o16 = outputs.astype(jnp.bfloat16)
    l16 = labels.astype(jnp.bfloat16)
    r16 = returns.astype(jnp.bfloat16)
    ref16 = custom_loss_ref(o16, l16, r16)
    loss16 = custom_loss(o16, l16, r16)
    jax.block_until_ready(loss16)
    assert jnp.allclose(loss16, ref16, rtol=1e-4, atol=1e-4), (loss16, ref16)

    # 4) Penalty branch: sum(outputs) < 20 -> 1.2x total.
    small = outputs * 1e-4
    ref_p = custom_loss_ref(small, labels, returns)
    loss_p = custom_loss(small, labels, returns)
    jax.block_until_ready(loss_p)
    assert jnp.allclose(loss_p, ref_p, rtol=1e-5, atol=1e-5), (loss_p, ref_p)

    # 5) Non-lane-aligned N with no free repack: full-width (N==full dim) blocks.
    k3, k4 = jax.random.split(k2)
    o_narrow = jax.nn.sigmoid(jax.random.normal(k3, (200, 100), dtype=jnp.float32))
    r_narrow = 0.05 * jax.random.normal(k4, (200, 100), dtype=jnp.float32)
    l_narrow = (r_narrow > 0).astype(jnp.float32)
    ref_n = custom_loss_ref(o_narrow, l_narrow, r_narrow)
    loss_n = custom_loss(o_narrow, l_narrow, r_narrow)
    jax.block_until_ready(loss_n)
    assert jnp.allclose(loss_n, ref_n, rtol=1e-5, atol=1e-5), (loss_n, ref_n)

    # 6) Non-lane-aligned N with a free lane-dense repack (300*96 % 128 == 0).
    o_r = jax.nn.sigmoid(jax.random.normal(k3, (300, 96), dtype=jnp.float32))
    r_r = 0.05 * jax.random.normal(k4, (300, 96), dtype=jnp.float32)
    l_r = (r_r > 0).astype(jnp.float32)
    ref_r = custom_loss_ref(o_r, l_r, r_r)
    loss_r = custom_loss(o_r, l_r, r_r)
    jax.block_until_ready(loss_r)
    assert jnp.allclose(loss_r, ref_r, rtol=1e-5, atol=1e-5), (loss_r, ref_r)

    print("KERNEL_OK")
</pallas_src>

<mosaic_0001>
module attributes {stable_mosaic.version = 11 : i64} {
  func.func @loss_kernel(%arg0: i32, %arg1: i32, %arg2: memref<640x128xf32, #tpu.memory_space<vmem>>, %arg3: memref<640x128xf32, #tpu.memory_space<vmem>>, %arg4: memref<640x128xf32, #tpu.memory_space<vmem>>, %arg5: memref<1x1xf32, #tpu.memory_space<smem>>, %arg6: memref<1x1xf32, #tpu.memory_space<smem>>, %arg7: memref<64x128xf32, #tpu.memory_space<vmem>>, %arg8: memref<64x128xf32, #tpu.memory_space<vmem>>) attributes {dimension_semantics = [#tpu.dimension_semantics<parallel>, #tpu.dimension_semantics<arbitrary>], iteration_bounds = array<i64: 1, 1>, scalar_prefetch = 0 : i64, scratch_operands = 2 : i64, tpu.core_type = #tpu.core_type<tc>, window_params = [{transform_indices = @transform_0, window_bounds = array<i64: 640, 128>}, {transform_indices = @transform_1, window_bounds = array<i64: 640, 128>}, {transform_indices = @transform_2, window_bounds = array<i64: 640, 128>}, {transform_indices = @transform_3, window_bounds = array<i64: 1, 1>}, {transform_indices = @transform_4, window_bounds = array<i64: 1, 1>}]} {
    %c0_i32 = arith.constant 0 : i32
    %0 = arith.cmpi eq, %arg1, %c0_i32 : i32
    %1 = arith.extui %0 : i1 to i32
    %c0_i32_0 = arith.constant 0 : i32
    %2 = arith.cmpi ne, %1, %c0_i32_0 : i32
    scf.if %2 {
      %cst_16 = arith.constant 0.000000e+00 : f32
      %36 = vector.broadcast %cst_16 : f32 to vector<64x128xf32>
      %c0_17 = arith.constant 0 : index
      %c0_18 = arith.constant 0 : index
      %37 = vector.load %arg7[%c0_17, %c0_18] : memref<64x128xf32, #tpu.memory_space<vmem>>, vector<64x128xf32>
      tpu.vector_store %arg7[%c0_17, %c0_18], %36 {strides = array<i32>} : memref<64x128xf32, #tpu.memory_space<vmem>>, vector<64x128xf32>,
      %cst_19 = arith.constant 0.000000e+00 : f32
      %38 = vector.broadcast %cst_19 : f32 to vector<64x128xf32>
      %c0_20 = arith.constant 0 : index
      %c0_21 = arith.constant 0 : index
      %39 = vector.load %arg8[%c0_20, %c0_21] : memref<64x128xf32, #tpu.memory_space<vmem>>, vector<64x128xf32>
      tpu.vector_store %arg8[%c0_20, %c0_21], %38 {strides = array<i32>} : memref<64x128xf32, #tpu.memory_space<vmem>>, vector<64x128xf32>,
    } else {
    }
    %c0 = arith.constant 0 : index
    %c0_1 = arith.constant 0 : index
    %3 = vector.load %arg2[%c0, %c0_1] : memref<640x128xf32, #tpu.memory_space<vmem>>, vector<640x128xf32>
    %c0_2 = arith.constant 0 : index
    %c0_3 = arith.constant 0 : index
    %4 = vector.load %arg3[%c0_2, %c0_3] : memref<640x128xf32, #tpu.memory_space<vmem>>, vector<640x128xf32>
    %c0_4 = arith.constant 0 : index
    %c0_5 = arith.constant 0 : index
    %5 = vector.load %arg4[%c0_4, %c0_5] : memref<640x128xf32, #tpu.memory_space<vmem>>, vector<640x128xf32>
    %6 = math.log %3 : vector<640x128xf32>
    %cst = arith.constant -1.000000e+02 : f32
    %7 = vector.broadcast %cst : f32 to vector<640x128xf32>
    %8 = arith.maximumf %6, %7 : vector<640x128xf32>
    %cst_6 = arith.constant 1.000000e+00 : f32
    %9 = vector.broadcast %cst_6 : f32 to vector<640x128xf32>
    %10 = arith.subf %9, %3 : vector<640x128xf32>
    %11 = math.log %10 : vector<640x128xf32>
    %cst_7 = arith.constant -1.000000e+02 : f32
    %12 = vector.broadcast %cst_7 : f32 to vector<640x128xf32>
    %13 = arith.maximumf %11, %12 : vector<640x128xf32>
    %14 = arith.mulf %4, %8 : vector<640x128xf32>
    %cst_8 = arith.constant 1.000000e+00 : f32
    %15 = vector.broadcast %cst_8 : f32 to vector<640x128xf32>
    %16 = arith.subf %15, %4 : vector<640x128xf32>
    %17 = arith.mulf %16, %13 : vector<640x128xf32>
    %18 = arith.addf %14, %17 : vector<640x128xf32>
    %cst_9 = arith.constant 0.000000e+00 : f32
    %19 = vector.broadcast %cst_9 : f32 to vector<640x128xf32>
    %20 = arith.subf %19, %18 : vector<640x128xf32>
    %21 = arith.mulf %3, %5 : vector<640x128xf32>
    %22 = arith.subf %20, %21 : vector<640x128xf32>
    %c1_i32 = arith.constant 1 : i32
    %23 = arith.muli %arg0, %c1_i32 : i32
    %24 = arith.addi %23, %arg1 : i32
    %c640_i32 = arith.constant 640 : i32
    %25 = arith.muli %24, %c640_i32 : i32
    %c600_i32 = arith.constant 600 : i32
    %26 = arith.subi %c600_i32, %25 : i32
    %c640_i32_10 = arith.constant 640 : i32
    %27 = arith.cmpi sge, %26, %c640_i32_10 : i32
    %28 = arith.extui %27 : i1 to i32
    %c0_i32_11 = arith.constant 0 : i32
    %29 = arith.cmpi ne, %28, %c0_i32_11 : i32
    scf.if %29 {
      %c0_16 = arith.constant 0 : index
      %c0_17 = arith.constant 0 : index
      %36 = vector.load %arg7[%c0_16, %c0_17] : memref<64x128xf32, #tpu.memory_space<vmem>>, vector<64x128xf32>
      %c0_18 = arith.constant 0 : index
      %c0_19 = arith.constant 0 : index
      %37 = vector.load %arg8[%c0_18, %c0_19] : memref<64x128xf32, #tpu.memory_space<vmem>>, vector<64x128xf32>
      %38 = vector.extract_strided_slice %22 {offsets = [0, 0], sizes = [64, 128], strides = [1, 1]} : vector<640x128xf32> to vector<64x128xf32>
      %39 = arith.addf %36, %38 : vector<64x128xf32>
      %40 = vector.extract_strided_slice %3 {offsets = [0, 0], sizes = [64, 128], strides = [1, 1]} : vector<640x128xf32> to vector<64x128xf32>
      %41 = arith.addf %37, %40 : vector<64x128xf32>
      %42 = vector.extract_strided_slice %22 {offsets = [64, 0], sizes = [64, 128], strides = [1, 1]} : vector<640x128xf32> to vector<64x128xf32>
      %43 = arith.addf %39, %42 : vector<64x128xf32>
      %44 = vector.extract_strided_slice %3 {offsets = [64, 0], sizes = [64, 128], strides = [1, 1]} : vector<640x128xf32> to vector<64x128xf32>
      %45 = arith.addf %41, %44 : vector<64x128xf32>
      %46 = vector.extract_strided_slice %22 {offsets = [128, 0], sizes = [64, 128], strides = [1, 1]} : vector<640x128xf32> to vector<64x128xf32>
      %47 = arith.addf %43, %46 : vector<64x128xf32>
      %48 = vector.extract_strided_slice %3 {offsets = [128, 0], sizes = [64, 128], strides = [1, 1]} : vector<640x128xf32> to vector<64x128xf32>
      %49 = arith.addf %45, %48 : vector<64x128xf32>
      %50 = vector.extract_strided_slice %22 {offsets = [192, 0], sizes = [64, 128], strides = [1, 1]} : vector<640x128xf32> to vector<64x128xf32>
      %51 = arith.addf %47, %50 : vector<64x128xf32>
      %52 = vector.extract_strided_slice %3 {offsets = [192, 0], sizes = [64, 128], strides = [1, 1]} : vector<640x128xf32> to vector<64x128xf32>
      %53 = arith.addf %49, %52 : vector<64x128xf32>
      %54 = vector.extract_strided_slice %22 {offsets = [256, 0], sizes = [64, 128], strides = [1, 1]} : vector<640x128xf32> to vector<64x128xf32>
      %55 = arith.addf %51, %54 : vector<64x128xf32>
      %56 = vector.extract_strided_slice %3 {offsets = [256, 0], sizes = [64, 128], strides = [1, 1]} : vector<640x128xf32> to vector<64x128xf32>
      %57 = arith.addf %53, %56 : vector<64x128xf32>
      %58 = vector.extract_strided_slice %22 {offsets = [320, 0], sizes = [64, 128], strides = [1, 1]} : vector<640x128xf32> to vector<64x128xf32>
      %59 = arith.addf %55, %58 : vector<64x128xf32>
      %60 = vector.extract_strided_slice %3 {offsets = [320, 0], sizes = [64, 128], strides = [1, 1]} : vector<640x128xf32> to vector<64x128xf32>
      %61 = arith.addf %57, %60 : vector<64x128xf32>
      %62 = vector.extract_strided_slice %22 {offsets = [384, 0], sizes = [64, 128], strides = [1, 1]} : vector<640x128xf32> to vector<64x128xf32>
      %63 = arith.addf %59, %62 : vector<64x128xf32>
      %64 = vector.extract_strided_slice %3 {offsets = [384, 0], sizes = [64, 128], strides = [1, 1]} : vector<640x128xf32> to vector<64x128xf32>
      %65 = arith.addf %61, %64 : vector<64x128xf32>
      %66 = vector.extract_strided_slice %22 {offsets = [448, 0], sizes = [64, 128], strides = [1, 1]} : vector<640x128xf32> to vector<64x128xf32>
      %67 = arith.addf %63, %66 : vector<64x128xf32>
      %68 = vector.extract_strided_slice %3 {offsets = [448, 0], sizes = [64, 128], strides = [1, 1]} : vector<640x128xf32> to vector<64x128xf32>
      %69 = arith.addf %65, %68 : vector<64x128xf32>
      %70 = vector.extract_strided_slice %22 {offsets = [512, 0], sizes = [64, 128], strides = [1, 1]} : vector<640x128xf32> to vector<64x128xf32>
      %71 = arith.addf %67, %70 : vector<64x128xf32>
      %72 = vector.extract_strided_slice %3 {offsets = [512, 0], sizes = [64, 128], strides = [1, 1]} : vector<640x128xf32> to vector<64x128xf32>
      %73 = arith.addf %69, %72 : vector<64x128xf32>
      %74 = vector.extract_strided_slice %22 {offsets = [576, 0], sizes = [64, 128], strides = [1, 1]} : vector<640x128xf32> to vector<64x128xf32>
      %75 = arith.addf %71, %74 : vector<64x128xf32>
      %76 = vector.extract_strided_slice %3 {offsets = [576, 0], sizes = [64, 128], strides = [1, 1]} : vector<640x128xf32> to vector<64x128xf32>
      %77 = arith.addf %73, %76 : vector<64x128xf32>
      %c0_20 = arith.constant 0 : index
      %c0_21 = arith.constant 0 : index
      %78 = vector.load %arg7[%c0_20, %c0_21] : memref<64x128xf32, #tpu.memory_space<vmem>>, vector<64x128xf32>
      tpu.vector_store %arg7[%c0_20, %c0_21], %75 {strides = array<i32>} : memref<64x128xf32, #tpu.memory_space<vmem>>, vector<64x128xf32>,
      %c0_22 = arith.constant 0 : index
      %c0_23 = arith.constant 0 : index
      %79 = vector.load %arg8[%c0_22, %c0_23] : memref<64x128xf32, #tpu.memory_space<vmem>>, vector<64x128xf32>
      tpu.vector_store %arg8[%c0_22, %c0_23], %77 {strides = array<i32>} : memref<64x128xf32, #tpu.memory_space<vmem>>, vector<64x128xf32>,
    } else {
    }
    %c640_i32_12 = arith.constant 640 : i32
    %30 = arith.cmpi slt, %26, %c640_i32_12 : i32
    %31 = arith.extui %30 : i1 to i32
    %c0_i32_13 = arith.constant 0 : i32
    %32 = arith.cmpi ne, %31, %c0_i32_13 : i32
    scf.if %32 {
      %36 = tpu.iota {dimensions = array<i32: 0>} : vector<640x128xi32>
      %37 = vector.broadcast %26 : i32 to vector<640x128xi32>
      %38 = arith.cmpi slt, %36, %37 : vector<640x128xi32>
      %cst_16 = arith.constant 0.000000e+00 : f32
      %39 = vector.broadcast %cst_16 : f32 to vector<640x128xf32>
      %40 = arith.select %38, %22, %39 : vector<640x128xi1>, vector<640x128xf32>
      %cst_17 = arith.constant 0.000000e+00 : f32
      %41 = vector.broadcast %cst_17 : f32 to vector<640x128xf32>
      %42 = arith.select %38, %3, %41 : vector<640x128xi1>, vector<640x128xf32>
      %c0_18 = arith.constant 0 : index
      %c0_19 = arith.constant 0 : index
      %43 = vector.load %arg7[%c0_18, %c0_19] : memref<64x128xf32, #tpu.memory_space<vmem>>, vector<64x128xf32>
      %c0_20 = arith.constant 0 : index
      %c0_21 = arith.constant 0 : index
      %44 = vector.load %arg8[%c0_20, %c0_21] : memref<64x128xf32, #tpu.memory_space<vmem>>, vector<64x128xf32>
      %45 = vector.extract_strided_slice %40 {offsets = [0, 0], sizes = [64, 128], strides = [1, 1]} : vector<640x128xf32> to vector<64x128xf32>
      %46 = arith.addf %43, %45 : vector<64x128xf32>
      %47 = vector.extract_strided_slice %42 {offsets = [0, 0], sizes = [64, 128], strides = [1, 1]} : vector<640x128xf32> to vector<64x128xf32>
      %48 = arith.addf %44, %47 : vector<64x128xf32>
      %49 = vector.extract_strided_slice %40 {offsets = [64, 0], sizes = [64, 128], strides = [1, 1]} : vector<640x128xf32> to vector<64x128xf32>
      %50 = arith.addf %46, %49 : vector<64x128xf32>
      %51 = vector.extract_strided_slice %42 {offsets = [64, 0], sizes = [64, 128], strides = [1, 1]} : vector<640x128xf32> to vector<64x128xf32>
      %52 = arith.addf %48, %51 : vector<64x128xf32>
      %53 = vector.extract_strided_slice %40 {offsets = [128, 0], sizes = [64, 128], strides = [1, 1]} : vector<640x128xf32> to vector<64x128xf32>
      %54 = arith.addf %50, %53 : vector<64x128xf32>
      %55 = vector.extract_strided_slice %42 {offsets = [128, 0], sizes = [64, 128], strides = [1, 1]} : vector<640x128xf32> to vector<64x128xf32>
      %56 = arith.addf %52, %55 : vector<64x128xf32>
      %57 = vector.extract_strided_slice %40 {offsets = [192, 0], sizes = [64, 128], strides = [1, 1]} : vector<640x128xf32> to vector<64x128xf32>
      %58 = arith.addf %54, %57 : vector<64x128xf32>
      %59 = vector.extract_strided_slice %42 {offsets = [192, 0], sizes = [64, 128], strides = [1, 1]} : vector<640x128xf32> to vector<64x128xf32>
      %60 = arith.addf %56, %59 : vector<64x128xf32>
      %61 = vector.extract_strided_slice %40 {offsets = [256, 0], sizes = [64, 128], strides = [1, 1]} : vector<640x128xf32> to vector<64x128xf32>
      %62 = arith.addf %58, %61 : vector<64x128xf32>
      %63 = vector.extract_strided_slice %42 {offsets = [256, 0], sizes = [64, 128], strides = [1, 1]} : vector<640x128xf32> to vector<64x128xf32>
      %64 = arith.addf %60, %63 : vector<64x128xf32>
      %65 = vector.extract_strided_slice %40 {offsets = [320, 0], sizes = [64, 128], strides = [1, 1]} : vector<640x128xf32> to vector<64x128xf32>
      %66 = arith.addf %62, %65 : vector<64x128xf32>
      %67 = vector.extract_strided_slice %42 {offsets = [320, 0], sizes = [64, 128], strides = [1, 1]} : vector<640x128xf32> to vector<64x128xf32>
      %68 = arith.addf %64, %67 : vector<64x128xf32>
      %69 = vector.extract_strided_slice %40 {offsets = [384, 0], sizes = [64, 128], strides = [1, 1]} : vector<640x128xf32> to vector<64x128xf32>
      %70 = arith.addf %66, %69 : vector<64x128xf32>
      %71 = vector.extract_strided_slice %42 {offsets = [384, 0], sizes = [64, 128], strides = [1, 1]} : vector<640x128xf32> to vector<64x128xf32>
      %72 = arith.addf %68, %71 : vector<64x128xf32>
      %73 = vector.extract_strided_slice %40 {offsets = [448, 0], sizes = [64, 128], strides = [1, 1]} : vector<640x128xf32> to vector<64x128xf32>
      %74 = arith.addf %70, %73 : vector<64x128xf32>
      %75 = vector.extract_strided_slice %42 {offsets = [448, 0], sizes = [64, 128], strides = [1, 1]} : vector<640x128xf32> to vector<64x128xf32>
      %76 = arith.addf %72, %75 : vector<64x128xf32>
      %77 = vector.extract_strided_slice %40 {offsets = [512, 0], sizes = [64, 128], strides = [1, 1]} : vector<640x128xf32> to vector<64x128xf32>
      %78 = arith.addf %74, %77 : vector<64x128xf32>
      %79 = vector.extract_strided_slice %42 {offsets = [512, 0], sizes = [64, 128], strides = [1, 1]} : vector<640x128xf32> to vector<64x128xf32>
      %80 = arith.addf %76, %79 : vector<64x128xf32>
      %81 = vector.extract_strided_slice %40 {offsets = [576, 0], sizes = [64, 128], strides = [1, 1]} : vector<640x128xf32> to vector<64x128xf32>
      %82 = arith.addf %78, %81 : vector<64x128xf32>
      %83 = vector.extract_strided_slice %42 {offsets = [576, 0], sizes = [64, 128], strides = [1, 1]} : vector<640x128xf32> to vector<64x128xf32>
      %84 = arith.addf %80, %83 : vector<64x128xf32>
      %c0_22 = arith.constant 0 : index
      %c0_23 = arith.constant 0 : index
      %85 = vector.load %arg7[%c0_22, %c0_23] : memref<64x128xf32, #tpu.memory_space<vmem>>, vector<64x128xf32>
      tpu.vector_store %arg7[%c0_22, %c0_23], %82 {strides = array<i32>} : memref<64x128xf32, #tpu.memory_space<vmem>>, vector<64x128xf32>,
      %c0_24 = arith.constant 0 : index
      %c0_25 = arith.constant 0 : index
      %86 = vector.load %arg8[%c0_24, %c0_25] : memref<64x128xf32, #tpu.memory_space<vmem>>, vector<64x128xf32>
      tpu.vector_store %arg8[%c0_24, %c0_25], %84 {strides = array<i32>} : memref<64x128xf32, #tpu.memory_space<vmem>>, vector<64x128xf32>,
    } else {
    }
    %c0_i32_14 = arith.constant 0 : i32
    %33 = arith.cmpi eq, %arg1, %c0_i32_14 : i32
    %34 = arith.extui %33 : i1 to i32
    %c0_i32_15 = arith.constant 0 : i32
    %35 = arith.cmpi ne, %34, %c0_i32_15 : i32
    scf.if %35 {
      %c0_16 = arith.constant 0 : index
      %c0_17 = arith.constant 0 : index
      %36 = vector.load %arg7[%c0_16, %c0_17] : memref<64x128xf32, #tpu.memory_space<vmem>>, vector<64x128xf32>
      %37 = vector.shape_cast %36 : vector<64x128xf32> to vector<1x64x128xf32>
      %cst_18 = arith.constant dense<0.000000e+00> : vector<1xf32>
      %38 = vector.multi_reduction <add>, %37, %cst_18 [1, 2] : vector<1x64x128xf32> to vector<1xf32>
      %39 = vector.shape_cast %38 : vector<1xf32> to vector<1x1x1xf32>
      %40 = vector.extract %39[0, 0, 0] : f32 from vector<1x1x1xf32>
      %c0_19 = arith.constant 0 : index
      %c0_20 = arith.constant 0 : index
      %41 = memref.load %arg5[%c0_19, %c0_20] : memref<1x1xf32, #tpu.memory_space<smem>>
      memref.store %40, %arg5[%c0_19, %c0_20] : memref<1x1xf32, #tpu.memory_space<smem>>
      %c0_21 = arith.constant 0 : index
      %c0_22 = arith.constant 0 : index
      %42 = vector.load %arg8[%c0_21, %c0_22] : memref<64x128xf32, #tpu.memory_space<vmem>>, vector<64x128xf32>
      %43 = vector.shape_cast %42 : vector<64x128xf32> to vector<1x64x128xf32>
      %cst_23 = arith.constant dense<0.000000e+00> : vector<1xf32>
      %44 = vector.multi_reduction <add>, %43, %cst_23 [1, 2] : vector<1x64x128xf32> to vector<1xf32>
      %45 = vector.shape_cast %44 : vector<1xf32> to vector<1x1x1xf32>
      %46 = vector.extract %45[0, 0, 0] : f32 from vector<1x1x1xf32>
      %c0_24 = arith.constant 0 : index
      %c0_25 = arith.constant 0 : index
      %47 = memref.load %arg6[%c0_24, %c0_25] : memref<1x1xf32, #tpu.memory_space<smem>>
      memref.store %46, %arg6[%c0_24, %c0_25] : memref<1x1xf32, #tpu.memory_space<smem>>
    } else {
    }
    return
  }
  func.func @transform_0(%arg0: i32, %arg1: i32) -> (i32, i32) {
    %c1_i32 = arith.constant 1 : i32
    %0 = arith.muli %arg0, %c1_i32 : i32
    %1 = arith.addi %0, %arg1 : i32
    %c0_i32 = arith.constant 0 : i32
    %2 = arith.minsi %1, %c0_i32 : i32
    %c0_i32_0 = arith.constant 0 : i32
    %c0_i32_1 = arith.constant 0 : i32
    return %2, %c0_i32_0 : i32, i32
  }
  func.func @transform_1(%arg0: i32, %arg1: i32) -> (i32, i32) {
    %c1_i32 = arith.constant 1 : i32
    %0 = arith.muli %arg0, %c1_i32 : i32
    %1 = arith.addi %0, %arg1 : i32
    %c0_i32 = arith.constant 0 : i32
    %2 = arith.minsi %1, %c0_i32 : i32
    %c0_i32_0 = arith.constant 0 : i32
    %c0_i32_1 = arith.constant 0 : i32
    return %2, %c0_i32_0 : i32, i32
  }
  func.func @transform_2(%arg0: i32, %arg1: i32) -> (i32, i32) {
    %c1_i32 = arith.constant 1 : i32
    %0 = arith.muli %arg0, %c1_i32 : i32
    %1 = arith.addi %0, %arg1 : i32
    %c0_i32 = arith.constant 0 : i32
    %2 = arith.minsi %1, %c0_i32 : i32
    %c0_i32_0 = arith.constant 0 : i32
    %c0_i32_1 = arith.constant 0 : i32
    return %2, %c0_i32_0 : i32, i32
  }
  func.func @transform_3(%arg0: i32, %arg1: i32) -> (i32, i32) {
    %c0_i32 = arith.constant 0 : i32
    %c0_i32_0 = arith.constant 0 : i32
    return %arg0, %c0_i32 : i32, i32
  }
  func.func @transform_4(%arg0: i32, %arg1: i32) -> (i32, i32) {
    %c0_i32 = arith.constant 0 : i32
    %c0_i32_0 = arith.constant 0 : i32
    return %arg0, %c0_i32 : i32, i32
  }
}

</mosaic_0001>

<bundles_post_ra>
// kernel: tpu_custom_call.1
= control target key start
LH: loop header
LB: loop body
LE: loop exit
PB: predicated region body
PF: predicated region fallthrough
CT: control target
= control target key end

     0   :  { %10 = vsyncpa [#allocation5], 0  ;;  %s6167_s0 = inlined_call_operand.hbm [shape: f32[600,128], index: 0, kind: input, shape index: {}]   ;;  %s6168_s1 = inlined_call_operand.hbm [shape: f32[600,128], index: 1, kind: input, shape index: {}]   ;;  %s6169_s2 = inlined_call_operand.hbm [shape: f32[600,128], index: 2, kind: input, shape index: {}]   ;;  %s6170_s3 = inlined_call_operand.hbm [shape: f32[1,1], index: 3, kind: output, shape index: {0}]   ;;  %s6171_s4 = inlined_call_operand.hbm [shape: f32[1,1], index: 4, kind: output, shape index: {1}]  }
   0x1   :  { %11 = vsyncpa [#allocation8], 0 }
   0x2   :  { %12 = vsyncpa [#allocation6], 0 }
   0x3   :  { %13 = vsyncpa [#allocation12], 0 }
   0x4   :  { %24 = vsyncadd [#allocation5], 640  ;;  %s2772_s15 = smov [#allocation4]   ;;  %s2678_s19 = scalar_lea.hbm %s6167_s0, 9600 }
   0x5   :  { %s29_s16 = sshll.u32 %s2772_s15, 4  ;;  %p2679_p0 = scmp.ne.s32.totalorder %s6167_s0, %s2678_s19  ;;  %s30_s16 = int_to_ptr.vmem [resolvable:$true] %s29_s16 }
   0x6   :  { %p2682_p1 = scmp.lt.u32.totalorder %s2678_s19, %s6167_s0 }
   0x8   :  { %p2684_p2 = pnand %p2682_p1, %p2679_p0 }
   0xa   :  { %2687 = shalt.err (!%p2684_p2)
}
   0xb   :  { %s2688_s24 = scalar_lea.vmem %s30_s16, 9600  ;;  %s2692_s25 = scalar_lea.vmem %s30_s16, 10240 }
   0xc   :  { %p2689_p3 = scmp.ne.s32.totalorder %s30_s16, %s2688_s24  ;;  %p2693_p4 = scmp.lt.s32.totalorder %s30_s16, %s30_s16 }
   0xd   :  { %p2694_p5 = scmp.lt.s32.totalorder %s2692_s25, %s2688_s24 }
   0xf   :  { %p2695_p6 = por %p2694_p5, %p2693_p4 }
  0x11   :  { %p2696_p7 = pnand %p2695_p6, %p2689_p3 }
  0x13   :  { %2699 = shalt.err (!%p2696_p7)
}
  0x14   :  { %s2773_s26 = smov 128   ;;  %s2774_s27 = smov 8  }
  0x15   :  { %35 = dma.hbm_to_vmem [thread:$0]  %s6167_s0, 9600, %s30_s16, [#allocation5], %s2773_s26, %s2773_s26, %s2774_s27  }
  0x16   :  { %46 = vsyncadd [#allocation8], 640  ;;  %s2775_s30 = smov [#allocation7]   ;;  %s2700_s8 = scalar_lea.hbm %s6168_s1, 9600 }
  0x17   :  { %s51_s5 = sshll.u32 %s2775_s30, 4  ;;  %p2701_p8 = scmp.ne.s32.totalorder %s6168_s1, %s2700_s8  ;;  %s52_s5 = int_to_ptr.vmem [resolvable:$true] %s51_s5 }
  0x18   :  { %p2704_p9 = scmp.lt.u32.totalorder %s2700_s8, %s6168_s1 }
  0x1a   :  { %p2706_p10 = pnand %p2704_p9, %p2701_p8 }
  0x1c   :  { %2709 = shalt.err (!%p2706_p10)
}
  0x1d   :  { %s2710_s13 = scalar_lea.vmem %s52_s5, 9600  ;;  %s2714_s0 = scalar_lea.vmem %s52_s5, 10240 }
  0x1e   :  { %p2711_p11 = scmp.ne.s32.totalorder %s52_s5, %s2710_s13  ;;  %p2715_p12 = scmp.lt.s32.totalorder %s52_s5, %s52_s5 }
  0x1f   :  { %p2716_p13 = scmp.lt.s32.totalorder %s2714_s0, %s2710_s13 }
  0x21   :  { %p2717_p0 = por %p2716_p13, %p2715_p12 }
  0x23   :  { %p2718_p1 = pnand %p2717_p0, %p2711_p11 }
  0x25   :  { %2721 = shalt.err (!%p2718_p1)
}
  0x26   :  { %57 = dma.hbm_to_vmem [thread:$0]  %s6168_s1, 9600, %s52_s5, [#allocation8], %s2773_s26, %s2773_s26, %s2774_s27  }
  0x27   :  { %68 = vsyncadd [#allocation8], 640  ;;  %s2776_s16 = smov [#allocation9]   ;;  %s2722_s20 = scalar_lea.hbm %s6169_s2, 9600 }
  0x28   :  { %s73_s17 = sshll.u32 %s2776_s16, 4  ;;  %p2723_p2 = scmp.ne.s32.totalorder %s6169_s2, %s2722_s20  ;;  %s74_s17 = int_to_ptr.vmem [resolvable:$true] %s73_s17 }
  0x29   :  { %p2726_p3 = scmp.lt.u32.totalorder %s2722_s20, %s6169_s2 }
  0x2b   :  { %p2728_p4 = pnand %p2726_p3, %p2723_p2 }
  0x2d   :  { %2731 = shalt.err (!%p2728_p4)
}
  0x2e   :  { %s2732_s25 = scalar_lea.vmem %s74_s17, 9600  ;;  %s2736_s1 = scalar_lea.vmem %s74_s17, 10240 }
  0x2f   :  { %p2733_p5 = scmp.ne.s32.totalorder %s74_s17, %s2732_s25  ;;  %p2737_p6 = scmp.lt.s32.totalorder %s74_s17, %s74_s17 }
  0x30   :  { %p2738_p7 = scmp.lt.s32.totalorder %s2736_s1, %s2732_s25 }
  0x32   :  { %p2739_p8 = por %p2738_p7, %p2737_p6 }
  0x34   :  { %p2740_p9 = pnand %p2739_p8, %p2733_p5 }
  0x36   :  { %2743 = shalt.err (!%p2740_p9)
}
  0x37   :  { %79 = dma.hbm_to_vmem [thread:$0]  %s6169_s2, 9600, %s74_s17, [#allocation8], %s2773_s26, %s2773_s26, %s2774_s27  }
  0x38   :  { %2764 = dma.done.wait [#allocation5], 10240  }
  0x39   :  { %2765 = vsyncadd [#allocation5], 4294957056 }
  0x3a   :  { %2766 = dma.done.wait [#allocation8], 20480  }
  0x3b   :  { %2767 = vsyncadd [#allocation8], 4294946816  ;;  %v2849_v0 = vld [vmem:[#allocation4] sm:$0xff]  ;;  %v2851_v1 = vld [vmem:[#allocation4 + $0x8] sm:$0xff]  ;;  %s2744_s30 = scalar_lea.hbm %s6170_s3, 16 }
  0x3c   :  { %2303 = vlog2.f32 %v2849_v0  ;;  %v2854_v2 = vld [vmem:[#allocation4 + $0x10] sm:$0xff]  ;;  %v2857_v3 = vld [vmem:[#allocation4 + $0x18] sm:$0xff]  ;;  %v2860_v4 = vld [vmem:[#allocation4 + $0x20] sm:$0xff]  ;;  %p2745_p10 = scmp.ne.s32.totalorder %s6170_s3, %s2744_s30  ;;  %p2748_p11 = scmp.lt.u32.totalorder %s2744_s30, %s6170_s3 }
  0x3d   :  { %2305 = vlog2.f32 %v2851_v1  ;;  %6561 = vst [vmem:[#allocation17_spill] sm:$0xff] %v2857_v3  ;;  %6562 = vst [vmem:[#allocation18_spill] sm:$0xff] %v2860_v4  ;;  %v2863_v5 = vld [vmem:[#allocation4 + $0x28] sm:$0xff]  ;;  %v2866_v6 = vld [vmem:[#allocation4 + $0x30] sm:$0xff] }
  0x3e   :  { %2307 = vlog2.f32 %v2854_v2  ;;  %6563 = vst [vmem:[#allocation19_spill] sm:$0xff] %v2863_v5  ;;  %6564 = vst [vmem:[#allocation20_spill] sm:$0xff] %v2866_v6  ;;  %v2869_v7 = vld [vmem:[#allocation4 + $0x38] sm:$0xff]  ;;  %v2872_v8 = vld [vmem:[#allocation4 + $0x40] sm:$0xff]  ;;  %p2750_p12 = pnand %p2748_p11, %p2745_p10 }
  0x3f   :  { %2309 = vlog2.f32 %v2857_v3  ;;  %6565 = vst [vmem:[#allocation21_spill] sm:$0xff] %v2869_v7  ;;  %6566 = vst [vmem:[#allocation22_spill] sm:$0xff] %v2872_v8  ;;  %v2875_v9 = vld [vmem:[#allocation4 + $0x48] sm:$0xff]  ;;  %v2877_v10 = vld [vmem:[#allocation4 + $0x50] sm:$0xff] }
  0x40   :  { %2311 = vlog2.f32 %v2860_v4  ;;  %6567 = vst [vmem:[#allocation23_spill] sm:$0xff] %v2875_v9  ;;  %6568 = vst [vmem:[#allocation24_spill] sm:$0xff] %v2877_v10  ;;  %v2879_v11 = vld [vmem:[#allocation4 + $0x58] sm:$0xff]  ;;  %v2885_v15 = vld [vmem:[#allocation4 + $0x60] sm:$0xff] }
  0x41   :  { %2313 = vlog2.f32 %v2863_v5  ;;  %6569 = vst [vmem:[#allocation25_spill] sm:$0xff] %v2879_v11  ;;  %6570 = vst [vmem:[#allocation26_spill] sm:$0xff] %v2885_v15  ;;  %v2887_v16 = vld [vmem:[#allocation4 + $0x68] sm:$0xff]  ;;  %v2889_v17 = vld [vmem:[#allocation4 + $0x70] sm:$0xff] }
  0x42   :  { %2315 = vlog2.f32 %v2866_v6  ;;  %6571 = vst [vmem:[#allocation27_spill] sm:$0xff] %v2887_v16  ;;  %6572 = vst [vmem:[#allocation28_spill] sm:$0xff] %v2889_v17  ;;  %v2895_v22 = vld [vmem:[#allocation4 + $0x78] sm:$0xff]  ;;  %v2897_v23 = vld [vmem:[#allocation4 + $0x80] sm:$0xff] }
  0x43   :  { %2317 = vlog2.f32 %v2869_v7  ;;  %6573 = vst [vmem:[#allocation29_spill] sm:$0xff] %v2895_v22  ;;  %6574 = vst [vmem:[#allocation30_spill] sm:$0xff] %v2897_v23  ;;  %v2899_v24 = vld [vmem:[#allocation4 + $0x88] sm:$0xff]  ;;  %v2905_v29 = vld [vmem:[#allocation4 + $0x90] sm:$0xff] }
  0x44   :  { %2319 = vlog2.f32 %v2872_v8  ;;  %6575 = vst [vmem:[#allocation31_spill] sm:$0xff] %v2899_v24  ;;  %6576 = vst [vmem:[#allocation32_spill] sm:$0xff] %v2905_v29  ;;  %v2907_v30 = vld [vmem:[#allocation4 + $0x98] sm:$0xff]  ;;  %v2909_v31 = vld [vmem:[#allocation4 + $0xa0] sm:$0xff] }
  0x45   :  { %2321 = vlog2.f32 %v2875_v9  ;;  %6577 = vst [vmem:[#allocation33_spill] sm:$0xff] %v2907_v30  ;;  %6578 = vst [vmem:[#allocation34_spill] sm:$0xff] %v2909_v31  ;;  %v2915_v36 = vld [vmem:[#allocation4 + $0xa8] sm:$0xff]  ;;  %v2917_v37 = vld [vmem:[#allocation4 + $0xb0] sm:$0xff] }
  0x46   :  { %v2304_v21 = vpop.eup %2303  ;;  %2323 = vlog2.f32 %v2877_v10  ;;  %6579 = vst [vmem:[#allocation35_spill] sm:$0xff] %v2915_v36  ;;  %6580 = vst [vmem:[#allocation36_spill] sm:$0xff] %v2917_v37  ;;  %v2919_v38 = vld [vmem:[#allocation4 + $0xb8] sm:$0xff]  ;;  %v2925_v43 = vld [vmem:[#allocation4 + $0xc0] sm:$0xff] }
  0x47   :  { %v2306_v28 = vpop.eup %2305  ;;  %2325 = vlog2.f32 %v2879_v11  ;;  %6581 = vst [vmem:[#allocation37_spill] sm:$0xff] %v2919_v38  ;;  %6582 = vst [vmem:[#allocation38_spill] sm:$0xff] %v2925_v43  ;;  %v2927_v44 = vld [vmem:[#allocation4 + $0xc8] sm:$0xff]  ;;  %v2929_v45 = vld [vmem:[#allocation4 + $0xd0] sm:$0xff]  ;;  %v2967_v63 = vmul.f32 0.6931472, %v2304_v21 }
  0x48   :  { %v2308_v35 = vpop.eup %2307  ;;  %2327 = vlog2.f32 %v2885_v15  ;;  %6583 = vst [vmem:[#allocation39_spill] sm:$0xff] %v2927_v44  ;;  %6584 = vst [vmem:[#allocation40_spill] sm:$0xff] %v2929_v45  ;;  %v2935_v50 = vld [vmem:[#allocation4 + $0xd8] sm:$0xff]  ;;  %v2937_v51 = vld [vmem:[#allocation4 + $0xe0] sm:$0xff]  ;;  %v2969_v55 = vmul.f32 0.6931472, %v2306_v28 }
  0x49   :  { %v2310_v42 = vpop.eup %2309  ;;  %2329 = vlog2.f32 %v2887_v16  ;;  %6585 = vst [vmem:[#allocation41_spill] sm:$0xff] %v2935_v50  ;;  %6586 = vst [vmem:[#allocation42_spill] sm:$0xff] %v2937_v51  ;;  %v2939_v52 = vld [vmem:[#allocation4 + $0xe8] sm:$0xff]  ;;  %v2945_v57 = vld [vmem:[#allocation4 + $0xf0] sm:$0xff]  ;;  %v2973_v39 = vmul.f32 0.6931472, %v2308_v35 }
  0x4a   :  { %v2312_v49 = vpop.eup %2311  ;;  %6587 = vst [vmem:[#allocation43_spill] sm:$0xff] %v2939_v52  ;;  %2331 = vlog2.f32 %v2889_v17  ;;  %6588 = vst [vmem:[#allocation44_spill] sm:$0xff] %v2945_v57  ;;  %v2951_v62 = vld [vmem:[#allocation4 + $0xf8] sm:$0xff]  ;;  %v2957_v48 = vld [vmem:[#allocation4 + $0x100] sm:$0xff]  ;;  %v2975_v34 = vmul.f32 0.6931472, %v2310_v42 }
  0x4b   :  { %v2314_v56 = vpop.eup %2313  ;;  %2333 = vlog2.f32 %v2895_v22  ;;  %6589 = vst [vmem:[#allocation45_spill] sm:$0xff] %v2951_v62  ;;  %6590 = vst [vmem:[#allocation46_spill] sm:$0xff] %v2957_v48  ;;  %v2959_v47 = vld [vmem:[#allocation4 + $0x108] sm:$0xff]  ;;  %v2965_v41 = vld [vmem:[#allocation4 + $0x110] sm:$0xff]  ;;  %v2979_v60 = vmul.f32 0.6931472, %v2312_v49 }
  0x4c   :  { %v2316_v61 = vpop.eup %2315  ;;  %2335 = vlog2.f32 %v2897_v23  ;;  %6591 = vst [vmem:[#allocation47_spill] sm:$0xff] %v2959_v47  ;;  %6592 = vst [vmem:[#allocation48_spill] sm:$0xff] %v2965_v41  ;;  %v2981_v21 = vmul.f32 0.6931472, %v2314_v56 }
  0x4d   :  { %v2318_v53 = vpop.eup %2317  ;;  %2337 = vlog2.f32 %v2899_v24  ;;  %v2985_v54 = vmul.f32 0.6931472, %v2316_v61 }
  0x4e   :  { %v2320_v46 = vpop.eup %2319  ;;  %2339 = vlog2.f32 %v2905_v29  ;;  %v2990_v58 = vmul.f32 0.6931472, %v2318_v53 }
  0x4f   :  { %v2322_v40 = vpop.eup %2321  ;;  %2341 = vlog2.f32 %v2907_v30  ;;  %v2995_v28 = vmul.f32 0.6931472, %v2320_v46 }
  0x50   :  { %v2324_v59 = vpop.eup %2323  ;;  %2343 = vlog2.f32 %v2909_v31  ;;  %v3000_v42 = vmul.f32 0.6931472, %v2322_v40 }
  0x51   :  { %v2326_v33 = vpop.eup %2325  ;;  %2345 = vlog2.f32 %v2915_v36  ;;  %v3005_v19 = vmul.f32 0.6931472, %v2324_v59  ;;  %v6606_v36 = vmax.f32 %v2995_v28, -100.0  ;;  %v3128_v28 = vld [vmem:[#allocation4 + $0x148] sm:$0xff] }
  0x52   :  { %v2328_v32 = vpop.eup %2327  ;;  %2347 = vlog2.f32 %v2917_v37  ;;  %v3007_v46 = vmul.f32 0.6931472, %v2326_v33  ;;  %v6609_v30 = vmax.f32 %v3000_v42, -100.0  ;;  %6611 = vst [vmem:[#allocation62_spill] sm:$0xff] %v3128_v28  ;;  %v3141_v42 = vld [vmem:[#allocation4 + $0x150] sm:$0xff] }
  0x53   :  { %v2330_v27 = vpop.eup %2329  ;;  %2349 = vlog2.f32 %v2919_v38  ;;  %v3011_v13 = vmul.f32 0.6931472, %v2328_v32  ;;  %v6602_v38 = vmax.f32 %v2973_v39, -100.0  ;;  %v3115_v39 = vld [vmem:[#allocation4 + $0x140] sm:$0xff] }
  0x54   :  { %v2332_v26 = vpop.eup %2331  ;;  %2351 = vlog2.f32 %v2925_v43  ;;  %v3013_v40 = vmul.f32 0.6931472, %v2330_v27 }
  0x55   :  { %v2334_v20 = vpop.eup %2333  ;;  %2353 = vlog2.f32 %v2927_v44  ;;  %v3017_v25 = vmul.f32 0.6931472, %v2332_v26  ;;  %v6599_v44 = vmax.f32 %v2969_v55, -100.0  ;;  %v3102_v55 = vld [vmem:[#allocation4 + $0x138] sm:$0xff] }
  0x56   :  { %v2336_v14 = vpop.eup %2335  ;;  %2355 = vlog2.f32 %v2929_v45  ;;  %v3019_v59 = vmul.f32 0.6931472, %v2334_v20  ;;  %v3054_v20 = vld [vmem:[#allocation4 + $0x118] sm:$0xff]  ;;  %6604 = vst [vmem:[#allocation57_spill] sm:$0xff] %v3102_v55 }
  0x57   :  { %v2338_v53 = vpop.eup %2337  ;;  %2357 = vlog2.f32 %v2935_v50  ;;  %v3023_v18 = vmul.f32 0.6931472, %v2336_v14  ;;  %v3076_v14 = vld [vmem:[#allocation4 + $0x128] sm:$0xff] }
  0x58   :  { %v2340_v35 = vpop.eup %2339  ;;  %v3025_v32 = vmul.f32 0.6931472, %v2338_v53  ;;  %2359 = vlog2.f32 %v2937_v51  ;;  %6597 = vst [vmem:[#allocation52_spill] sm:$0xff] %v3076_v14 }
  0x59   :  { %v2342_v61 = vpop.eup %2341  ;;  %v3029_v12 = vmul.f32 0.6931472, %v2340_v35  ;;  %2361 = vlog2.f32 %v2939_v52 }
  0x5a   :  { %v2344_v56 = vpop.eup %2343  ;;  %v3034_v33 = vmul.f32 0.6931472, %v2342_v61  ;;  %2363 = vlog2.f32 %v2945_v57 }
  0x5b   :  { %v2346_v49 = vpop.eup %2345  ;;  %v3039_v27 = vmul.f32 0.6931472, %v2344_v56  ;;  %2365 = vlog2.f32 %v2951_v62 }
  0x5c   :  { %v2348_v52 = vpop.eup %2347  ;;  %v3044_v26 = vmul.f32 0.6931472, %v2346_v49  ;;  %2367 = vlog2.f32 %v2957_v48  ;;  %v3056_v49 = vld [vmem:[#allocation7] sm:$0xff] }
  0x5d   :  { %v2350_v57 = vpop.eup %2349  ;;  %v3049_v53 = vmul.f32 0.6931472, %v2348_v52  ;;  %2369 = vlog2.f32 %v2959_v47  ;;  %6593 = vst [vmem:[#allocation49_spill] sm:$0xff] %v3056_v49  ;;  %v3063_v48 = vld [vmem:[#allocation4 + $0x120] sm:$0xff]  ;;  %v3065_v47 = vld [vmem:[#allocation7 + $0x8] sm:$0xff]  ;;  %v3078_v52 = vld [vmem:[#allocation7 + $0x10] sm:$0xff] }
  0x5e   :  { %v2352_v62 = vpop.eup %2351  ;;  %v3058_v51 = vmul.f32 0.6931472, %v2350_v57  ;;  %2371 = vlog2.f32 %v2965_v41  ;;  %6594 = vst [vmem:[#allocation50_spill] sm:$0xff] %v3065_v47  ;;  %v6595_v57 = vmax.f32 %v2967_v63, -100.0  ;;  %6598 = vst [vmem:[#allocation53_spill] sm:$0xff] %v3078_v52  ;;  %v3087_v35 = vmul.f32 %v6599_v44, %v3065_v47  ;;  %v3089_v63 = vld [vmem:[#allocation4 + $0x130] sm:$0xff] }
  0x5f   :  { %v2354_v61 = vpop.eup %2353  ;;  %v3067_v56 = vmul.f32 0.6931472, %v2352_v62  ;;  %2373 = vlog2.f32 %v3054_v20  ;;  %v3100_v62 = vmul.f32 %v6602_v38, %v3078_v52  ;;  %v3104_v44 = vld [vmem:[#allocation7 + $0x48] sm:$0xff]  ;;  %v3117_v38 = vld [vmem:[#allocation7 + $0x50] sm:$0xff] }
  0x60   :  { %v3074_v50 = vmul.f32 %v6595_v57, %v3056_v49  ;;  %v2356_v41 = vpop.eup %2355  ;;  %v3080_v45 = vmul.f32 0.6931472, %v2354_v61  ;;  %2375 = vlog2.f32 %v3063_v48  ;;  %6600 = vst [vmem:[#allocation54_spill] sm:$0xff] %v3087_v35  ;;  %v3091_v57 = vld [vmem:[#allocation7 + $0x40] sm:$0xff]  ;;  %6605 = vst [vmem:[#allocation58_spill] sm:$0xff] %v3104_v44 }
  0x61   :  { %v2358_v43 = vpop.eup %2357  ;;  %6601 = vst [vmem:[#allocation55_spill] sm:$0xff] %v3091_v57  ;;  %2377 = vlog2.f32 %v3076_v14  ;;  %6603 = vst [vmem:[#allocation56_spill] sm:$0xff] %v3100_v62  ;;  %v3113_v61 = vmul.f32 %v6606_v36, %v3091_v57  ;;  %v3130_v36 = vld [vmem:[#allocation7 + $0x18] sm:$0xff]  ;;  %v6613_v57 = vmax.f32 %v3005_v19, -100.0 }
  0x62   :  { %6596 = vst [vmem:[#allocation51_spill] sm:$0xff] %v3074_v50  ;;  %v3093_v50 = vmul.f32 0.6931472, %v2356_v41  ;;  %v2360_v37 = vpop.eup %2359  ;;  %v3106_v35 = vmul.f32 0.6931472, %v2358_v43  ;;  %2379 = vlog2.f32 %v3089_v63  ;;  %6608 = vst [vmem:[#allocation60_spill] sm:$0xff] %v3117_v38  ;;  %v3126_v41 = vmul.f32 %v6609_v30, %v3104_v44 }
  0x63   :  { %6607 = vst [vmem:[#allocation59_spill] sm:$0xff] %v3113_v61  ;;  %v2362_v31 = vpop.eup %2361  ;;  %v3119_v62 = vmul.f32 0.6931472, %v2360_v37  ;;  %2381 = vlog2.f32 %v3102_v55  ;;  %6612 = vst [vmem:[#allocation63_spill] sm:$0xff] %v3130_v36  ;;  %v3139_v43 = vmul.f32 %v6613_v57, %v3117_v38  ;;  %v3143_v30 = vld [vmem:[#allocation7 + $0x58] sm:$0xff]  ;;  %v6616_v44 = vmax.f32 %v2975_v34, -100.0 }
  0x64   :  { %6610 = vst [vmem:[#allocation61_spill] sm:$0xff] %v3126_v41  ;;  %v2364_v29 = vpop.eup %2363  ;;  %v3132_v61 = vmul.f32 0.6931472, %v2362_v31  ;;  %2383 = vlog2.f32 %v3115_v39  ;;  %6615 = vst [vmem:[#allocation65_spill] sm:$0xff] %v3143_v30  ;;  %v3154_v19 = vld [vmem:[#allocation4 + $0x158] sm:$0xff]  ;;  %v3156_v57 = vld [vmem:[#allocation7 + $0x20] sm:$0xff] }
  0x65   :  { %6614 = vst [vmem:[#allocation64_spill] sm:$0xff] %v3139_v43  ;;  %v2366_v52 = vpop.eup %2365  ;;  %v3145_v41 = vmul.f32 0.6931472, %v2364_v29  ;;  %2385 = vlog2.f32 %v3128_v28  ;;  %v3152_v37 = vmul.f32 %v6616_v44, %v3130_v36  ;;  %6618 = vst [vmem:[#allocation67_spill] sm:$0xff] %v3154_v19  ;;  %v6620_v38 = vmax.f32 %v3007_v46, -100.0  ;;  %v3167_v34 = vld [vmem:[#allocation4 + $0x160] sm:$0xff] }
  0x66   :  { %v2368_v24 = vpop.eup %2367  ;;  %6619 = vst [vmem:[#allocation68_spill] sm:$0xff] %v3156_v57  ;;  %v3158_v43 = vmul.f32 0.6931472, %v2366_v52  ;;  %2387 = vlog2.f32 %v3141_v42  ;;  %v3169_v44 = vld [vmem:[#allocation7 + $0x60] sm:$0xff]  ;;  %v6623_v36 = vmax.f32 %v2979_v60, -100.0  ;;  %v3180_v46 = vld [vmem:[#allocation4 + $0x168] sm:$0xff] }
  0x67   :  { %6617 = vst [vmem:[#allocation66_spill] sm:$0xff] %v3152_v37  ;;  %v3165_v31 = vmul.f32 %v6620_v38, %v3143_v30  ;;  %v2370_v47 = vpop.eup %2369  ;;  %6622 = vst [vmem:[#allocation70_spill] sm:$0xff] %v3169_v44  ;;  %v3171_v37 = vmul.f32 0.6931472, %v2368_v24  ;;  %2389 = vlog2.f32 %v3154_v19  ;;  %v3182_v38 = vld [vmem:[#allocation7 + $0x28] sm:$0xff]  ;;  %v6627_v30 = vmax.f32 %v3011_v13, -100.0 }
  0x68   :  { %v3178_v29 = vmul.f32 %v6623_v36, %v3156_v57  ;;  %v2372_v23 = vpop.eup %2371  ;;  %6625 = vst [vmem:[#allocation72_spill] sm:$0xff] %v3180_v46  ;;  %6626 = vst [vmem:[#allocation73_spill] sm:$0xff] %v3182_v38  ;;  %2391 = vlog2.f32 %v3167_v34  ;;  %v3193_v60 = vld [vmem:[#allocation4 + $0x170] sm:$0xff]  ;;  %v3195_v36 = vld [vmem:[#allocation7 + $0x68] sm:$0xff]  ;;  %v6630_v57 = vmax.f32 %v2981_v21, -100.0 }
  0x69   :  { %6621 = vst [vmem:[#allocation69_spill] sm:$0xff] %v3165_v31  ;;  %v3184_v31 = vmul.f32 0.6931472, %v2370_v47  ;;  %v3191_v52 = vmul.f32 %v6627_v30, %v3169_v44  ;;  %v2374_v49 = vpop.eup %2373  ;;  %6629 = vst [vmem:[#allocation75_spill] sm:$0xff] %v3195_v36  ;;  %2393 = vlog2.f32 %v3180_v46  ;;  %v3206_v13 = vld [vmem:[#allocation4 + $0x178] sm:$0xff]  ;;  %v3208_v30 = vld [vmem:[#allocation7 + $0x30] sm:$0xff] }
  0x6a   :  { %6624 = vst [vmem:[#allocation71_spill] sm:$0xff] %v3178_v29  ;;  %v3197_v29 = vmul.f32 0.6931472, %v2372_v23  ;;  %v3204_v24 = vmul.f32 %v6630_v57, %v3182_v38  ;;  %v2376_v22 = vpop.eup %2375  ;;  %6632 = vst [vmem:[#allocation77_spill] sm:$0xff] %v3206_v13  ;;  %2395 = vlog2.f32 %v3193_v60  ;;  %v6634_v44 = vmax.f32 %v3013_v40, -100.0  ;;  %v3219_v21 = vld [vmem:[#allocation4 + $0x180] sm:$0xff] }
  0x6b   :  { %6628 = vst [vmem:[#allocation74_spill] sm:$0xff] %v3191_v52  ;;  %6633 = vst [vmem:[#allocation78_spill] sm:$0xff] %v3208_v30  ;;  %v3210_v52 = vmul.f32 0.6931472, %v2374_v49  ;;  %v2378_v17 = vpop.eup %2377  ;;  %v3221_v57 = vld [vmem:[#allocation7 + $0x70] sm:$0xff]  ;;  %2397 = vlog2.f32 %v3206_v13  ;;  %v6637_v38 = vmax.f32 %v2985_v54, -100.0 }
  0x6c   :  { %6631 = vst [vmem:[#allocation76_spill] sm:$0xff] %v3204_v24  ;;  %v3217_v47 = vmul.f32 %v6634_v44, %v3195_v36  ;;  %6636 = vst [vmem:[#allocation80_spill] sm:$0xff] %v3221_v57  ;;  %v3223_v24 = vmul.f32 0.6931472, %v2376_v22  ;;  %v2380_v16 = vpop.eup %2379  ;;  %v3232_v40 = vld [vmem:[#allocation4 + $0x188] sm:$0xff]  ;;  %v3234_v44 = vld [vmem:[#allocation7 + $0x38] sm:$0xff]  ;;  %2399 = vlog2.f32 %v3219_v21 }
  0x6d   :  { %v3230_v23 = vmul.f32 %v6637_v38, %v3208_v30  ;;  %6639 = vst [vmem:[#allocation82_spill] sm:$0xff] %v3232_v40  ;;  %6640 = vst [vmem:[#allocation83_spill] sm:$0xff] %v3234_v44  ;;  %v6641_v36 = vmax.f32 %v3017_v25, -100.0  ;;  %v2382_v15 = vpop.eup %2381  ;;  %v3245_v54 = vld [vmem:[#allocation4 + $0x190] sm:$0xff]  ;;  %v3247_v38 = vld [vmem:[#allocation7 + $0x78] sm:$0xff]  ;;  %2401 = vlog2.f32 %v3232_v40  ;;  %v6644_v30 = vmax.f32 %v2990_v58, -100.0 }
  0x6e   :  { %6635 = vst [vmem:[#allocation79_spill] sm:$0xff] %v3217_v47  ;;  %v3236_v47 = vmul.f32 0.6931472, %v2378_v17  ;;  %6643 = vst [vmem:[#allocation85_spill] sm:$0xff] %v3247_v38  ;;  %v2384_v11 = vpop.eup %2383  ;;  %v3258_v25 = vld [vmem:[#allocation4 + $0x198] sm:$0xff]  ;;  %2403 = vlog2.f32 %v3245_v54  ;;  %v3271_v58 = vld [vmem:[#allocation4 + $0x1a0] sm:$0xff] }
  0x6f   :  { %6638 = vst [vmem:[#allocation81_spill] sm:$0xff] %v3230_v23  ;;  %v3243_v49 = vmul.f32 %v6641_v36, %v3221_v57  ;;  %v3249_v23 = vmul.f32 0.6931472, %v2380_v16  ;;  %v3256_v22 = vmul.f32 %v6644_v30, %v3234_v44  ;;  %v3260_v36 = vld [vmem:[#allocation7 + $0x80] sm:$0xff]  ;;  %v6647_v57 = vmax.f32 %v3019_v59, -100.0  ;;  %v2386_v10 = vpop.eup %2385  ;;  %v3273_v30 = vld [vmem:[#allocation7 + $0x88] sm:$0xff] }
  0x70   :  { %6646 = vst [vmem:[#allocation87_spill] sm:$0xff] %v3260_v36  ;;  %6649 = vst [vmem:[#allocation89_spill] sm:$0xff] %v3273_v30  ;;  %2405 = vlog2.f32 %v3258_v25  ;;  %v6650_v44 = vmax.f32 %v3023_v18, -100.0  ;;  %v2388_v9 = vpop.eup %2387  ;;  %v3284_v59 = vld [vmem:[#allocation4 + $0x1a8] sm:$0xff]  ;;  %v3297_v18 = vld [vmem:[#allocation4 + $0x1b0] sm:$0xff] }
  0x71   :  { %6642 = vst [vmem:[#allocation84_spill] sm:$0xff] %v3243_v49  ;;  %6645 = vst [vmem:[#allocation86_spill] sm:$0xff] %v3256_v22  ;;  %v3262_v49 = vmul.f32 0.6931472, %v2382_v15  ;;  %v3269_v17 = vmul.f32 %v6647_v57, %v3247_v38  ;;  %v3275_v22 = vmul.f32 0.6931472, %v2384_v11  ;;  %2407 = vlog2.f32 %v3271_v58  ;;  %v2390_v8 = vpop.eup %2389 }
  0x72   :  { %v3282_v16 = vmul.f32 %v6650_v44, %v3260_v36  ;;  %v3286_v57 = vld [vmem:[#allocation7 + $0x90] sm:$0xff]  ;;  %v6653_v38 = vmax.f32 %v3025_v32, -100.0  ;;  %v3299_v44 = vld [vmem:[#allocation7 + $0x98] sm:$0xff]  ;;  %2409 = vlog2.f32 %v3284_v59  ;;  %v6656_v36 = vmax.f32 %v3029_v12, -100.0  ;;  %v2392_v7 = vpop.eup %2391  ;;  %v3323_v12 = vld [vmem:[#allocation4 + $0x1c0] sm:$0xff] }
  0x73   :  { %6648 = vst [vmem:[#allocation88_spill] sm:$0xff] %v3269_v17  ;;  %6652 = vst [vmem:[#allocation91_spill] sm:$0xff] %v3286_v57  ;;  %v3288_v17 = vmul.f32 0.6931472, %v2386_v10  ;;  %v3310_v32 = vld [vmem:[#allocation4 + $0x1b8] sm:$0xff]  ;;  %2411 = vlog2.f32 %v3297_v18  ;;  %v2394_v6 = vpop.eup %2393 }
  0x74   :  { %6651 = vst [vmem:[#allocation90_spill] sm:$0xff] %v3282_v16  ;;  %v3295_v15 = vmul.f32 %v6653_v38, %v3273_v30  ;;  %6655 = vst [vmem:[#allocation93_spill] sm:$0xff] %v3299_v44  ;;  %v3301_v16 = vmul.f32 0.6931472, %v2388_v9  ;;  %v3308_v11 = vmul.f32 %v6656_v36, %v3286_v57  ;;  %v3312_v38 = vld [vmem:[#allocation7 + $0xa0] sm:$0xff]  ;;  %v6660_v30 = vmax.f32 %v3034_v33, -100.0  ;;  %v2396_v5 = vpop.eup %2395 }
  0x75   :  { %6658 = vst [vmem:[#allocation95_spill] sm:$0xff] %v3312_v38  ;;  %v3325_v36 = vld [vmem:[#allocation7 + $0xa8] sm:$0xff]  ;;  %2413 = vlog2.f32 %v3310_v32  ;;  %v6664_v57 = vmax.f32 %v3039_v27, -100.0  ;;  %v2398_v4 = vpop.eup %2397  ;;  %v3349_v27 = vld [vmem:[#allocation4 + $0x1d0] sm:$0xff] }
  0x76   :  { %6654 = vst [vmem:[#allocation92_spill] sm:$0xff] %v3295_v15  ;;  %6657 = vst [vmem:[#allocation94_spill] sm:$0xff] %v3308_v11  ;;  %v3314_v15 = vmul.f32 0.6931472, %v2390_v8  ;;  %v3321_v10 = vmul.f32 %v6660_v30, %v3299_v44  ;;  %v3327_v11 = vmul.f32 0.6931472, %v2392_v7  ;;  %2415 = vlog2.f32 %v3323_v12  ;;  %v2400_v3 = vpop.eup %2399 }
  0x77   :  { %6662 = vst [vmem:[#allocation98_spill] sm:$0xff] %v3325_v36  ;;  %v3334_v9 = vmul.f32 %v6664_v57, %v3312_v38  ;;  %v3336_v33 = vld [vmem:[#allocation4 + $0x1c8] sm:$0xff]  ;;  %v3338_v30 = vld [vmem:[#allocation7 + $0xb0] sm:$0xff]  ;;  %v6668_v44 = vmax.f32 %v3044_v26, -100.0  ;;  %v3351_v57 = vld [vmem:[#allocation7 + $0xb8] sm:$0xff]  ;;  %v6672_v38 = vmax.f32 %v3049_v53, -100.0 }
  0x78   :  { %6659 = vst [vmem:[#allocation96_spill] sm:$0xff] %v3314_v15  ;;  %6661 = vst [vmem:[#allocation97_spill] sm:$0xff] %v3321_v10  ;;  %v3340_v10 = vmul.f32 0.6931472, %v2394_v6  ;;  %2417 = vlog2.f32 %v3336_v33  ;;  %v3362_v26 = vld [vmem:[#allocation4 + $0x1d8] sm:$0xff]  ;;  %v3375_v53 = vld [vmem:[#allocation4 + $0x1e0] sm:$0xff] }
  0x79   :  { %6663 = vst [vmem:[#allocation99_spill] sm:$0xff] %v3327_v11  ;;  %6665 = vst [vmem:[#allocation100_spill] sm:$0xff] %v3334_v9  ;;  %v3347_v8 = vmul.f32 %v6668_v44, %v3325_v36  ;;  %v3353_v9 = vmul.f32 0.6931472, %v2396_v5  ;;  %v3360_v7 = vmul.f32 %v6672_v38, %v3338_v30  ;;  %v3364_v44 = vld [vmem:[#allocation7 + $0xc0] sm:$0xff]  ;;  %2419 = vlog2.f32 %v3349_v27  ;;  %v2402_v11 = vpop.eup %2401  ;;  %v3377_v38 = vld [vmem:[#allocation7 + $0xc8] sm:$0xff] }
  0x7a   :  { %6666 = vst [vmem:[#allocation101_spill] sm:$0xff] %v3338_v30  ;;  %6667 = vst [vmem:[#allocation102_spill] sm:$0xff] %v3340_v10  ;;  %v6676_v36 = vmax.f32 %v3058_v51, -100.0  ;;  %2421 = vlog2.f32 %v3362_v26  ;;  %v6681_v30 = vmax.f32 %v3067_v56, -100.0  ;;  %v2404_v10 = vpop.eup %2403  ;;  %v3388_v51 = vld [vmem:[#allocation4 + $0x1e8] sm:$0xff]  ;;  %v3401_v56 = vld [vmem:[#allocation4 + $0x1f0] sm:$0xff] }
  0x7b   :  { %6669 = vst [vmem:[#allocation103_spill] sm:$0xff] %v3347_v8  ;;  %6670 = vst [vmem:[#allocation104_spill] sm:$0xff] %v3351_v57  ;;  %v3366_v8 = vmul.f32 0.6931472, %v2398_v4  ;;  %2423 = vlog2.f32 %v3375_v53 }
  0x7c   :  { %6671 = vst [vmem:[#allocation105_spill] sm:$0xff] %v3353_v9  ;;  %6673 = vst [vmem:[#allocation106_spill] sm:$0xff] %v3360_v7  ;;  %v3373_v6 = vmul.f32 %v6676_v36, %v3351_v57  ;;  %v3379_v7 = vmul.f32 0.6931472, %v2400_v3  ;;  %v3386_v5 = vmul.f32 %v6681_v30, %v3364_v44  ;;  %v3390_v36 = vld [vmem:[#allocation7 + $0xd0] sm:$0xff]  ;;  %v6685_v57 = vmax.f32 %v3080_v45, -100.0  ;;  %v2406_v9 = vpop.eup %2405 }
  0x7d   :  { %6674 = vst [vmem:[#allocation107_spill] sm:$0xff] %v3364_v44  ;;  %6675 = vst [vmem:[#allocation108_spill] sm:$0xff] %v3366_v8  ;;  %v3403_v30 = vld [vmem:[#allocation7 + $0xd8] sm:$0xff]  ;;  %2425 = vlog2.f32 %v3388_v51  ;;  %v6689_v44 = vmax.f32 %v3093_v50, -100.0  ;;  %v2408_v8 = vpop.eup %2407  ;;  %v3427_v50 = vld [vmem:[#allocation4 + $0x200] sm:$0xff] }
  0x7e   :  { %6677 = vst [vmem:[#allocation109_spill] sm:$0xff] %v3373_v6  ;;  %6678 = vst [vmem:[#allocation110_spill] sm:$0xff] %v3375_v53  ;;  %v3392_v6 = vmul.f32 0.6931472, %v2402_v11  ;;  %v3399_v4 = vmul.f32 %v6685_v57, %v3377_v38  ;;  %v3414_v45 = vld [vmem:[#allocation4 + $0x1f8] sm:$0xff]  ;;  %v3416_v57 = vld [vmem:[#allocation7 + $0xe0] sm:$0xff]  ;;  %2427 = vlog2.f32 %v3401_v56 }
  0x7f   :  { %6679 = vst [vmem:[#allocation111_spill] sm:$0xff] %v3377_v38  ;;  %6680 = vst [vmem:[#allocation112_spill] sm:$0xff] %v3379_v7  ;;  %v3412_v3 = vmul.f32 %v6689_v44, %v3390_v36  ;;  %v6693_v38 = vmax.f32 %v3106_v35, -100.0  ;;  %v2410_v7 = vpop.eup %2409  ;;  %v3429_v44 = vld [vmem:[#allocation7 + $0xe8] sm:$0xff]  ;;  %2429 = vlog2.f32 %v3414_v45  ;;  %v3650_v53 = vld [vmem:[#allocation7 + $0x140] sm:$0xff] }
  0x80   :  { %6682 = vst [vmem:[#allocation113_spill] sm:$0xff] %v3386_v5  ;;  %6683 = vst [vmem:[#allocation114_spill] sm:$0xff] %v3390_v36  ;;  %v3405_v5 = vmul.f32 0.6931472, %v2404_v10  ;;  %v6698_v36 = vmax.f32 %v3119_v62, -100.0  ;;  %v3440_v35 = vld [vmem:[#allocation4 + $0x208] sm:$0xff]  ;;  %2431 = vlog2.f32 %v3427_v50 }
  0x81   :  { %6684 = vst [vmem:[#allocation115_spill] sm:$0xff] %v3392_v6  ;;  %6686 = vst [vmem:[#allocation116_spill] sm:$0xff] %v3399_v4  ;;  %v3418_v4 = vmul.f32 0.6931472, %v2406_v9  ;;  %v3425_v11 = vmul.f32 %v6693_v38, %v3403_v30  ;;  %v2412_v6 = vpop.eup %2411  ;;  %v3442_v38 = vld [vmem:[#allocation7 + $0xf0] sm:$0xff]  ;;  %2433 = vlog2.f32 %v3440_v35 }
  0x82   :  { %6687 = vst [vmem:[#allocation117_spill] sm:$0xff] %v3403_v30  ;;  %6688 = vst [vmem:[#allocation118_spill] sm:$0xff] %v3405_v5  ;;  %v3438_v10 = vmul.f32 %v6698_v36, %v3416_v57  ;;  %v6703_v30 = vmax.f32 %v3132_v61, -100.0  ;;  %v2414_v5 = vpop.eup %2413  ;;  %v3453_v62 = vld [vmem:[#allocation4 + $0x210] sm:$0xff]  ;;  %v3455_v36 = vld [vmem:[#allocation7 + $0xf8] sm:$0xff] }
  0x83   :  { %6690 = vst [vmem:[#allocation119_spill] sm:$0xff] %v3412_v3  ;;  %6691 = vst [vmem:[#allocation120_spill] sm:$0xff] %v3416_v57  ;;  %v3431_v3 = vmul.f32 0.6931472, %v2408_v8  ;;  %v6708_v57 = vmax.f32 %v3145_v41, -100.0  ;;  %v3466_v61 = vld [vmem:[#allocation4 + $0x218] sm:$0xff]  ;;  %2435 = vlog2.f32 %v3453_v62 }
  0x84   :  { %6692 = vst [vmem:[#allocation121_spill] sm:$0xff] %v3418_v4  ;;  %6694 = vst [vmem:[#allocation122_spill] sm:$0xff] %v3425_v11  ;;  %v3444_v11 = vmul.f32 0.6931472, %v2410_v7  ;;  %v3451_v9 = vmul.f32 %v6703_v30, %v3429_v44  ;;  %v2416_v4 = vpop.eup %2415  ;;  %v3468_v30 = vld [vmem:[#allocation7 + $0x100] sm:$0xff]  ;;  %2437 = vlog2.f32 %v3466_v61 }
  0x85   :  { %6695 = vst [vmem:[#allocation123_spill] sm:$0xff] %v3427_v50  ;;  %6696 = vst [vmem:[#allocation124_spill] sm:$0xff] %v3429_v44  ;;  %v3464_v8 = vmul.f32 %v6708_v57, %v3442_v38  ;;  %v6713_v44 = vmax.f32 %v3158_v43, -100.0  ;;  %v3479_v41 = vld [vmem:[#allocation4 + $0x220] sm:$0xff]  ;;  %v3481_v57 = vld [vmem:[#allocation7 + $0x108] sm:$0xff] }
  0x86   :  { %6697 = vst [vmem:[#allocation125_spill] sm:$0xff] %v3431_v3  ;;  %6699 = vst [vmem:[#allocation126_spill] sm:$0xff] %v3438_v10  ;;  %v3457_v10 = vmul.f32 0.6931472, %v2412_v6  ;;  %v2418_v3 = vpop.eup %2417  ;;  %v3492_v43 = vld [vmem:[#allocation4 + $0x228] sm:$0xff]  ;;  %2439 = vlog2.f32 %v3479_v41  ;;  %v3772_v50 = vld [vmem:[#allocation7 + $0x1d0] sm:$0xff] }
  0x87   :  { %6700 = vst [vmem:[#allocation127_spill] sm:$0xff] %v3440_v35  ;;  %6701 = vst [vmem:[#allocation128_spill] sm:$0xff] %v3442_v38  ;;  %v3477_v7 = vmul.f32 %v6713_v44, %v3455_v36  ;;  %v6718_v38 = vmax.f32 %v3171_v37, -100.0  ;;  %v3494_v44 = vld [vmem:[#allocation7 + $0x110] sm:$0xff]  ;;  %2441 = vlog2.f32 %v3492_v43  ;;  %v3749_v35 = vld [vmem:[#allocation7 + $0x1b8] sm:$0xff] }
  0x88   :  { %6702 = vst [vmem:[#allocation129_spill] sm:$0xff] %v3444_v11  ;;  %6704 = vst [vmem:[#allocation130_spill] sm:$0xff] %v3451_v9  ;;  %v3470_v9 = vmul.f32 0.6931472, %v2414_v5  ;;  %v2420_v11 = vpop.eup %2419  ;;  %v3505_v37 = vld [vmem:[#allocation4 + $0x230] sm:$0xff] }
  0x89   :  { %6705 = vst [vmem:[#allocation131_spill] sm:$0xff] %v3453_v62  ;;  %6706 = vst [vmem:[#allocation132_spill] sm:$0xff] %v3455_v36  ;;  %v3490_v6 = vmul.f32 %v6718_v38, %v3468_v30  ;;  %v6723_v36 = vmax.f32 %v3184_v31, -100.0  ;;  %v3507_v38 = vld [vmem:[#allocation7 + $0x118] sm:$0xff]  ;;  %2443 = vlog2.f32 %v3505_v37  ;;  %v3747_v62 = vld [vmem:[#allocation7 + $0x1b0] sm:$0xff] }
  0x8a   :  { %6707 = vst [vmem:[#allocation133_spill] sm:$0xff] %v3457_v10  ;;  %6709 = vst [vmem:[#allocation134_spill] sm:$0xff] %v3464_v8  ;;  %v3483_v8 = vmul.f32 0.6931472, %v2416_v4  ;;  %v2422_v10 = vpop.eup %2421  ;;  %v3518_v31 = vld [vmem:[#allocation4 + $0x238] sm:$0xff] }
  0x8b   :  { %6710 = vst [vmem:[#allocation135_spill] sm:$0xff] %v3466_v61  ;;  %6711 = vst [vmem:[#allocation136_spill] sm:$0xff] %v3468_v30  ;;  %v3503_v5 = vmul.f32 %v6723_v36, %v3481_v57  ;;  %v6728_v30 = vmax.f32 %v3197_v29, -100.0  ;;  %v3520_v36 = vld [vmem:[#allocation7 + $0x120] sm:$0xff]  ;;  %2445 = vlog2.f32 %v3518_v31 }
  0x8c   :  { %6712 = vst [vmem:[#allocation137_spill] sm:$0xff] %v3470_v9  ;;  %6714 = vst [vmem:[#allocation138_spill] sm:$0xff] %v3477_v7  ;;  %v3496_v7 = vmul.f32 0.6931472, %v2418_v3  ;;  %v2424_v9 = vpop.eup %2423  ;;  %v3531_v29 = vld [vmem:[#allocation4 + $0x240] sm:$0xff] }
  0x8d   :  { %6715 = vst [vmem:[#allocation139_spill] sm:$0xff] %v3479_v41  ;;  %6716 = vst [vmem:[#allocation140_spill] sm:$0xff] %v3481_v57  ;;  %v3516_v4 = vmul.f32 %v6728_v30, %v3494_v44  ;;  %v6733_v57 = vmax.f32 %v3210_v52, -100.0  ;;  %v3533_v30 = vld [vmem:[#allocation7 + $0x128] sm:$0xff]  ;;  %2447 = vlog2.f32 %v3531_v29  ;;  %v3726_v41 = vld [vmem:[#allocation7 + $0x1a0] sm:$0xff] }
  0x8e   :  { %6717 = vst [vmem:[#allocation141_spill] sm:$0xff] %v3483_v8  ;;  %6719 = vst [vmem:[#allocation142_spill] sm:$0xff] %v3490_v6  ;;  %v3509_v6 = vmul.f32 0.6931472, %v2420_v11  ;;  %v2426_v8 = vpop.eup %2425  ;;  %v3544_v52 = vld [vmem:[#allocation4 + $0x248] sm:$0xff] }
  0x8f   :  { %6720 = vst [vmem:[#allocation143_spill] sm:$0xff] %v3492_v43  ;;  %6721 = vst [vmem:[#allocation144_spill] sm:$0xff] %v3494_v44  ;;  %v3529_v3 = vmul.f32 %v6733_v57, %v3507_v38  ;;  %v6737_v44 = vmax.f32 %v3223_v24, -100.0  ;;  %v3546_v57 = vld [vmem:[#allocation7 + $0x130] sm:$0xff]  ;;  %2449 = vlog2.f32 %v3544_v52  ;;  %v3724_v43 = vld [vmem:[#allocation7 + $0x198] sm:$0xff] }
  0x90   :  { %6722 = vst [vmem:[#allocation145_spill] sm:$0xff] %v3496_v7  ;;  %6724 = vst [vmem:[#allocation146_spill] sm:$0xff] %v3503_v5  ;;  %v3522_v5 = vmul.f32 0.6931472, %v2422_v10  ;;  %v2428_v7 = vpop.eup %2427  ;;  %v3557_v24 = vld [vmem:[#allocation4 + $0x250] sm:$0xff] }
  0x91   :  { %6725 = vst [vmem:[#allocation147_spill] sm:$0xff] %v3505_v37  ;;  %6726 = vst [vmem:[#allocation148_spill] sm:$0xff] %v3507_v38  ;;  %v3542_v11 = vmul.f32 %v6737_v44, %v3520_v36  ;;  %v6741_v38 = vmax.f32 %v3236_v47, -100.0  ;;  %v3559_v44 = vld [vmem:[#allocation7 + $0x138] sm:$0xff]  ;;  %2451 = vlog2.f32 %v3557_v24 }
  0x92   :  { %6727 = vst [vmem:[#allocation149_spill] sm:$0xff] %v3509_v6  ;;  %6729 = vst [vmem:[#allocation150_spill] sm:$0xff] %v3516_v4  ;;  %v3535_v4 = vmul.f32 0.6931472, %v2424_v9  ;;  %v2430_v6 = vpop.eup %2429 }
  0x93   :  { %6730 = vst [vmem:[#allocation151_spill] sm:$0xff] %v3518_v31  ;;  %6731 = vst [vmem:[#allocation152_spill] sm:$0xff] %v3520_v36  ;;  %v3555_v10 = vmul.f32 %v6741_v38, %v3533_v30  ;;  %v6745_v36 = vmax.f32 %v3249_v23, -100.0  ;;  %v3570_v47 = vmul.f32 0.6931472, %v2430_v6  ;;  %v3703_v31 = vld [vmem:[#allocation7 + $0x188] sm:$0xff] }
  0x94   :  { %6732 = vst [vmem:[#allocation153_spill] sm:$0xff] %v3522_v5  ;;  %6734 = vst [vmem:[#allocation154_spill] sm:$0xff] %v3529_v3  ;;  %v3548_v3 = vmul.f32 0.6931472, %v2426_v8  ;;  %v2432_v5 = vpop.eup %2431 }
  0x95   :  { %6735 = vst [vmem:[#allocation155_spill] sm:$0xff] %v3531_v29  ;;  %6736 = vst [vmem:[#allocation156_spill] sm:$0xff] %v3533_v30  ;;  %v3568_v9 = vmul.f32 %v6745_v36, %v3546_v57  ;;  %v2434_v30 = vpop.eup %2433  ;;  %v3579_v15 = vmul.f32 0.6931472, %v2432_v5  ;;  %v3682_v29 = vld [vmem:[#allocation7 + $0x178] sm:$0xff] }
  0x96   :  { %6738 = vst [vmem:[#allocation157_spill] sm:$0xff] %v3542_v11  ;;  %6739 = vst [vmem:[#allocation158_spill] sm:$0xff] %v3544_v52  ;;  %v3561_v11 = vmul.f32 0.6931472, %v2428_v7  ;;  %v6747_v7 = vmax.f32 %v3262_v49, -100.0  ;;  %v2436_v6 = vpop.eup %2435  ;;  %v3680_v52 = vld [vmem:[#allocation7 + $0x170] sm:$0xff] }
  0x97   :  { %6740 = vst [vmem:[#allocation159_spill] sm:$0xff] %v3546_v57  ;;  %6742 = vst [vmem:[#allocation160_spill] sm:$0xff] %v3555_v10 }
  0x98   :  { %6743 = vst [vmem:[#allocation161_spill] sm:$0xff] %v3557_v24  ;;  %6744 = vst [vmem:[#allocation162_spill] sm:$0xff] %v3559_v44  ;;  %v3577_v10 = vmul.f32 %v6747_v7, %v3559_v44  ;;  %v2438_v7 = vpop.eup %2437  ;;  %v3701_v24 = vld [vmem:[#allocation7 + $0x180] sm:$0xff] }
  0x99   :  { %6746 = vst [vmem:[#allocation163_spill] sm:$0xff] %v3568_v9  ;;  %v3584_v9 = vmul.f32 0.6931472, %v2434_v30  ;;  %v2440_v44 = vpop.eup %2439  ;;  %v3594_v36 = vmul.f32 0.6931472, %v2438_v7  ;;  %v6751_v30 = vmax.f32 %v3275_v22, -100.0 }
  0x9a   :  { %6748 = vst [vmem:[#allocation164_spill] sm:$0xff] %v3577_v10  ;;  %v3589_v10 = vmul.f32 0.6931472, %v2436_v6  ;;  %v2442_v14 = vpop.eup %2441  ;;  %v3599_v49 = vmul.f32 0.6931472, %v2440_v44  ;;  %v6749_v6 = vsub.f32 1.0, %v2849_v0 }
  0x9b   :  { %v2444_v55 = vpop.eup %2443  ;;  %v3604_v23 = vmul.f32 0.6931472, %v2442_v14  ;;  %v3663_v14 = vld [vmem:[#allocation7 + $0x160] sm:$0xff]  ;;  %v6753_v0 = vmax.f32 %v3288_v17, -100.0  ;;  %v3678_v44 = vld [vmem:[#allocation7 + $0x168] sm:$0xff]  ;;  %6755 = vst [vmem:[#allocation167_spill] sm:$0xff] %v3682_v29 }
  0x9c   :  { %v2446_v28 = vpop.eup %2445  ;;  %v3609_v38 = vmul.f32 0.6931472, %v2444_v55  ;;  %2453 = vlog2.f32 %v6749_v6  ;;  %v3671_v55 = vmul.f32 %v6751_v30, %v3650_v53  ;;  %v6756_v7 = vsub.f32 1.0, %v2854_v2  ;;  %v6759_v30 = vld [vmem:[#allocation96_spill] sm:$0xff]  ;;  %6765 = vst [vmem:[#allocation169_spill] sm:$0xff] %v3701_v24  ;;  %6766 = vst [vmem:[#allocation170_spill] sm:$0xff] %v3703_v31 }
  0x9d   :  { %v2448_v19 = vpop.eup %2447  ;;  %v3614_v8 = vmul.f32 0.6931472, %v2446_v28  ;;  %v3661_v28 = vld [vmem:[#allocation7 + $0x158] sm:$0xff]  ;;  %v3705_v2 = vld [vmem:[#allocation7 + $0x190] sm:$0xff]  ;;  %6780 = vst [vmem:[#allocation172_spill] sm:$0xff] %v3726_v41  ;;  %6794 = vst [vmem:[#allocation174_spill] sm:$0xff] %v3749_v35 }
  0x9e   :  { %v2450_v46 = vpop.eup %2449  ;;  %v3619_v57 = vmul.f32 0.6931472, %v2448_v19  ;;  %v6750_v19 = vsub.f32 1.0, %v2851_v1  ;;  %6752 = vst [vmem:[#allocation165_spill] sm:$0xff] %v3671_v55  ;;  %v6757_v1 = vmax.f32 %v3301_v16, -100.0  ;;  %6767 = vst [vmem:[#allocation171_spill] sm:$0xff] %v3705_v2 }
  0x9f   :  { %v2452_v13 = vpop.eup %2451  ;;  %v3624_v5 = vmul.f32 0.6931472, %v2450_v46  ;;  %v3659_v46 = vld [vmem:[#allocation7 + $0x150] sm:$0xff] }
  0xa0   :  { %v3629_v40 = vmul.f32 0.6931472, %v2452_v13  ;;  %v3652_v13 = vld [vmem:[#allocation7 + $0x148] sm:$0xff]  ;;  %2455 = vlog2.f32 %v6750_v19  ;;  %v3689_v22 = vmul.f32 %v6757_v1, %v3659_v46  ;;  %v6760_v19 = vmax.f32 %v6759_v30, -100.0 }
  0xa1   :  { %v3676_v6 = vmul.f32 %v6753_v0, %v3652_v13  ;;  %2457 = vlog2.f32 %v6756_v7  ;;  %v6762_v0 = vld [vmem:[#allocation99_spill] sm:$0xff]  ;;  %v6768_v7 = vld [vmem:[#allocation17_spill] sm:$0xff]  ;;  %v6770_v1 = vld [vmem:[#allocation102_spill] sm:$0xff] }
  0xa2   :  { %6758 = vst [vmem:[#allocation168_spill] sm:$0xff] %v3689_v22  ;;  %v3694_v17 = vmul.f32 %v6760_v19, %v3661_v28  ;;  %v6769_v16 = vsub.f32 1.0, %v6768_v7  ;;  %v6771_v22 = vmax.f32 %v6770_v1, -100.0  ;;  %v6773_v19 = vld [vmem:[#allocation105_spill] sm:$0xff]  ;;  %v3728_v7 = vld [vmem:[#allocation7 + $0x1a8] sm:$0xff] }
  0xa3   :  { %6754 = vst [vmem:[#allocation166_spill] sm:$0xff] %v3676_v6  ;;  %v6763_v6 = vmax.f32 %v6762_v0, -100.0  ;;  %6781 = vst [vmem:[#allocation173_spill] sm:$0xff] %v3728_v7 }
  0xa4   :  { %6761 = vst [vmem:[#allocation96_spill] sm:$0xff] %v3694_v17  ;;  %2459 = vlog2.f32 %v6769_v16  ;;  %v3712_v30 = vmul.f32 %v6771_v22, %v3678_v44  ;;  %v6774_v17 = vmax.f32 %v6773_v19, -100.0  ;;  %v6782_v16 = vld [vmem:[#allocation18_spill] sm:$0xff]  ;;  %v6784_v22 = vld [vmem:[#allocation112_spill] sm:$0xff] }
  0xa5   :  { %v3699_v55 = vmul.f32 %v6763_v6, %v3663_v14  ;;  %v6776_v6 = vld [vmem:[#allocation108_spill] sm:$0xff]  ;;  %v6783_v1 = vsub.f32 1.0, %v6782_v16  ;;  %v3751_v16 = vld [vmem:[#allocation7 + $0x1c0] sm:$0xff] }
  0xa6   :  { %6772 = vst [vmem:[#allocation17_spill] sm:$0xff] %v3712_v30  ;;  %v3717_v0 = vmul.f32 %v6774_v17, %v3680_v52  ;;  %6779 = vst [vmem:[#allocation108_spill] sm:$0xff] %v3724_v43  ;;  %v6785_v30 = vmax.f32 %v6784_v22, -100.0  ;;  %v6787_v17 = vld [vmem:[#allocation115_spill] sm:$0xff] }
  0xa7   :  { %6764 = vst [vmem:[#allocation99_spill] sm:$0xff] %v3699_v55  ;;  %v6777_v55 = vmax.f32 %v6776_v6, -100.0  ;;  %2461 = vlog2.f32 %v6783_v1  ;;  %6795 = vst [vmem:[#allocation175_spill] sm:$0xff] %v3751_v16  ;;  %v6796_v1 = vld [vmem:[#allocation19_spill] sm:$0xff] }
  0xa8   :  { %6775 = vst [vmem:[#allocation102_spill] sm:$0xff] %v3717_v0  ;;  %v3735_v19 = vmul.f32 %v6785_v30, %v3701_v24  ;;  %v6788_v0 = vmax.f32 %v6787_v17, -100.0  ;;  %v6797_v22 = vsub.f32 1.0, %v6796_v1  ;;  %v6798_v30 = vld [vmem:[#allocation121_spill] sm:$0xff]  ;;  %v3774_v1 = vld [vmem:[#allocation7 + $0x1d8] sm:$0xff]  ;;  %v7056_v24 = vld [vmem:[#allocation131_spill] sm:$0xff] }
  0xa9   :  { %v3722_v37 = vmul.f32 %v6777_v55, %v3682_v29  ;;  %v6790_v55 = vld [vmem:[#allocation118_spill] sm:$0xff]  ;;  %v7052_v29 = vld [vmem:[#allocation127_spill] sm:$0xff] }
  0xaa   :  { %6786 = vst [vmem:[#allocation18_spill] sm:$0xff] %v3735_v19  ;;  %v3740_v6 = vmul.f32 %v6788_v0, %v3703_v31  ;;  %6793 = vst [vmem:[#allocation118_spill] sm:$0xff] %v3747_v62  ;;  %2463 = vlog2.f32 %v6797_v22  ;;  %v6799_v19 = vmax.f32 %v6798_v30, -100.0  ;;  %v6801_v0 = vld [vmem:[#allocation125_spill] sm:$0xff]  ;;  %v3770_v31 = vld [vmem:[#allocation7 + $0x1c8] sm:$0xff] }
  0xab   :  { %6778 = vst [vmem:[#allocation105_spill] sm:$0xff] %v3722_v37  ;;  %v6791_v37 = vmax.f32 %v6790_v55, -100.0  ;;  %v6807_v22 = vld [vmem:[#allocation20_spill] sm:$0xff] }
  0xac   :  { %6789 = vst [vmem:[#allocation112_spill] sm:$0xff] %v3740_v6  ;;  %v3758_v17 = vmul.f32 %v6799_v19, %v3724_v43  ;;  %v6802_v6 = vmax.f32 %v6801_v0, -100.0  ;;  %v6808_v30 = vsub.f32 1.0, %v6807_v22  ;;  %v6809_v19 = vld [vmem:[#allocation133_spill] sm:$0xff]  ;;  %v3795_v43 = vld [vmem:[#allocation7 + $0x1e8] sm:$0xff]  ;;  %v3797_v22 = vld [vmem:[#allocation7 + $0x1f0] sm:$0xff] }
  0xad   :  { %v3745_v61 = vmul.f32 %v6791_v37, %v3705_v2  ;;  %v6804_v37 = vld [vmem:[#allocation129_spill] sm:$0xff] }
  0xae   :  { %6800 = vst [vmem:[#allocation19_spill] sm:$0xff] %v3758_v17  ;;  %v3763_v55 = vmul.f32 %v6802_v6, %v3726_v41  ;;  %2465 = vlog2.f32 %v6808_v30  ;;  %v6810_v17 = vmax.f32 %v6809_v19, -100.0  ;;  %v6812_v6 = vld [vmem:[#allocation137_spill] sm:$0xff] }
  0xaf   :  { %6792 = vst [vmem:[#allocation115_spill] sm:$0xff] %v3745_v61  ;;  %v6805_v61 = vmax.f32 %v6804_v37, -100.0  ;;  %v3793_v41 = vld [vmem:[#allocation7 + $0x1e0] sm:$0xff]  ;;  %6818 = vst [vmem:[#allocation137_spill] sm:$0xff] %v3797_v22 }
  0xb0   :  { %6803 = vst [vmem:[#allocation121_spill] sm:$0xff] %v3763_v55  ;;  %v3781_v0 = vmul.f32 %v6810_v17, %v3747_v62  ;;  %v6813_v55 = vmax.f32 %v6812_v6, -100.0  ;;  %v6819_v30 = vld [vmem:[#allocation21_spill] sm:$0xff] }
  0xb1   :  { %v3768_v2 = vmul.f32 %v6805_v61, %v3728_v7  ;;  %v6815_v61 = vld [vmem:[#allocation141_spill] sm:$0xff]  ;;  %v6820_v19 = vsub.f32 1.0, %v6819_v30  ;;  %v3820_v30 = vld [vmem:[#allocation7 + $0x208] sm:$0xff] }
  0xb2   :  { %6811 = vst [vmem:[#allocation129_spill] sm:$0xff] %v3781_v0  ;;  %v3786_v37 = vmul.f32 %v6813_v55, %v3749_v35  ;;  %v6821_v17 = vld [vmem:[#allocation145_spill] sm:$0xff]  ;;  %v3816_v35 = vld [vmem:[#allocation7 + $0x1f8] sm:$0xff] }
  0xb3   :  { %6806 = vst [vmem:[#allocation125_spill] sm:$0xff] %v3768_v2  ;;  %v6816_v2 = vmax.f32 %v6815_v61, -100.0  ;;  %2467 = vlog2.f32 %v6820_v19  ;;  %v6822_v0 = vmax.f32 %v6821_v17, -100.0  ;;  %v6824_v55 = vld [vmem:[#allocation149_spill] sm:$0xff]  ;;  %v6831_v19 = vld [vmem:[#allocation22_spill] sm:$0xff] }
  0xb4   :  { %6814 = vst [vmem:[#allocation20_spill] sm:$0xff] %v3786_v37  ;;  %v6825_v37 = vmax.f32 %v6824_v55, -100.0  ;;  %v3818_v62 = vld [vmem:[#allocation7 + $0x200] sm:$0xff]  ;;  %v6832_v17 = vsub.f32 1.0, %v6831_v19 }
  0xb5   :  { %v3791_v7 = vmul.f32 %v6816_v2, %v3751_v16  ;;  %v3804_v6 = vmul.f32 %v6822_v0, %v3770_v31  ;;  %v6827_v2 = vld [vmem:[#allocation153_spill] sm:$0xff]  ;;  %6830 = vst [vmem:[#allocation149_spill] sm:$0xff] %v3818_v62  ;;  %v6833_v0 = vmax.f32 %v3535_v4, -100.0 }
  0xb6   :  { %v3809_v61 = vmul.f32 %v6825_v37, %v3772_v50  ;;  %2469 = vlog2.f32 %v6832_v17  ;;  %v6835_v37 = vmax.f32 %v3548_v3, -100.0  ;;  %v3843_v19 = vld [vmem:[#allocation7 + $0x220] sm:$0xff]  ;;  %v6842_v17 = vld [vmem:[#allocation23_spill] sm:$0xff] }
  0xb7   :  { %6817 = vst [vmem:[#allocation133_spill] sm:$0xff] %v3791_v7  ;;  %6823 = vst [vmem:[#allocation141_spill] sm:$0xff] %v3804_v6  ;;  %v6828_v7 = vmax.f32 %v6827_v2, -100.0  ;;  %v3827_v55 = vmul.f32 %v6833_v0, %v3793_v41  ;;  %v3841_v6 = vld [vmem:[#allocation7 + $0x218] sm:$0xff]  ;;  %v6843_v4 = vsub.f32 1.0, %v6842_v17  ;;  %v6844_v0 = vmax.f32 %v3570_v47, -100.0 }
  0xb8   :  { %6826 = vst [vmem:[#allocation21_spill] sm:$0xff] %v3809_v61  ;;  %v3832_v2 = vmul.f32 %v6835_v37, %v3795_v43  ;;  %v3839_v61 = vld [vmem:[#allocation7 + $0x210] sm:$0xff]  ;;  %6840 = vst [vmem:[#allocation178_spill] sm:$0xff] %v3841_v6  ;;  %v6846_v37 = vmax.f32 %v3579_v15, -100.0  ;;  %v6854_v47 = vmax.f32 %v3589_v10, -100.0  ;;  %v6856_v15 = vmax.f32 %v3594_v36, -100.0 }
  0xb9   :  { %v3814_v16 = vmul.f32 %v6828_v7, %v3774_v1  ;;  %6834 = vst [vmem:[#allocation153_spill] sm:$0xff] %v3827_v55  ;;  %v6837_v7 = vmax.f32 %v3561_v11, -100.0  ;;  %6839 = vst [vmem:[#allocation177_spill] sm:$0xff] %v3839_v61  ;;  %2471 = vlog2.f32 %v6843_v4  ;;  %v3850_v3 = vmul.f32 %v6844_v0, %v3816_v35  ;;  %v3862_v55 = vld [vmem:[#allocation7 + $0x228] sm:$0xff]  ;;  %v3864_v17 = vld [vmem:[#allocation7 + $0x230] sm:$0xff] }
  0xba   :  { %6836 = vst [vmem:[#allocation22_spill] sm:$0xff] %v3832_v2  ;;  %6841 = vst [vmem:[#allocation179_spill] sm:$0xff] %v3843_v19  ;;  %v3855_v11 = vmul.f32 %v6846_v37, %v3818_v62  ;;  %v2454_v2 = vpop.eup %2453  ;;  %v6852_v4 = vld [vmem:[#allocation24_spill] sm:$0xff]  ;;  %v3871_v0 = vmul.f32 %v6854_v47, %v3839_v61  ;;  %v3876_v37 = vmul.f32 %v6856_v15, %v3841_v6  ;;  %v6863_v10 = vld [vmem:[#allocation25_spill] sm:$0xff]  ;;  %v6865_v36 = vmax.f32 %v3604_v23, -100.0 }
  0xbb   :  { %6829 = vst [vmem:[#allocation145_spill] sm:$0xff] %v3814_v16  ;;  %v3837_v16 = vmul.f32 %v6837_v7, %v3797_v22  ;;  %6845 = vst [vmem:[#allocation23_spill] sm:$0xff] %v3850_v3  ;;  %v6848_v7 = vmax.f32 %v3584_v9, -100.0  ;;  %v6853_v22 = vsub.f32 1.0, %v6852_v4  ;;  %v6858_v9 = vmax.f32 %v3599_v49, -100.0  ;;  %v3885_v4 = vld [vmem:[#allocation7 + $0x240] sm:$0xff] }
  0xbc   :  { %6847 = vst [vmem:[#allocation180_spill] sm:$0xff] %v3855_v11  ;;  %6850 = vst [vmem:[#allocation182_spill] sm:$0xff] %v3862_v55  ;;  %v3883_v11 = vld [vmem:[#allocation7 + $0x238] sm:$0xff]  ;;  %v6864_v47 = vsub.f32 1.0, %v6863_v10  ;;  %v3894_v15 = vmul.f32 %v6865_v36, %v3862_v55  ;;  %v6867_v49 = vmax.f32 %v3609_v38, -100.0  ;;  %v6873_v10 = vmax.f32 %v3614_v8, -100.0 }
  0xbd   :  { %6838 = vst [vmem:[#allocation176_spill] sm:$0xff] %v3837_v16  ;;  %v3860_v16 = vmul.f32 %v6848_v7, %v3820_v30  ;;  %6851 = vst [vmem:[#allocation183_spill] sm:$0xff] %v3864_v17  ;;  %2473 = vlog2.f32 %v6853_v22  ;;  %v3881_v7 = vmul.f32 %v6858_v9, %v3843_v19  ;;  %v3887_v22 = vmul.f32 0.6931472, %v2454_v2  ;;  %v6871_v2 = vld [vmem:[#allocation26_spill] sm:$0xff] }
  0xbe   :  { %6855 = vst [vmem:[#allocation24_spill] sm:$0xff] %v3871_v0  ;;  %6857 = vst [vmem:[#allocation184_spill] sm:$0xff] %v3876_v37  ;;  %2475 = vlog2.f32 %v6864_v47  ;;  %v3899_v9 = vmul.f32 %v6867_v49, %v3864_v17  ;;  %v3901_v37 = vld [vmem:[#allocation7 + $0x248] sm:$0xff]  ;;  %v6872_v3 = vsub.f32 1.0, %v6871_v2  ;;  %v3910_v47 = vmul.f32 %v6873_v10, %v3883_v11  ;;  %v3917_v49 = vld [vmem:[#allocation7 + $0x250] sm:$0xff] }
  0xbf   :  { %6849 = vst [vmem:[#allocation181_spill] sm:$0xff] %v3860_v16  ;;  %6859 = vst [vmem:[#allocation185_spill] sm:$0xff] %v3881_v7  ;;  %v2456_v16 = vpop.eup %2455  ;;  %v6875_v23 = vmax.f32 %v3619_v57, -100.0  ;;  %v6881_v8 = vmax.f32 %v3624_v5, -100.0  ;;  %v6884_v57 = vld [vmem:[#allocation28_spill] sm:$0xff]  ;;  %v7097_v17 = vld [vmem:[#allocation49_spill] sm:$0xff] }
  0xc0   :  { %6860 = vst [vmem:[#allocation186_spill] sm:$0xff] %v3883_v11  ;;  %6861 = vst [vmem:[#allocation187_spill] sm:$0xff] %v3885_v4  ;;  %v2458_v7 = vpop.eup %2457  ;;  %v3903_v0 = vmul.f32 0.6931472, %v2456_v16  ;;  %2477 = vlog2.f32 %v6872_v3  ;;  %v6879_v16 = vld [vmem:[#allocation27_spill] sm:$0xff]  ;;  %v7103_v6 = vld [vmem:[#allocation50_spill] sm:$0xff] }
  0xc1   :  { %6862 = vst [vmem:[#allocation188_spill] sm:$0xff] %v3887_v22  ;;  %6866 = vst [vmem:[#allocation25_spill] sm:$0xff] %v3894_v15  ;;  %v3915_v36 = vmul.f32 %v6875_v23, %v3885_v4  ;;  %v2460_v38 = vpop.eup %2459  ;;  %v6880_v15 = vsub.f32 1.0, %v6879_v16  ;;  %v3927_v2 = vmul.f32 %v6881_v8, %v3901_v37  ;;  %v6885_v23 = vsub.f32 1.0, %v6884_v57  ;;  %v6889_v22 = vld [vmem:[#allocation29_spill] sm:$0xff]  ;;  %v6909_v8 = vld [vmem:[#allocation34_spill] sm:$0xff] }
  0xc2   :  { %6868 = vst [vmem:[#allocation189_spill] sm:$0xff] %v3899_v9  ;;  %6869 = vst [vmem:[#allocation190_spill] sm:$0xff] %v3901_v37  ;;  %v3919_v9 = vmul.f32 0.6931472, %v2458_v7  ;;  %v2462_v10 = vpop.eup %2461  ;;  %v6886_v7 = vmax.f32 %v3629_v40, -100.0  ;;  %v6890_v5 = vsub.f32 1.0, %v6889_v22 }
  0xc3   :  { %6870 = vst [vmem:[#allocation191_spill] sm:$0xff] %v3903_v0  ;;  %6874 = vst [vmem:[#allocation26_spill] sm:$0xff] %v3910_v47  ;;  %2479 = vlog2.f32 %v6880_v15  ;;  %v3929_v47 = vmul.f32 0.6931472, %v2460_v38  ;;  %v2464_v15 = vpop.eup %2463  ;;  %v3939_v3 = vmul.f32 0.6931472, %v2462_v10 }
  0xc4   :  { %6876 = vst [vmem:[#allocation192_spill] sm:$0xff] %v3915_v36  ;;  %6877 = vst [vmem:[#allocation193_spill] sm:$0xff] %v3917_v49  ;;  %2481 = vlog2.f32 %v6885_v23  ;;  %v3937_v16 = vmul.f32 %v6886_v7, %v3917_v49  ;;  %v2466_v37 = vpop.eup %2465  ;;  %v3945_v57 = vmul.f32 0.6931472, %v2464_v15  ;;  %v6893_v23 = vld [vmem:[#allocation30_spill] sm:$0xff]  ;;  %v6897_v49 = vld [vmem:[#allocation31_spill] sm:$0xff] }
  0xc5   :  { %6878 = vst [vmem:[#allocation194_spill] sm:$0xff] %v3919_v9  ;;  %6882 = vst [vmem:[#allocation27_spill] sm:$0xff] %v3927_v2  ;;  %2483 = vlog2.f32 %v6890_v5  ;;  %v6894_v36 = vsub.f32 1.0, %v6893_v23  ;;  %v2468_v0 = vpop.eup %2467  ;;  %v3951_v10 = vmul.f32 0.6931472, %v2466_v37  ;;  %v6898_v22 = vsub.f32 1.0, %v6897_v49 }
  0xc6   :  { %6883 = vst [vmem:[#allocation195_spill] sm:$0xff] %v3929_v47  ;;  %6887 = vst [vmem:[#allocation28_spill] sm:$0xff] %v3937_v16  ;;  %v2470_v9 = vpop.eup %2469  ;;  %v3957_v15 = vmul.f32 0.6931472, %v2468_v0  ;;  %v6901_v38 = vld [vmem:[#allocation32_spill] sm:$0xff]  ;;  %v6905_v7 = vld [vmem:[#allocation33_spill] sm:$0xff] }
  0xc7   :  { %6888 = vst [vmem:[#allocation196_spill] sm:$0xff] %v3939_v3  ;;  %6892 = vst [vmem:[#allocation29_spill] sm:$0xff] %v3945_v57  ;;  %2485 = vlog2.f32 %v6894_v36  ;;  %v6902_v23 = vsub.f32 1.0, %v6901_v38  ;;  %v2472_v47 = vpop.eup %2471  ;;  %v3963_v37 = vmul.f32 0.6931472, %v2470_v9  ;;  %v6906_v49 = vsub.f32 1.0, %v6905_v7 }
  0xc8   :  { %6896 = vst [vmem:[#allocation30_spill] sm:$0xff] %v3951_v10  ;;  %2487 = vlog2.f32 %v6898_v22  ;;  %6900 = vst [vmem:[#allocation31_spill] sm:$0xff] %v3957_v15  ;;  %v2474_v3 = vpop.eup %2473  ;;  %v3969_v0 = vmul.f32 0.6931472, %v2472_v47  ;;  %v6910_v38 = vsub.f32 1.0, %v6909_v8  ;;  %v6913_v40 = vld [vmem:[#allocation35_spill] sm:$0xff] }
  0xc9   :  { %2489 = vlog2.f32 %v6902_v23  ;;  %6904 = vst [vmem:[#allocation32_spill] sm:$0xff] %v3963_v37  ;;  %v2476_v57 = vpop.eup %2475  ;;  %v3975_v9 = vmul.f32 0.6931472, %v2474_v3  ;;  %v6914_v7 = vsub.f32 1.0, %v6913_v40  ;;  %v6917_v5 = vld [vmem:[#allocation36_spill] sm:$0xff]  ;;  %v6921_v36 = vld [vmem:[#allocation37_spill] sm:$0xff] }
  0xca   :  { %2491 = vlog2.f32 %v6906_v49  ;;  %6908 = vst [vmem:[#allocation33_spill] sm:$0xff] %v3969_v0  ;;  %v2478_v10 = vpop.eup %2477  ;;  %v3981_v47 = vmul.f32 0.6931472, %v2476_v57  ;;  %v6918_v8 = vsub.f32 1.0, %v6917_v5  ;;  %v6922_v40 = vsub.f32 1.0, %v6921_v36  ;;  %v6925_v22 = vld [vmem:[#allocation38_spill] sm:$0xff] }
  0xcb   :  { %2493 = vlog2.f32 %v6910_v38  ;;  %6912 = vst [vmem:[#allocation34_spill] sm:$0xff] %v3975_v9  ;;  %v3987_v3 = vmul.f32 0.6931472, %v2478_v10  ;;  %v6926_v5 = vsub.f32 1.0, %v6925_v22  ;;  %v6929_v23 = vld [vmem:[#allocation39_spill] sm:$0xff]  ;;  %v6933_v49 = vld [vmem:[#allocation40_spill] sm:$0xff] }
  0xcc   :  { %2495 = vlog2.f32 %v6914_v7  ;;  %6916 = vst [vmem:[#allocation35_spill] sm:$0xff] %v3981_v47  ;;  %v6930_v36 = vsub.f32 1.0, %v6929_v23  ;;  %v6934_v22 = vsub.f32 1.0, %v6933_v49  ;;  %v6937_v38 = vld [vmem:[#allocation41_spill] sm:$0xff]  ;;  %v6941_v7 = vld [vmem:[#allocation42_spill] sm:$0xff] }
  0xcd   :  { %2497 = vlog2.f32 %v6918_v8  ;;  %v2480_v15 = vpop.eup %2479  ;;  %6920 = vst [vmem:[#allocation36_spill] sm:$0xff] %v3987_v3  ;;  %v6938_v23 = vsub.f32 1.0, %v6937_v38  ;;  %v6942_v49 = vsub.f32 1.0, %v6941_v7  ;;  %v6945_v8 = vld [vmem:[#allocation43_spill] sm:$0xff] }
  0xce   :  { %2499 = vlog2.f32 %v6922_v40  ;;  %v2482_v37 = vpop.eup %2481  ;;  %v3993_v57 = vmul.f32 0.6931472, %v2480_v15  ;;  %v6946_v38 = vsub.f32 1.0, %v6945_v8  ;;  %v6949_v40 = vld [vmem:[#allocation44_spill] sm:$0xff] }
  0xcf   :  { %2501 = vlog2.f32 %v6926_v5  ;;  %v2484_v0 = vpop.eup %2483  ;;  %v3999_v10 = vmul.f32 0.6931472, %v2482_v37  ;;  %v6950_v7 = vsub.f32 1.0, %v6949_v40  ;;  %v6953_v5 = vld [vmem:[#allocation45_spill] sm:$0xff] }
  0xd0   :  { %6924 = vst [vmem:[#allocation37_spill] sm:$0xff] %v3993_v57  ;;  %2503 = vlog2.f32 %v6930_v36  ;;  %v4005_v15 = vmul.f32 0.6931472, %v2484_v0  ;;  %v6954_v8 = vsub.f32 1.0, %v6953_v5  ;;  %v6957_v36 = vld [vmem:[#allocation46_spill] sm:$0xff] }
  0xd1   :  { %6928 = vst [vmem:[#allocation38_spill] sm:$0xff] %v3999_v10  ;;  %v2486_v9 = vpop.eup %2485  ;;  %2505 = vlog2.f32 %v6934_v22  ;;  %v6958_v40 = vsub.f32 1.0, %v6957_v36  ;;  %v6961_v22 = vld [vmem:[#allocation47_spill] sm:$0xff] }
  0xd2   :  { %6932 = vst [vmem:[#allocation39_spill] sm:$0xff] %v4005_v15  ;;  %v2488_v47 = vpop.eup %2487  ;;  %v4011_v37 = vmul.f32 0.6931472, %v2486_v9  ;;  %2507 = vlog2.f32 %v6938_v23  ;;  %v6962_v5 = vsub.f32 1.0, %v6961_v22  ;;  %v6965_v23 = vld [vmem:[#allocation48_spill] sm:$0xff]  ;;  %v6969_v22 = vsub.f32 1.0, %v3054_v20 }
  0xd3   :  { %v2490_v3 = vpop.eup %2489  ;;  %v4017_v0 = vmul.f32 0.6931472, %v2488_v47  ;;  %2509 = vlog2.f32 %v6942_v49  ;;  %v6959_v49 = vld [vmem:[#allocation89_spill] sm:$0xff]  ;;  %v6966_v36 = vsub.f32 1.0, %v6965_v23  ;;  %v6972_v23 = vsub.f32 1.0, %v3063_v48 }
  0xd4   :  { %6936 = vst [vmem:[#allocation40_spill] sm:$0xff] %v4011_v37  ;;  %v2492_v57 = vpop.eup %2491  ;;  %v4023_v9 = vmul.f32 0.6931472, %v2490_v3  ;;  %2511 = vlog2.f32 %v6946_v38  ;;  %v6963_v38 = vld [vmem:[#allocation91_spill] sm:$0xff]  ;;  %v6979_v48 = vsub.f32 1.0, %v3089_v63  ;;  %v6986_v63 = vsub.f32 1.0, %v3115_v39 }
  0xd5   :  { %6940 = vst [vmem:[#allocation41_spill] sm:$0xff] %v4017_v0  ;;  %v2494_v10 = vpop.eup %2493  ;;  %v4029_v47 = vmul.f32 0.6931472, %v2492_v57  ;;  %2513 = vlog2.f32 %v6950_v7  ;;  %v6975_v7 = vld [vmem:[#allocation52_spill] sm:$0xff]  ;;  %v6993_v39 = vsub.f32 1.0, %v3141_v42  ;;  %v7000_v42 = vsub.f32 1.0, %v3167_v34 }
  0xd6   :  { %6944 = vst [vmem:[#allocation42_spill] sm:$0xff] %v4023_v9  ;;  %v2496_v15 = vpop.eup %2495  ;;  %v4035_v3 = vmul.f32 0.6931472, %v2494_v10  ;;  %2515 = vlog2.f32 %v6954_v8  ;;  %v6970_v8 = vld [vmem:[#allocation95_spill] sm:$0xff]  ;;  %v6976_v20 = vsub.f32 1.0, %v6975_v7  ;;  %v7007_v34 = vsub.f32 1.0, %v3193_v60 }
  0xd7   :  { %6948 = vst [vmem:[#allocation43_spill] sm:$0xff] %v4029_v47  ;;  %v2498_v37 = vpop.eup %2497  ;;  %v4041_v57 = vmul.f32 0.6931472, %v2496_v15  ;;  %2517 = vlog2.f32 %v6958_v40  ;;  %v6982_v40 = vld [vmem:[#allocation57_spill] sm:$0xff]  ;;  %v7014_v60 = vsub.f32 1.0, %v3219_v21  ;;  %v7021_v21 = vsub.f32 1.0, %v3245_v54 }
  0xd8   :  { %6952 = vst [vmem:[#allocation44_spill] sm:$0xff] %v4035_v3  ;;  %v2500_v0 = vpop.eup %2499  ;;  %v4047_v10 = vmul.f32 0.6931472, %v2498_v37  ;;  %2519 = vlog2.f32 %v6962_v5  ;;  %v6977_v5 = vld [vmem:[#allocation101_spill] sm:$0xff]  ;;  %v6983_v7 = vsub.f32 1.0, %v6982_v40  ;;  %v7025_v54 = vsub.f32 1.0, %v3271_v58 }
  0xd9   :  { %6956 = vst [vmem:[#allocation45_spill] sm:$0xff] %v4041_v57  ;;  %v2502_v9 = vpop.eup %2501  ;;  %v4053_v15 = vmul.f32 0.6931472, %v2500_v0  ;;  %2521 = vlog2.f32 %v6966_v36  ;;  %v6989_v36 = vld [vmem:[#allocation62_spill] sm:$0xff]  ;;  %v7029_v58 = vsub.f32 1.0, %v3297_v18  ;;  %v7033_v18 = vsub.f32 1.0, %v3323_v12 }
  0xda   :  { %6960 = vst [vmem:[#allocation46_spill] sm:$0xff] %v4047_v10  ;;  %v2504_v47 = vpop.eup %2503  ;;  %v4059_v37 = vmul.f32 0.6931472, %v2502_v9  ;;  %2523 = vlog2.f32 %v6969_v22  ;;  %v6984_v22 = vld [vmem:[#allocation107_spill] sm:$0xff]  ;;  %v6990_v40 = vsub.f32 1.0, %v6989_v36  ;;  %v7035_v12 = vsub.f32 1.0, %v3349_v27 }
  0xdb   :  { %6964 = vst [vmem:[#allocation89_spill] sm:$0xff] %v4053_v15  ;;  %v2506_v3 = vpop.eup %2505  ;;  %v4065_v0 = vmul.f32 0.6931472, %v2504_v47  ;;  %2525 = vlog2.f32 %v6972_v23  ;;  %v6996_v23 = vld [vmem:[#allocation67_spill] sm:$0xff] }
  0xdc   :  { %6968 = vst [vmem:[#allocation47_spill] sm:$0xff] %v4059_v37  ;;  %v2508_v57 = vpop.eup %2507  ;;  %v4071_v9 = vmul.f32 0.6931472, %v2506_v3  ;;  %2527 = vlog2.f32 %v6976_v20  ;;  %v6991_v20 = vld [vmem:[#allocation114_spill] sm:$0xff]  ;;  %v6997_v36 = vsub.f32 1.0, %v6996_v23 }
  0xdd   :  { %6971 = vst [vmem:[#allocation91_spill] sm:$0xff] %v4065_v0  ;;  %v2510_v10 = vpop.eup %2509  ;;  %v4077_v47 = vmul.f32 0.6931472, %v2508_v57  ;;  %2529 = vlog2.f32 %v6979_v48  ;;  %v7003_v48 = vld [vmem:[#allocation72_spill] sm:$0xff] }
  0xde   :  { %6974 = vst [vmem:[#allocation48_spill] sm:$0xff] %v4071_v9  ;;  %v2512_v15 = vpop.eup %2511  ;;  %v4083_v3 = vmul.f32 0.6931472, %v2510_v10  ;;  %2531 = vlog2.f32 %v6983_v7  ;;  %v6998_v7 = vld [vmem:[#allocation120_spill] sm:$0xff]  ;;  %v7004_v23 = vsub.f32 1.0, %v7003_v48 }
  0xdf   :  { %6978 = vst [vmem:[#allocation95_spill] sm:$0xff] %v4077_v47  ;;  %v2514_v37 = vpop.eup %2513  ;;  %v4089_v57 = vmul.f32 0.6931472, %v2512_v15  ;;  %2533 = vlog2.f32 %v6986_v63  ;;  %v7010_v63 = vld [vmem:[#allocation77_spill] sm:$0xff] }
  0xe0   :  { %6981 = vst [vmem:[#allocation52_spill] sm:$0xff] %v4083_v3  ;;  %v2516_v0 = vpop.eup %2515  ;;  %v4095_v10 = vmul.f32 0.6931472, %v2514_v37  ;;  %2535 = vlog2.f32 %v6990_v40  ;;  %v7005_v40 = vld [vmem:[#allocation128_spill] sm:$0xff]  ;;  %v7011_v48 = vsub.f32 1.0, %v7010_v63 }
  0xe1   :  { %6985 = vst [vmem:[#allocation101_spill] sm:$0xff] %v4089_v57  ;;  %v2518_v9 = vpop.eup %2517  ;;  %v4101_v15 = vmul.f32 0.6931472, %v2516_v0  ;;  %2537 = vlog2.f32 %v6993_v39  ;;  %v7017_v39 = vld [vmem:[#allocation82_spill] sm:$0xff] }
  0xe2   :  { %6988 = vst [vmem:[#allocation57_spill] sm:$0xff] %v4095_v10  ;;  %v2520_v47 = vpop.eup %2519  ;;  %v4107_v37 = vmul.f32 0.6931472, %v2518_v9  ;;  %2539 = vlog2.f32 %v6997_v36  ;;  %v7012_v36 = vld [vmem:[#allocation136_spill] sm:$0xff]  ;;  %v7018_v63 = vsub.f32 1.0, %v7017_v39  ;;  %v7023_v39 = vsub.f32 1.0, %v3258_v25 }
  0xe3   :  { %6992 = vst [vmem:[#allocation107_spill] sm:$0xff] %v4101_v15  ;;  %v2522_v3 = vpop.eup %2521  ;;  %v4113_v0 = vmul.f32 0.6931472, %v2520_v47  ;;  %2541 = vlog2.f32 %v7000_v42  ;;  %v7015_v42 = vld [vmem:[#allocation140_spill] sm:$0xff]  ;;  %v7027_v25 = vsub.f32 1.0, %v3284_v59  ;;  %v7032_v59 = vsub.f32 1.0, %v3310_v32 }
  0xe4   :  { %6995 = vst [vmem:[#allocation62_spill] sm:$0xff] %v4107_v37  ;;  %v2524_v57 = vpop.eup %2523  ;;  %v4119_v9 = vmul.f32 0.6931472, %v2522_v3  ;;  %2543 = vlog2.f32 %v7004_v23  ;;  %v7019_v23 = vld [vmem:[#allocation144_spill] sm:$0xff]  ;;  %v7034_v32 = vsub.f32 1.0, %v3336_v33  ;;  %v7037_v33 = vsub.f32 1.0, %v3362_v26 }
  0xe5   :  { %6999 = vst [vmem:[#allocation114_spill] sm:$0xff] %v4113_v0  ;;  %v2526_v10 = vpop.eup %2525  ;;  %v4125_v47 = vmul.f32 0.6931472, %v2524_v57  ;;  %2545 = vlog2.f32 %v7007_v34  ;;  %v7022_v34 = vld [vmem:[#allocation148_spill] sm:$0xff]  ;;  %v7042_v26 = vsub.f32 1.0, %v3388_v51  ;;  %v7046_v51 = vsub.f32 1.0, %v3414_v45 }
  0xe6   :  { %7002 = vst [vmem:[#allocation67_spill] sm:$0xff] %v4119_v9  ;;  %v2528_v15 = vpop.eup %2527  ;;  %v4131_v3 = vmul.f32 0.6931472, %v2526_v10  ;;  %2547 = vlog2.f32 %v7011_v48  ;;  %v7024_v48 = vld [vmem:[#allocation152_spill] sm:$0xff]  ;;  %v7053_v45 = vsub.f32 1.0, %v7052_v29 }
  0xe7   :  { %7006 = vst [vmem:[#allocation120_spill] sm:$0xff] %v4125_v47  ;;  %v2530_v37 = vpop.eup %2529  ;;  %v4137_v57 = vmul.f32 0.6931472, %v2528_v15  ;;  %2549 = vlog2.f32 %v7014_v60  ;;  %v7026_v60 = vld [vmem:[#allocation156_spill] sm:$0xff] }
  0xe8   :  { %7009 = vst [vmem:[#allocation72_spill] sm:$0xff] %v4131_v3  ;;  %v2532_v0 = vpop.eup %2531  ;;  %v4143_v10 = vmul.f32 0.6931472, %v2530_v37  ;;  %2551 = vlog2.f32 %v7018_v63  ;;  %v7028_v63 = vld [vmem:[#allocation159_spill] sm:$0xff] }
  0xe9   :  { %7013 = vst [vmem:[#allocation128_spill] sm:$0xff] %v4137_v57  ;;  %v2534_v9 = vpop.eup %2533  ;;  %v4149_v15 = vmul.f32 0.6931472, %v2532_v0  ;;  %2553 = vlog2.f32 %v7021_v21  ;;  %v7030_v21 = vld [vmem:[#allocation162_spill] sm:$0xff] }
  0xea   :  { %7016 = vst [vmem:[#allocation77_spill] sm:$0xff] %v4143_v10  ;;  %v2536_v47 = vpop.eup %2535  ;;  %v4155_v37 = vmul.f32 0.6931472, %v2534_v9  ;;  %2555 = vlog2.f32 %v7023_v39 }
  0xeb   :  { %7020 = vst [vmem:[#allocation136_spill] sm:$0xff] %v4149_v15  ;;  %v2538_v3 = vpop.eup %2537  ;;  %v4161_v0 = vmul.f32 0.6931472, %v2536_v47  ;;  %2557 = vlog2.f32 %v7025_v54 }
  0xec   :  { %v2540_v57 = vpop.eup %2539  ;;  %v4167_v9 = vmul.f32 0.6931472, %v2538_v3  ;;  %2559 = vlog2.f32 %v7027_v25 }
  0xed   :  { %v2542_v10 = vpop.eup %2541  ;;  %v4173_v47 = vmul.f32 0.6931472, %v2540_v57  ;;  %2561 = vlog2.f32 %v7029_v58 }
  0xee   :  { %v2544_v15 = vpop.eup %2543  ;;  %v4179_v3 = vmul.f32 0.6931472, %v2542_v10  ;;  %2563 = vlog2.f32 %v7032_v59 }
  0xef   :  { %v2546_v2 = vpop.eup %2545  ;;  %v4185_v57 = vmul.f32 0.6931472, %v2544_v15  ;;  %2565 = vlog2.f32 %v7033_v18 }
  0xf0   :  { %7031 = vst [vmem:[#allocation140_spill] sm:$0xff] %v4179_v3  ;;  %v2548_v16 = vpop.eup %2547  ;;  %v4191_v10 = vmul.f32 0.6931472, %v2546_v2  ;;  %2567 = vlog2.f32 %v7034_v32  ;;  %v7039_v3 = vld [vmem:[#allocation110_spill] sm:$0xff] }
  0xf1   :  { %v2550_v39 = vpop.eup %2549  ;;  %v4197_v15 = vmul.f32 0.6931472, %v2548_v16  ;;  %2569 = vlog2.f32 %v7035_v12  ;;  %v7040_v27 = vsub.f32 1.0, %v7039_v3  ;;  %v7044_v3 = vsub.f32 1.0, %v3401_v56 }
  0xf2   :  { %v2552_v54 = vpop.eup %2551  ;;  %v4203_v2 = vmul.f32 0.6931472, %v2550_v39  ;;  %2571 = vlog2.f32 %v7037_v33 }
  0xf3   :  { %v2554_v25 = vpop.eup %2553  ;;  %v4209_v16 = vmul.f32 0.6931472, %v2552_v54  ;;  %2573 = vlog2.f32 %v7040_v27  ;;  %v7060_v27 = vld [vmem:[#allocation135_spill] sm:$0xff] }
  0xf4   :  { %7036 = vst [vmem:[#allocation82_spill] sm:$0xff] %v4203_v2  ;;  %v2556_v58 = vpop.eup %2555  ;;  %v4215_v39 = vmul.f32 0.6931472, %v2554_v25  ;;  %2575 = vlog2.f32 %v7042_v26  ;;  %v7048_v2 = vld [vmem:[#allocation123_spill] sm:$0xff]  ;;  %v7061_v29 = vsub.f32 1.0, %v7060_v27 }
  0xf5   :  { %7038 = vst [vmem:[#allocation144_spill] sm:$0xff] %v4209_v16  ;;  %v2558_v59 = vpop.eup %2557  ;;  %v4221_v54 = vmul.f32 0.6931472, %v2556_v58  ;;  %2577 = vlog2.f32 %v7044_v3  ;;  %v7049_v56 = vsub.f32 1.0, %v7048_v2  ;;  %v7057_v2 = vsub.f32 1.0, %v7056_v24  ;;  %v7064_v26 = vld [vmem:[#allocation139_spill] sm:$0xff] }
  0xf6   :  { %7041 = vst [vmem:[#allocation148_spill] sm:$0xff] %v4215_v39  ;;  %v2560_v18 = vpop.eup %2559  ;;  %v4227_v25 = vmul.f32 0.6931472, %v2558_v59  ;;  %2579 = vlog2.f32 %v7046_v51  ;;  %v7065_v24 = vsub.f32 1.0, %v7064_v26  ;;  %v7068_v3 = vld [vmem:[#allocation143_spill] sm:$0xff] }
  0xf7   :  { %7043 = vst [vmem:[#allocation152_spill] sm:$0xff] %v4221_v54  ;;  %v2562_v32 = vpop.eup %2561  ;;  %v4233_v58 = vmul.f32 0.6931472, %v2560_v18  ;;  %2581 = vlog2.f32 %v7049_v56  ;;  %v7069_v27 = vsub.f32 1.0, %v7068_v3  ;;  %v7071_v51 = vld [vmem:[#allocation147_spill] sm:$0xff] }
  0xf8   :  { %7045 = vst [vmem:[#allocation156_spill] sm:$0xff] %v4227_v25  ;;  %v2564_v16 = vpop.eup %2563  ;;  %v4239_v59 = vmul.f32 0.6931472, %v2562_v32  ;;  %2583 = vlog2.f32 %v7053_v45  ;;  %v7072_v26 = vsub.f32 1.0, %v7071_v51  ;;  %v7075_v56 = vld [vmem:[#allocation151_spill] sm:$0xff] }
  0xf9   :  { %7047 = vst [vmem:[#allocation159_spill] sm:$0xff] %v4233_v58  ;;  %v2566_v39 = vpop.eup %2565  ;;  %v4245_v18 = vmul.f32 0.6931472, %v2564_v16  ;;  %2585 = vlog2.f32 %v7057_v2  ;;  %v7073_v2 = vld [vmem:[#allocation174_spill] sm:$0xff]  ;;  %v7076_v3 = vsub.f32 1.0, %v7075_v56  ;;  %v7079_v45 = vld [vmem:[#allocation155_spill] sm:$0xff] }
  0xfa   :  { %7051 = vst [vmem:[#allocation162_spill] sm:$0xff] %v4239_v59  ;;  %v2568_v54 = vpop.eup %2567  ;;  %v4251_v32 = vmul.f32 0.6931472, %v2566_v39  ;;  %2587 = vlog2.f32 %v7061_v29  ;;  %v7077_v29 = vld [vmem:[#allocation175_spill] sm:$0xff]  ;;  %v7080_v51 = vsub.f32 1.0, %v7079_v45 }
  0xfb   :  { %7055 = vst [vmem:[#allocation110_spill] sm:$0xff] %v4245_v18  ;;  %v2570_v25 = vpop.eup %2569  ;;  %v4257_v16 = vmul.f32 0.6931472, %v2568_v54  ;;  %2589 = vlog2.f32 %v7065_v24 }
  0xfc   :  { %7059 = vst [vmem:[#allocation123_spill] sm:$0xff] %v4251_v32  ;;  %v2572_v58 = vpop.eup %2571  ;;  %v4263_v39 = vmul.f32 0.6931472, %v2570_v25  ;;  %2591 = vlog2.f32 %v7069_v27 }
  0xfd   :  { %7063 = vst [vmem:[#allocation127_spill] sm:$0xff] %v4257_v16  ;;  %v2574_v59 = vpop.eup %2573  ;;  %v4269_v54 = vmul.f32 0.6931472, %v2572_v58  ;;  %2593 = vlog2.f32 %v7072_v26  ;;  %v7082_v16 = vld [vmem:[#allocation158_spill] sm:$0xff] }
  0xfe   :  { %7067 = vst [vmem:[#allocation131_spill] sm:$0xff] %v4263_v39  ;;  %v2576_v18 = vpop.eup %2575  ;;  %v4275_v25 = vmul.f32 0.6931472, %v2574_v59  ;;  %2595 = vlog2.f32 %v7076_v3  ;;  %v7083_v56 = vsub.f32 1.0, %v7082_v16  ;;  %v7085_v39 = vld [vmem:[#allocation161_spill] sm:$0xff] }
  0xff   :  { %v2578_v32 = vpop.eup %2577  ;;  %v4281_v58 = vmul.f32 0.6931472, %v2576_v18  ;;  %2597 = vlog2.f32 %v7080_v51  ;;  %v7086_v45 = vsub.f32 1.0, %v7085_v39  ;;  %v7087_v39 = vld [vmem:[#allocation137_spill] sm:$0xff] }
 0x100   :  { %7074 = vst [vmem:[#allocation135_spill] sm:$0xff] %v4275_v25  ;;  %v2580_v12 = vpop.eup %2579  ;;  %v4287_v59 = vmul.f32 0.6931472, %v2578_v32  ;;  %2599 = vlog2.f32 %v7083_v56 }
 0x101   :  { %7078 = vst [vmem:[#allocation139_spill] sm:$0xff] %v4281_v58  ;;  %v2582_v33 = vpop.eup %2581  ;;  %v4293_v18 = vmul.f32 0.6931472, %v2580_v12  ;;  %2601 = vlog2.f32 %v7086_v45  ;;  %v7098_v12 = vsub.f32 1.0, %v7097_v17 }
 0x102   :  { %7081 = vst [vmem:[#allocation143_spill] sm:$0xff] %v4287_v59  ;;  %v2584_v24 = vpop.eup %2583  ;;  %v4299_v32 = vmul.f32 0.6931472, %v2582_v33 }
 0x103   :  { %7084 = vst [vmem:[#allocation147_spill] sm:$0xff] %v4293_v18  ;;  %v2586_v27 = vpop.eup %2585  ;;  %v4304_v25 = vmul.f32 0.6931472, %v2584_v24 }
 0x104   :  { %v2588_v58 = vpop.eup %2587  ;;  %v4309_v26 = vmul.f32 0.6931472, %v2586_v27  ;;  %v7113_v27 = vld [vmem:[#allocation63_spill] sm:$0xff] }
 0x105   :  { %v2590_v59 = vpop.eup %2589  ;;  %v4314_v3 = vmul.f32 0.6931472, %v2588_v58  ;;  %v7108_v58 = vld [vmem:[#allocation53_spill] sm:$0xff] }
 0x106   :  { %7088 = vst [vmem:[#allocation174_spill] sm:$0xff] %v4309_v26  ;;  %v2592_v18 = vpop.eup %2591  ;;  %v4319_v51 = vmul.f32 0.6931472, %v2590_v59  ;;  %v7101_v59 = vld [vmem:[#allocation191_spill] sm:$0xff]  ;;  %v7109_v55 = vsub.f32 1.0, %v7108_v58 }
 0x107   :  { %7089 = vst [vmem:[#allocation151_spill] sm:$0xff] %v4314_v3  ;;  %v2594_v62 = vpop.eup %2593  ;;  %v4324_v56 = vmul.f32 0.6931472, %v2592_v18  ;;  %v7095_v3 = vld [vmem:[#allocation188_spill] sm:$0xff]  ;;  %v7102_v33 = vmax.f32 %v7101_v59, -100.0  ;;  %v7106_v18 = vld [vmem:[#allocation194_spill] sm:$0xff] }
 0x108   :  { %v2596_v61 = vpop.eup %2595  ;;  %v4329_v45 = vmul.f32 0.6931472, %v2594_v62  ;;  %v7096_v24 = vmax.f32 %v7095_v3, -100.0 }
 0x109   :  { %7090 = vst [vmem:[#allocation175_spill] sm:$0xff] %v4324_v56  ;;  %v2598_v19 = vpop.eup %2597  ;;  %v4334_v16 = vmul.f32 0.6931472, %v2596_v61  ;;  %v7104_v61 = vsub.f32 1.0, %v7103_v6  ;;  %v7107_v56 = vmax.f32 %v7106_v18, -100.0  ;;  %v7116_v6 = vld [vmem:[#allocation196_spill] sm:$0xff] }
 0x10a   :  { %7091 = vst [vmem:[#allocation155_spill] sm:$0xff] %v4329_v45  ;;  %v4342_v11 = vmul.f32 %v7098_v12, %v7096_v24  ;;  %v2600_v62 = vpop.eup %2599  ;;  %v4344_v26 = vmul.f32 0.6931472, %v2598_v19  ;;  %v7111_v24 = vld [vmem:[#allocation195_spill] sm:$0xff]  ;;  %v7114_v45 = vsub.f32 1.0, %v7113_v27 }
 0x10b   :  { %7093 = vst [vmem:[#allocation158_spill] sm:$0xff] %v4334_v16  ;;  %v4351_v4 = vmul.f32 %v7104_v61, %v7102_v33  ;;  %v4357_v3 = vmul.f32 %v7109_v55, %v7107_v56  ;;  %v2602_v17 = vpop.eup %2601  ;;  %v4359_v12 = vmul.f32 0.6931472, %v2600_v62  ;;  %v7117_v33 = vmax.f32 %v7116_v6, -100.0  ;;  %v7118_v61 = vld [vmem:[#allocation68_spill] sm:$0xff]  ;;  %v7122_v56 = vld [vmem:[#allocation29_spill] sm:$0xff] }
 0x10c   :  { %7099 = vst [vmem:[#allocation161_spill] sm:$0xff] %v4342_v11  ;;  %7100 = vst [vmem:[#allocation137_spill] sm:$0xff] %v4344_v26  ;;  %v7112_v11 = vmax.f32 %v7111_v24, -100.0  ;;  %v4374_v58 = vmul.f32 0.6931472, %v2602_v17  ;;  %v7123_v62 = vmax.f32 %v7122_v56, -100.0 }
 0x10d   :  { %7105 = vst [vmem:[#allocation188_spill] sm:$0xff] %v4351_v4  ;;  %7110 = vst [vmem:[#allocation49_spill] sm:$0xff] %v4357_v3  ;;  %v7119_v4 = vsub.f32 1.0, %v7118_v61  ;;  %v7124_v3 = vld [vmem:[#allocation73_spill] sm:$0xff]  ;;  %v7127_v24 = vld [vmem:[#allocation30_spill] sm:$0xff] }
 0x10e   :  { %v4366_v59 = vmul.f32 %v7114_v45, %v7112_v11  ;;  %7121 = vst [vmem:[#allocation194_spill] sm:$0xff] %v4374_v58  ;;  %v7125_v19 = vsub.f32 1.0, %v7124_v3  ;;  %v7128_v27 = vmax.f32 %v7127_v24, -100.0  ;;  %v7129_v11 = vld [vmem:[#allocation78_spill] sm:$0xff]  ;;  %v7134_v17 = vld [vmem:[#allocation83_spill] sm:$0xff]  ;;  %v7137_v55 = vld [vmem:[#allocation32_spill] sm:$0xff] }
 0x10f   :  { %v4372_v18 = vmul.f32 %v7119_v4, %v7117_v33  ;;  %v7130_v45 = vsub.f32 1.0, %v7129_v11  ;;  %v7132_v4 = vld [vmem:[#allocation31_spill] sm:$0xff]  ;;  %v7135_v61 = vsub.f32 1.0, %v7134_v17  ;;  %v7138_v56 = vmax.f32 %v7137_v55, -100.0  ;;  %v7147_v6 = vld [vmem:[#allocation34_spill] sm:$0xff] }
 0x110   :  { %7115 = vst [vmem:[#allocation191_spill] sm:$0xff] %v4366_v59  ;;  %v4381_v16 = vmul.f32 %v7125_v19, %v7123_v62  ;;  %v7133_v33 = vmax.f32 %v7132_v4, -100.0  ;;  %v7139_v26 = vld [vmem:[#allocation55_spill] sm:$0xff]  ;;  %v7142_v62 = vld [vmem:[#allocation33_spill] sm:$0xff]  ;;  %v7148_v4 = vmax.f32 %v7147_v6, -100.0 }
 0x111   :  { %7120 = vst [vmem:[#allocation50_spill] sm:$0xff] %v4372_v18  ;;  %v4387_v59 = vmul.f32 %v7130_v45, %v7128_v27  ;;  %v7140_v3 = vsub.f32 1.0, %v7139_v26  ;;  %v7143_v24 = vmax.f32 %v7142_v62, -100.0 }
 0x112   :  { %7126 = vst [vmem:[#allocation53_spill] sm:$0xff] %v4381_v16  ;;  %v4394_v18 = vmul.f32 %v7135_v61, %v7133_v33  ;;  %v7144_v16 = vld [vmem:[#allocation58_spill] sm:$0xff]  ;;  %v7152_v61 = vld [vmem:[#allocation35_spill] sm:$0xff] }
 0x113   :  { %7131 = vst [vmem:[#allocation195_spill] sm:$0xff] %v4387_v59  ;;  %v4400_v19 = vmul.f32 %v7140_v3, %v7138_v56  ;;  %v7145_v11 = vsub.f32 1.0, %v7144_v16  ;;  %v7149_v59 = vld [vmem:[#allocation60_spill] sm:$0xff]  ;;  %v7153_v55 = vmax.f32 %v7152_v61, -100.0 }
 0x114   :  { %7136 = vst [vmem:[#allocation63_spill] sm:$0xff] %v4394_v18  ;;  %v7150_v17 = vsub.f32 1.0, %v7149_v59  ;;  %v7154_v18 = vld [vmem:[#allocation65_spill] sm:$0xff]  ;;  %v7157_v3 = vld [vmem:[#allocation36_spill] sm:$0xff]  ;;  %v7166_v59 = vld [vmem:[#allocation38_spill] sm:$0xff] }
 0x115   :  { %7141 = vst [vmem:[#allocation196_spill] sm:$0xff] %v4400_v19  ;;  %v4406_v27 = vmul.f32 %v7145_v11, %v7143_v24  ;;  %v7155_v26 = vsub.f32 1.0, %v7154_v18  ;;  %v7158_v62 = vmax.f32 %v7157_v3, -100.0  ;;  %v7159_v19 = vld [vmem:[#allocation70_spill] sm:$0xff]  ;;  %v7162_v11 = vld [vmem:[#allocation37_spill] sm:$0xff]  ;;  %v7170_v18 = vld [vmem:[#allocation39_spill] sm:$0xff] }
 0x116   :  { %v4413_v33 = vmul.f32 %v7150_v17, %v7148_v4  ;;  %v7160_v16 = vsub.f32 1.0, %v7159_v19  ;;  %v7163_v45 = vmax.f32 %v7162_v11, -100.0  ;;  %v7167_v4 = vmax.f32 %v7166_v59, -100.0  ;;  %v7168_v17 = vld [vmem:[#allocation80_spill] sm:$0xff] }
 0x117   :  { %7146 = vst [vmem:[#allocation68_spill] sm:$0xff] %v4406_v27  ;;  %v4419_v56 = vmul.f32 %v7155_v26, %v7153_v55  ;;  %v7164_v27 = vld [vmem:[#allocation75_spill] sm:$0xff]  ;;  %v7169_v61 = vsub.f32 1.0, %v7168_v17  ;;  %v7171_v55 = vmax.f32 %v7170_v18, -100.0  ;;  %v7172_v26 = vld [vmem:[#allocation85_spill] sm:$0xff]  ;;  %v7175_v19 = vld [vmem:[#allocation40_spill] sm:$0xff] }
 0x118   :  { %7151 = vst [vmem:[#allocation29_spill] sm:$0xff] %v4413_v33  ;;  %v4425_v24 = vmul.f32 %v7160_v16, %v7158_v62  ;;  %v7165_v6 = vsub.f32 1.0, %v7164_v27  ;;  %v7173_v3 = vsub.f32 1.0, %v7172_v26  ;;  %v7176_v62 = vmax.f32 %v7175_v19, -100.0  ;;  %v7177_v16 = vld [vmem:[#allocation87_spill] sm:$0xff]  ;;  %v7179_v27 = vld [vmem:[#allocation41_spill] sm:$0xff] }
 0x119   :  { %7156 = vst [vmem:[#allocation73_spill] sm:$0xff] %v4419_v56  ;;  %v4437_v33 = vmul.f32 %v7169_v61, %v7167_v4  ;;  %v7178_v11 = vsub.f32 1.0, %v7177_v16  ;;  %v7183_v4 = vld [vmem:[#allocation42_spill] sm:$0xff]  ;;  %v7185_v61 = vsub.f32 1.0, %v6963_v38 }
 0x11a   :  { %7161 = vst [vmem:[#allocation30_spill] sm:$0xff] %v4425_v24  ;;  %v4431_v58 = vmul.f32 %v7165_v6, %v7163_v45  ;;  %v4443_v56 = vmul.f32 %v7173_v3, %v7171_v55  ;;  %v7180_v45 = vmax.f32 %v7179_v27, -100.0  ;;  %v7181_v6 = vsub.f32 1.0, %v6959_v49  ;;  %v7186_v55 = vld [vmem:[#allocation43_spill] sm:$0xff]  ;;  %v7188_v3 = vld [vmem:[#allocation93_spill] sm:$0xff]  ;;  %v7199_v38 = vld [vmem:[#allocation46_spill] sm:$0xff] }
 0x11b   :  { %v4449_v24 = vmul.f32 %v7178_v11, %v7176_v62  ;;  %v7184_v17 = vmax.f32 %v7183_v4, -100.0  ;;  %v7187_v26 = vmax.f32 %v7186_v55, -100.0  ;;  %v7189_v19 = vsub.f32 1.0, %v7188_v3  ;;  %v7191_v62 = vld [vmem:[#allocation44_spill] sm:$0xff]  ;;  %v7194_v49 = vld [vmem:[#allocation45_spill] sm:$0xff] }
 0x11c   :  { %7174 = vst [vmem:[#allocation78_spill] sm:$0xff] %v4443_v56  ;;  %v4455_v59 = vmul.f32 %v7181_v6, %v7180_v45  ;;  %v7192_v16 = vmax.f32 %v7191_v62, -100.0  ;;  %v7193_v11 = vsub.f32 1.0, %v6970_v8  ;;  %v7195_v45 = vmax.f32 %v7194_v49, -100.0  ;;  %v7196_v6 = vld [vmem:[#allocation98_spill] sm:$0xff]  ;;  %v7207_v8 = vld [vmem:[#allocation47_spill] sm:$0xff] }
 0x11d   :  { %v4461_v18 = vmul.f32 %v7185_v61, %v7184_v17  ;;  %v4467_v56 = vmul.f32 %v7189_v19, %v7187_v26  ;;  %v7197_v4 = vsub.f32 1.0, %v7196_v6  ;;  %v7200_v17 = vmax.f32 %v7199_v38, -100.0  ;;  %v7202_v26 = vld [vmem:[#allocation89_spill] sm:$0xff]  ;;  %v7204_v19 = vld [vmem:[#allocation104_spill] sm:$0xff] }
 0x11e   :  { %7182 = vst [vmem:[#allocation31_spill] sm:$0xff] %v4455_v59  ;;  %v4473_v27 = vmul.f32 %v7193_v11, %v7192_v16  ;;  %v7201_v61 = vsub.f32 1.0, %v6977_v5  ;;  %v7203_v3 = vmax.f32 %v7202_v26, -100.0  ;;  %v7205_v62 = vsub.f32 1.0, %v7204_v19  ;;  %v7215_v5 = vld [vmem:[#allocation48_spill] sm:$0xff] }
 0x11f   :  { %7190 = vst [vmem:[#allocation83_spill] sm:$0xff] %v4467_v56  ;;  %v4479_v59 = vmul.f32 %v7197_v4, %v7195_v45  ;;  %v7208_v16 = vmax.f32 %v7207_v8, -100.0  ;;  %v7209_v11 = vsub.f32 1.0, %v6984_v22  ;;  %v7210_v45 = vld [vmem:[#allocation91_spill] sm:$0xff]  ;;  %v7223_v22 = vld [vmem:[#allocation52_spill] sm:$0xff] }
 0x120   :  { %v4485_v55 = vmul.f32 %v7201_v61, %v7200_v17  ;;  %v4491_v56 = vmul.f32 %v7205_v62, %v7203_v3  ;;  %v7211_v6 = vmax.f32 %v7210_v45, -100.0  ;;  %v7212_v4 = vld [vmem:[#allocation111_spill] sm:$0xff]  ;;  %v7216_v17 = vmax.f32 %v7215_v5, -100.0  ;;  %v7220_v62 = vld [vmem:[#allocation117_spill] sm:$0xff] }
 0x121   :  { %7198 = vst [vmem:[#allocation32_spill] sm:$0xff] %v4479_v59  ;;  %v4497_v49 = vmul.f32 %v7209_v11, %v7208_v16  ;;  %v7213_v38 = vsub.f32 1.0, %v7212_v4  ;;  %v7217_v61 = vsub.f32 1.0, %v6991_v20  ;;  %v7218_v3 = vld [vmem:[#allocation95_spill] sm:$0xff]  ;;  %v7221_v8 = vsub.f32 1.0, %v7220_v62  ;;  %v7230_v20 = vld [vmem:[#allocation57_spill] sm:$0xff] }
 0x122   :  { %7206 = vst [vmem:[#allocation55_spill] sm:$0xff] %v4491_v56  ;;  %v7219_v19 = vmax.f32 %v7218_v3, -100.0  ;;  %v7224_v16 = vmax.f32 %v7223_v22, -100.0  ;;  %v7225_v11 = vsub.f32 1.0, %v6998_v7  ;;  %v7237_v7 = vld [vmem:[#allocation62_spill] sm:$0xff] }
 0x123   :  { %v4503_v59 = vmul.f32 %v7213_v38, %v7211_v6  ;;  %v4509_v26 = vmul.f32 %v7217_v61, %v7216_v17  ;;  %v7226_v6 = vld [vmem:[#allocation101_spill] sm:$0xff]  ;;  %v7228_v38 = vld [vmem:[#allocation124_spill] sm:$0xff]  ;;  %v7231_v17 = vmax.f32 %v7230_v20, -100.0  ;;  %v7232_v61 = vsub.f32 1.0, %v7005_v40  ;;  %v7243_v40 = vld [vmem:[#allocation67_spill] sm:$0xff] }
 0x124   :  { %v4515_v56 = vmul.f32 %v7221_v8, %v7219_v19  ;;  %v4521_v45 = vmul.f32 %v7225_v11, %v7224_v16  ;;  %v7227_v4 = vmax.f32 %v7226_v6, -100.0  ;;  %v7229_v5 = vsub.f32 1.0, %v7228_v38  ;;  %v7233_v19 = vld [vmem:[#allocation107_spill] sm:$0xff]  ;;  %v7235_v8 = vld [vmem:[#allocation132_spill] sm:$0xff] }
 0x125   :  { %7214 = vst [vmem:[#allocation33_spill] sm:$0xff] %v4503_v59  ;;  %v4533_v3 = vmul.f32 %v7232_v61, %v7231_v17  ;;  %v7234_v62 = vmax.f32 %v7233_v19, -100.0  ;;  %v7236_v22 = vsub.f32 1.0, %v7235_v8  ;;  %v7238_v16 = vmax.f32 %v7237_v7, -100.0 }
 0x126   :  { %7222 = vst [vmem:[#allocation58_spill] sm:$0xff] %v4515_v56  ;;  %v4527_v59 = vmul.f32 %v7229_v5, %v7227_v4  ;;  %v7239_v11 = vsub.f32 1.0, %v7012_v36  ;;  %v7240_v4 = vld [vmem:[#allocation114_spill] sm:$0xff]  ;;  %v7242_v5 = vsub.f32 1.0, %v7015_v42  ;;  %v7244_v17 = vmax.f32 %v7243_v40, -100.0  ;;  %v7249_v36 = vld [vmem:[#allocation72_spill] sm:$0xff] }
 0x127   :  { %v4539_v56 = vmul.f32 %v7236_v22, %v7234_v62  ;;  %v7241_v38 = vmax.f32 %v7240_v4, -100.0  ;;  %v7245_v61 = vsub.f32 1.0, %v7019_v23  ;;  %v7246_v62 = vld [vmem:[#allocation120_spill] sm:$0xff]  ;;  %v7248_v22 = vsub.f32 1.0, %v7022_v34  ;;  %v7255_v23 = vld [vmem:[#allocation77_spill] sm:$0xff] }
 0x128   :  { %v4545_v6 = vmul.f32 %v7239_v11, %v7238_v16  ;;  %v7247_v8 = vmax.f32 %v7246_v62, -100.0  ;;  %v7250_v16 = vmax.f32 %v7249_v36, -100.0  ;;  %v7251_v11 = vsub.f32 1.0, %v7024_v48  ;;  %v7252_v42 = vld [vmem:[#allocation128_spill] sm:$0xff] }
 0x129   :  { %v4551_v20 = vmul.f32 %v7242_v5, %v7241_v38  ;;  %v4557_v19 = vmul.f32 %v7245_v61, %v7244_v17  ;;  %v7253_v38 = vmax.f32 %v7252_v42, -100.0  ;;  %v7254_v5 = vsub.f32 1.0, %v7026_v60  ;;  %v7258_v34 = vld [vmem:[#allocation136_spill] sm:$0xff] }
 0x12a   :  { %v4563_v7 = vmul.f32 %v7248_v22, %v7247_v8  ;;  %v4569_v4 = vmul.f32 %v7251_v11, %v7250_v16  ;;  %v7256_v17 = vmax.f32 %v7255_v23, -100.0  ;;  %v7257_v61 = vsub.f32 1.0, %v7028_v63 }
 0x12b   :  { %v4575_v40 = vmul.f32 %v7254_v5, %v7253_v38  ;;  %v7259_v8 = vmax.f32 %v7258_v34, -100.0  ;;  %v7260_v22 = vsub.f32 1.0, %v7030_v21  ;;  %v7261_v48 = vmax.f32 %v4155_v37, -100.0 }
 0x12c   :  { %v4581_v62 = vmul.f32 %v7257_v61, %v7256_v17  ;;  %v7262_v16 = vsub.f32 1.0, %v3650_v53  ;;  %v7263_v60 = vmax.f32 %v4161_v0, -100.0  ;;  %v7264_v42 = vsub.f32 1.0, %v3652_v13  ;;  %v7269_v53 = vld [vmem:[#allocation140_spill] sm:$0xff] }
 0x12d   :  { %v4587_v36 = vmul.f32 %v7260_v22, %v7259_v8  ;;  %v7265_v63 = vmax.f32 %v4167_v9, -100.0  ;;  %v7266_v5 = vsub.f32 1.0, %v3659_v46  ;;  %v7267_v21 = vmax.f32 %v4173_v47, -100.0 }
 0x12e   :  { %v4593_v11 = vmul.f32 %v7262_v16, %v7261_v48  ;;  %v4599_v38 = vmul.f32 %v7264_v42, %v7263_v60  ;;  %v7268_v37 = vsub.f32 1.0, %v3661_v28  ;;  %v7270_v61 = vmax.f32 %v7269_v53, -100.0  ;;  %v7277_v48 = vld [vmem:[#allocation167_spill] sm:$0xff] }
 0x12f   :  { %v4605_v23 = vmul.f32 %v7266_v5, %v7265_v63  ;;  %v7271_v0 = vsub.f32 1.0, %v3663_v14  ;;  %v7272_v13 = vmax.f32 %v4185_v57, -100.0  ;;  %v7273_v9 = vsub.f32 1.0, %v3678_v44  ;;  %v7279_v14 = vld [vmem:[#allocation82_spill] sm:$0xff]  ;;  %v7281_v63 = vld [vmem:[#allocation169_spill] sm:$0xff]  ;;  %v7283_v44 = vld [vmem:[#allocation144_spill] sm:$0xff] }
 0x130   :  { %v4611_v17 = vmul.f32 %v7268_v37, %v7267_v21  ;;  %v7274_v46 = vmax.f32 %v4191_v10, -100.0  ;;  %v7275_v47 = vsub.f32 1.0, %v3680_v52  ;;  %v7276_v28 = vmax.f32 %v4197_v15, -100.0  ;;  %v7285_v37 = vld [vmem:[#allocation170_spill] sm:$0xff]  ;;  %v7287_v52 = vld [vmem:[#allocation148_spill] sm:$0xff] }
 0x131   :  { %v4617_v34 = vmul.f32 %v7271_v0, %v7270_v61  ;;  %v4623_v8 = vmul.f32 %v7273_v9, %v7272_v13  ;;  %v7278_v16 = vsub.f32 1.0, %v7277_v48  ;;  %v7280_v42 = vmax.f32 %v7279_v14, -100.0  ;;  %v7289_v0 = vld [vmem:[#allocation171_spill] sm:$0xff]  ;;  %v7292_v9 = vld [vmem:[#allocation152_spill] sm:$0xff] }
 0x132   :  { %v4629_v22 = vmul.f32 %v7275_v47, %v7274_v46  ;;  %v7282_v57 = vsub.f32 1.0, %v7281_v63  ;;  %v7284_v21 = vmax.f32 %v7283_v44, -100.0  ;;  %v7286_v10 = vsub.f32 1.0, %v7285_v37  ;;  %v7294_v47 = vld [vmem:[#allocation108_spill] sm:$0xff]  ;;  %v7300_v44 = vld [vmem:[#allocation159_spill] sm:$0xff]  ;;  %v7302_v37 = vld [vmem:[#allocation173_spill] sm:$0xff] }
 0x133   :  { %v4635_v60 = vmul.f32 %v7278_v16, %v7276_v28  ;;  %v7288_v61 = vmax.f32 %v7287_v52, -100.0  ;;  %v7290_v15 = vsub.f32 1.0, %v7289_v0  ;;  %v7293_v46 = vmax.f32 %v7292_v9, -100.0  ;;  %v7296_v16 = vld [vmem:[#allocation156_spill] sm:$0xff] }
 0x134   :  { %v4641_v5 = vmul.f32 %v7282_v57, %v7280_v42  ;;  %v4647_v53 = vmul.f32 %v7286_v10, %v7284_v21  ;;  %v7295_v28 = vsub.f32 1.0, %v7294_v47  ;;  %v7297_v14 = vmax.f32 %v7296_v16, -100.0  ;;  %v7298_v42 = vld [vmem:[#allocation172_spill] sm:$0xff] }
 0x135   :  { %v4653_v13 = vmul.f32 %v7290_v15, %v7288_v61  ;;  %v7299_v63 = vsub.f32 1.0, %v7298_v42  ;;  %v7301_v21 = vmax.f32 %v7300_v44, -100.0  ;;  %v7303_v10 = vsub.f32 1.0, %v7302_v37  ;;  %v7304_v61 = vld [vmem:[#allocation162_spill] sm:$0xff] }
 0x136   :  { %v4659_v48 = vmul.f32 %v7295_v28, %v7293_v46  ;;  %v7305_v0 = vmax.f32 %v7304_v61, -100.0  ;;  %v7306_v15 = vld [vmem:[#allocation118_spill] sm:$0xff]  ;;  %v7310_v28 = vsub.f32 1.0, %v7073_v2  ;;  %v7320_v2 = vmax.f32 %v4269_v54, -100.0 }
 0x137   :  { %7291 = vst [vmem:[#allocation34_spill] sm:$0xff] %v4653_v13  ;;  %v4665_v57 = vmul.f32 %v7299_v63, %v7297_v14  ;;  %v4671_v52 = vmul.f32 %v7303_v10, %v7301_v21  ;;  %v7307_v9 = vsub.f32 1.0, %v7306_v15  ;;  %v7308_v46 = vld [vmem:[#allocation110_spill] sm:$0xff]  ;;  %v7311_v14 = vld [vmem:[#allocation123_spill] sm:$0xff]  ;;  %v7313_v63 = vsub.f32 1.0, %v7077_v29 }
 0x138   :  { %v7309_v47 = vmax.f32 %v7308_v46, -100.0  ;;  %v7312_v42 = vmax.f32 %v7311_v14, -100.0  ;;  %v7314_v21 = vld [vmem:[#allocation127_spill] sm:$0xff]  ;;  %v7316_v10 = vsub.f32 1.0, %v3770_v31  ;;  %v7330_v54 = vsub.f32 1.0, %v7087_v39  ;;  %v7340_v39 = vld [vmem:[#allocation174_spill] sm:$0xff] }
 0x139   :  { %v4677_v13 = vmul.f32 %v7307_v9, %v7305_v0  ;;  %v7315_v37 = vmax.f32 %v7314_v21, -100.0  ;;  %v7317_v0 = vld [vmem:[#allocation131_spill] sm:$0xff]  ;;  %v7319_v9 = vsub.f32 1.0, %v3772_v50 }
 0x13a   :  { %v4683_v16 = vmul.f32 %v7310_v28, %v7309_v47  ;;  %v4689_v44 = vmul.f32 %v7313_v63, %v7312_v42  ;;  %v7318_v15 = vmax.f32 %v7317_v0, -100.0  ;;  %v7321_v47 = vsub.f32 1.0, %v3774_v1  ;;  %v7322_v29 = vld [vmem:[#allocation135_spill] sm:$0xff] }
 0x13b   :  { %v4695_v61 = vmul.f32 %v7316_v10, %v7315_v37  ;;  %v7323_v14 = vmax.f32 %v7322_v29, -100.0  ;;  %v7324_v42 = vsub.f32 1.0, %v3793_v41  ;;  %v7325_v31 = vld [vmem:[#allocation139_spill] sm:$0xff]  ;;  %v7327_v37 = vsub.f32 1.0, %v3795_v43  ;;  %v7335_v29 = vld [vmem:[#allocation149_spill] sm:$0xff] }
 0x13c   :  { %v4701_v46 = vmul.f32 %v7319_v9, %v7318_v15  ;;  %v4707_v28 = vmul.f32 %v7321_v47, %v7320_v2  ;;  %v7326_v21 = vmax.f32 %v7325_v31, -100.0  ;;  %v7328_v50 = vld [vmem:[#allocation143_spill] sm:$0xff]  ;;  %v7333_v2 = vsub.f32 1.0, %v3816_v35 }
 0x13d   :  { %v4713_v63 = vmul.f32 %v7324_v42, %v7323_v14  ;;  %v7329_v0 = vmax.f32 %v7328_v50, -100.0  ;;  %v7331_v1 = vld [vmem:[#allocation147_spill] sm:$0xff]  ;;  %v7334_v41 = vmax.f32 %v4299_v32, -100.0  ;;  %v7336_v14 = vsub.f32 1.0, %v7335_v29  ;;  %v7342_v50 = vld [vmem:[#allocation177_spill] sm:$0xff] }
 0x13e   :  { %v4719_v10 = vmul.f32 %v7327_v37, %v7326_v21  ;;  %v7332_v9 = vmax.f32 %v7331_v1, -100.0  ;;  %v7337_v43 = vmax.f32 %v4304_v25, -100.0  ;;  %v7338_v31 = vsub.f32 1.0, %v3820_v30  ;;  %v7345_v35 = vld [vmem:[#allocation151_spill] sm:$0xff] }
 0x13f   :  { %v4725_v15 = vmul.f32 %v7330_v54, %v7329_v0  ;;  %v4737_v42 = vmul.f32 %v7336_v14, %v7334_v41  ;;  %v7341_v37 = vmax.f32 %v7340_v39, -100.0  ;;  %v7343_v0 = vsub.f32 1.0, %v7342_v50  ;;  %v7351_v29 = vld [vmem:[#allocation179_spill] sm:$0xff] }
 0x140   :  { %v4731_v47 = vmul.f32 %v7333_v2, %v7332_v9  ;;  %v4743_v21 = vmul.f32 %v7338_v31, %v7337_v43  ;;  %v7346_v1 = vmax.f32 %v7345_v35, -100.0  ;;  %v7347_v9 = vld [vmem:[#allocation178_spill] sm:$0xff]  ;;  %v7350_v41 = vmax.f32 %v4319_v51, -100.0  ;;  %v7354_v30 = vld [vmem:[#allocation175_spill] sm:$0xff] }
 0x141   :  { %v4749_v54 = vmul.f32 %v7343_v0, %v7341_v37  ;;  %v7348_v32 = vsub.f32 1.0, %v7347_v9  ;;  %v7352_v25 = vsub.f32 1.0, %v7351_v29  ;;  %v7355_v43 = vmax.f32 %v7354_v30, -100.0  ;;  %v7356_v31 = vld [vmem:[#allocation182_spill] sm:$0xff]  ;;  %v7358_v37 = vld [vmem:[#allocation155_spill] sm:$0xff] }
 0x142   :  { %7339 = vst [vmem:[#allocation60_spill] sm:$0xff] %v4743_v21  ;;  %v7357_v39 = vsub.f32 1.0, %v7356_v31  ;;  %v7359_v50 = vmax.f32 %v7358_v37, -100.0  ;;  %v7360_v0 = vld [vmem:[#allocation183_spill] sm:$0xff]  ;;  %v7373_v31 = vld [vmem:[#allocation190_spill] sm:$0xff] }
 0x143   :  { %7344 = vst [vmem:[#allocation35_spill] sm:$0xff] %v4749_v54  ;;  %v4755_v2 = vmul.f32 %v7348_v32, %v7346_v1  ;;  %v4761_v14 = vmul.f32 %v7352_v25, %v7350_v41  ;;  %v7361_v35 = vsub.f32 1.0, %v7360_v0  ;;  %v7363_v1 = vld [vmem:[#allocation158_spill] sm:$0xff]  ;;  %v7367_v41 = vld [vmem:[#allocation137_spill] sm:$0xff]  ;;  %v7369_v25 = vld [vmem:[#allocation187_spill] sm:$0xff] }
 0x144   :  { %v4767_v21 = vmul.f32 %v7357_v39, %v7355_v43  ;;  %v7364_v9 = vmax.f32 %v7363_v1, -100.0  ;;  %v7365_v32 = vld [vmem:[#allocation186_spill] sm:$0xff]  ;;  %v7368_v29 = vmax.f32 %v7367_v41, -100.0  ;;  %v7370_v30 = vsub.f32 1.0, %v7369_v25  ;;  %v7384_v25 = vld [vmem:[#allocation188_spill] sm:$0xff] }
 0x145   :  { %7349 = vst [vmem:[#allocation65_spill] sm:$0xff] %v4755_v2  ;;  %7353 = vst [vmem:[#allocation36_spill] sm:$0xff] %v4761_v14  ;;  %v4773_v54 = vmul.f32 %v7361_v35, %v7359_v50  ;;  %v7366_v51 = vsub.f32 1.0, %v7365_v32  ;;  %v7372_v43 = vmax.f32 %v4359_v12, -100.0  ;;  %v7374_v39 = vsub.f32 1.0, %v7373_v31  ;;  %v7375_v50 = vld [vmem:[#allocation194_spill] sm:$0xff] }
 0x146   :  { %v4785_v14 = vmul.f32 %v7370_v30, %v7368_v29  ;;  %v7376_v0 = vmax.f32 %v7375_v50, -100.0  ;;  %v7377_v35 = vld [vmem:[#allocation193_spill] sm:$0xff]  ;;  %v7383_v41 = vld [vmem:[#allocation54_spill] sm:$0xff]  ;;  %v7386_v30 = vld [vmem:[#allocation56_spill] sm:$0xff] }
 0x147   :  { %7362 = vst [vmem:[#allocation70_spill] sm:$0xff] %v4773_v54  ;;  %v4779_v2 = vmul.f32 %v7366_v51, %v7364_v9  ;;  %v4791_v37 = vmul.f32 %v7374_v39, %v7372_v43  ;;  %v7378_v1 = vsub.f32 1.0, %v7377_v35  ;;  %v7380_v9 = vld [vmem:[#allocation51_spill] sm:$0xff]  ;;  %v7381_v32 = vld [vmem:[#allocation161_spill] sm:$0xff]  ;;  %v4805_v29 = vadd.f32 %v7384_v25, %v7383_v41  ;;  %v7389_v43 = vld [vmem:[#allocation66_spill] sm:$0xff] }
 0x148   :  { %7371 = vst [vmem:[#allocation37_spill] sm:$0xff] %v4785_v14  ;;  %v4801_v51 = vadd.f32 %v7381_v32, %v7380_v9  ;;  %v7387_v12 = vld [vmem:[#allocation49_spill] sm:$0xff]  ;;  %v7390_v31 = vld [vmem:[#allocation191_spill] sm:$0xff]  ;;  %v7393_v35 = vld [vmem:[#allocation50_spill] sm:$0xff] }
 0x149   :  { %v4797_v54 = vmul.f32 %v7378_v1, %v7376_v0  ;;  %7385 = vst [vmem:[#allocation80_spill] sm:$0xff] %v4805_v29  ;;  %v4809_v14 = vadd.f32 %v7387_v12, %v7386_v30  ;;  %v4813_v39 = vadd.f32 %v7390_v31, %v7389_v43  ;;  %v7392_v50 = vld [vmem:[#allocation71_spill] sm:$0xff]  ;;  %v7395_v1 = vld [vmem:[#allocation76_spill] sm:$0xff]  ;;  %v7398_v32 = vld [vmem:[#allocation81_spill] sm:$0xff] }
 0x14a   :  { %7382 = vst [vmem:[#allocation38_spill] sm:$0xff] %v4801_v51  ;;  %v4817_v0 = vadd.f32 %v7393_v35, %v7392_v50  ;;  %v7399_v51 = vld [vmem:[#allocation195_spill] sm:$0xff]  ;;  %v7401_v25 = vld [vmem:[#allocation86_spill] sm:$0xff]  ;;  %v7406_v31 = vld [vmem:[#allocation61_spill] sm:$0xff] }
 0x14b   :  { %7379 = vst [vmem:[#allocation75_spill] sm:$0xff] %v4797_v54  ;;  %7388 = vst [vmem:[#allocation39_spill] sm:$0xff] %v4809_v14  ;;  %v7396_v54 = vld [vmem:[#allocation53_spill] sm:$0xff]  ;;  %v4825_v41 = vadd.f32 %v7399_v51, %v7398_v32  ;;  %v7402_v29 = vld [vmem:[#allocation63_spill] sm:$0xff] }
 0x14c   :  { %7391 = vst [vmem:[#allocation85_spill] sm:$0xff] %v4813_v39  ;;  %7394 = vst [vmem:[#allocation40_spill] sm:$0xff] %v4817_v0  ;;  %v4821_v9 = vadd.f32 %v7396_v54, %v7395_v1  ;;  %v4829_v30 = vadd.f32 %v7402_v29, %v7401_v25  ;;  %v7403_v12 = vld [vmem:[#allocation59_spill] sm:$0xff]  ;;  %v7404_v14 = vld [vmem:[#allocation196_spill] sm:$0xff] }
 0x14d   :  { %7400 = vst [vmem:[#allocation41_spill] sm:$0xff] %v4825_v41  ;;  %v4833_v43 = vadd.f32 %v7404_v14, %v7403_v12  ;;  %v7407_v39 = vld [vmem:[#allocation68_spill] sm:$0xff]  ;;  %v7410_v0 = vld [vmem:[#allocation29_spill] sm:$0xff]  ;;  %v7415_v32 = vld [vmem:[#allocation74_spill] sm:$0xff] }
 0x14e   :  { %7397 = vst [vmem:[#allocation87_spill] sm:$0xff] %v4821_v9  ;;  %v4837_v50 = vadd.f32 %v7407_v39, %v7406_v31  ;;  %v7409_v35 = vld [vmem:[#allocation64_spill] sm:$0xff]  ;;  %v7412_v1 = vld [vmem:[#allocation69_spill] sm:$0xff]  ;;  %v7416_v41 = vld [vmem:[#allocation30_spill] sm:$0xff] }
 0x14f   :  { %7405 = vst [vmem:[#allocation42_spill] sm:$0xff] %v4833_v43  ;;  %v4841_v54 = vadd.f32 %v7410_v0, %v7409_v35  ;;  %v7413_v9 = vld [vmem:[#allocation73_spill] sm:$0xff]  ;;  %v4849_v29 = vadd.f32 %v7416_v41, %v7415_v32  ;;  %v7417_v25 = vld [vmem:[#allocation79_spill] sm:$0xff]  ;;  %v7419_v12 = vld [vmem:[#allocation84_spill] sm:$0xff] }
 0x150   :  { %7408 = vst [vmem:[#allocation43_spill] sm:$0xff] %v4837_v50  ;;  %v4845_v51 = vadd.f32 %v7413_v9, %v7412_v1  ;;  %v4853_v14 = vadd.f32 %v4431_v58, %v7417_v25  ;;  %v4857_v39 = vadd.f32 %v4437_v33, %v7419_v12  ;;  %v7420_v31 = vld [vmem:[#allocation88_spill] sm:$0xff]  ;;  %v7421_v50 = vld [vmem:[#allocation78_spill] sm:$0xff]  ;;  %v7429_v25 = vld [vmem:[#allocation97_spill] sm:$0xff] }
 0x151   :  { %7411 = vst [vmem:[#allocation93_spill] sm:$0xff] %v4841_v54  ;;  %v4861_v0 = vadd.f32 %v7421_v50, %v7420_v31  ;;  %v7423_v35 = vld [vmem:[#allocation90_spill] sm:$0xff]  ;;  %v7424_v1 = vld [vmem:[#allocation92_spill] sm:$0xff]  ;;  %v7434_v31 = vld [vmem:[#allocation103_spill] sm:$0xff] }
 0x152   :  { %7414 = vst [vmem:[#allocation44_spill] sm:$0xff] %v4845_v51  ;;  %7418 = vst [vmem:[#allocation45_spill] sm:$0xff] %v4853_v14  ;;  %v4865_v9 = vadd.f32 %v4449_v24, %v7423_v35  ;;  %v7425_v51 = vld [vmem:[#allocation31_spill] sm:$0xff]  ;;  %v7427_v32 = vld [vmem:[#allocation94_spill] sm:$0xff] }
 0x153   :  { %7422 = vst [vmem:[#allocation98_spill] sm:$0xff] %v4861_v0  ;;  %v4869_v41 = vadd.f32 %v7425_v51, %v7424_v1  ;;  %v4873_v58 = vadd.f32 %v4461_v18, %v7427_v32  ;;  %v7430_v14 = vld [vmem:[#allocation83_spill] sm:$0xff]  ;;  %v7432_v12 = vld [vmem:[#allocation100_spill] sm:$0xff]  ;;  %v7437_v35 = vld [vmem:[#allocation106_spill] sm:$0xff] }
 0x154   :  { %v4877_v33 = vadd.f32 %v7430_v14, %v7429_v25  ;;  %v4881_v50 = vadd.f32 %v4473_v27, %v7432_v12  ;;  %v7435_v0 = vld [vmem:[#allocation32_spill] sm:$0xff]  ;;  %v4889_v51 = vadd.f32 %v4485_v55, %v7437_v35  ;;  %v7439_v1 = vld [vmem:[#allocation109_spill] sm:$0xff]  ;;  %v7447_v12 = vld [vmem:[#allocation119_spill] sm:$0xff] }
 0x155   :  { %7426 = vst [vmem:[#allocation46_spill] sm:$0xff] %v4869_v41  ;;  %7428 = vst [vmem:[#allocation89_spill] sm:$0xff] %v4873_v58  ;;  %v4885_v24 = vadd.f32 %v7435_v0, %v7434_v31  ;;  %v7440_v41 = vld [vmem:[#allocation55_spill] sm:$0xff]  ;;  %v7442_v32 = vld [vmem:[#allocation113_spill] sm:$0xff]  ;;  %v4905_v0 = vadd.f32 %v4509_v26, %v7447_v12 }
 0x156   :  { %7431 = vst [vmem:[#allocation104_spill] sm:$0xff] %v4877_v33  ;;  %7433 = vst [vmem:[#allocation47_spill] sm:$0xff] %v4881_v50  ;;  %v4893_v18 = vadd.f32 %v7440_v41, %v7439_v1  ;;  %v4897_v14 = vadd.f32 %v4497_v49, %v7442_v32  ;;  %v7444_v25 = vld [vmem:[#allocation116_spill] sm:$0xff]  ;;  %v7445_v33 = vld [vmem:[#allocation33_spill] sm:$0xff] }
 0x157   :  { %7436 = vst [vmem:[#allocation91_spill] sm:$0xff] %v4885_v24  ;;  %7438 = vst [vmem:[#allocation111_spill] sm:$0xff] %v4889_v51  ;;  %v4901_v27 = vadd.f32 %v7445_v33, %v7444_v25  ;;  %v7449_v31 = vld [vmem:[#allocation122_spill] sm:$0xff]  ;;  %v327_v54 = vld [vmem:[#allocation9 + $0x140] sm:$0xff] }
 0x158   :  { %7441 = vst [vmem:[#allocation48_spill] sm:$0xff] %v4893_v18  ;;  %7443 = vst [vmem:[#allocation95_spill] sm:$0xff] %v4897_v14  ;;  %v7450_v24 = vld [vmem:[#allocation58_spill] sm:$0xff]  ;;  %v5296_v18 = vld [vmem:[#allocation4 + $0x80] sm:$0xff] }
 0x159   :  { %7446 = vst [vmem:[#allocation117_spill] sm:$0xff] %v4901_v27  ;;  %7448 = vst [vmem:[#allocation52_spill] sm:$0xff] %v4905_v0  ;;  %v4909_v55 = vadd.f32 %v7450_v24, %v7449_v31  ;;  %v7452_v35 = vld [vmem:[#allocation126_spill] sm:$0xff]  ;;  %v323_v27 = vld [vmem:[#allocation9 + $0x120] sm:$0xff] }
 0x15a   :  { %v4913_v41 = vadd.f32 %v4521_v45, %v7452_v35  ;;  %v7454_v1 = vld [vmem:[#allocation130_spill] sm:$0xff]  ;;  %7599 = vst [vmem:[#allocation76_spill] sm:$0xff] %v5296_v18  ;;  %v5320_v50 = vld [vmem:[#allocation9 + $0x158] sm:$0xff] }
 0x15b   :  { %7451 = vst [vmem:[#allocation101_spill] sm:$0xff] %v4909_v55  ;;  %v4917_v49 = vadd.f32 %v4527_v59, %v7454_v1  ;;  %v7456_v32 = vld [vmem:[#allocation134_spill] sm:$0xff]  ;;  %v5285_v55 = vld [vmem:[#allocation4 + $0x78] sm:$0xff] }
 0x15c   :  { %7453 = vst [vmem:[#allocation124_spill] sm:$0xff] %v4913_v41  ;;  %v4921_v33 = vadd.f32 %v4533_v3, %v7456_v32  ;;  %v7458_v25 = vld [vmem:[#allocation138_spill] sm:$0xff]  ;;  %v7468_v32 = vld [vmem:[#allocation157_spill] sm:$0xff]  ;;  %7598 = vst [vmem:[#allocation50_spill] sm:$0xff] %v5285_v55 }
 0x15d   :  { %7455 = vst [vmem:[#allocation57_spill] sm:$0xff] %v4917_v49  ;;  %v4925_v26 = vadd.f32 %v4539_v56, %v7458_v25  ;;  %v7460_v12 = vld [vmem:[#allocation142_spill] sm:$0xff]  ;;  %v4945_v56 = vadd.f32 %v4569_v4, %v7468_v32  ;;  %v7470_v25 = vld [vmem:[#allocation160_spill] sm:$0xff]  ;;  %v5262_v49 = vld [vmem:[#allocation9 + $0x100] sm:$0xff] }
 0x15e   :  { %7457 = vst [vmem:[#allocation107_spill] sm:$0xff] %v4921_v33  ;;  %v4929_v24 = vadd.f32 %v4545_v6, %v7460_v12  ;;  %v7462_v31 = vld [vmem:[#allocation146_spill] sm:$0xff]  ;;  %v4949_v6 = vadd.f32 %v4575_v40, %v7470_v25  ;;  %v7472_v12 = vld [vmem:[#allocation163_spill] sm:$0xff]  ;;  %v7480_v32 = vld [vmem:[#allocation168_spill] sm:$0xff] }
 0x15f   :  { %7459 = vst [vmem:[#allocation132_spill] sm:$0xff] %v4925_v26  ;;  %v4933_v45 = vadd.f32 %v4551_v20, %v7462_v31  ;;  %v7464_v35 = vld [vmem:[#allocation150_spill] sm:$0xff]  ;;  %7469 = vst [vmem:[#allocation72_spill] sm:$0xff] %v4945_v56  ;;  %v4953_v20 = vadd.f32 %v4581_v62, %v7472_v12  ;;  %v7474_v31 = vld [vmem:[#allocation164_spill] sm:$0xff]  ;;  %v4969_v40 = vadd.f32 %v4605_v23, %v7480_v32 }
 0x160   :  { %7461 = vst [vmem:[#allocation62_spill] sm:$0xff] %v4929_v24  ;;  %v4937_v59 = vadd.f32 %v4557_v19, %v7464_v35  ;;  %v7466_v1 = vld [vmem:[#allocation154_spill] sm:$0xff]  ;;  %7471 = vst [vmem:[#allocation128_spill] sm:$0xff] %v4949_v6  ;;  %v4957_v19 = vadd.f32 %v4587_v36, %v7474_v31  ;;  %v7476_v35 = vld [vmem:[#allocation165_spill] sm:$0xff] }
 0x161   :  { %7463 = vst [vmem:[#allocation114_spill] sm:$0xff] %v4933_v45  ;;  %v4941_v3 = vadd.f32 %v4563_v7, %v7466_v1  ;;  %7473 = vst [vmem:[#allocation77_spill] sm:$0xff] %v4953_v20  ;;  %v4961_v7 = vadd.f32 %v4593_v11, %v7476_v35  ;;  %v7478_v1 = vld [vmem:[#allocation166_spill] sm:$0xff]  ;;  %v7482_v25 = vld [vmem:[#allocation96_spill] sm:$0xff] }
 0x162   :  { %7465 = vst [vmem:[#allocation67_spill] sm:$0xff] %v4937_v59  ;;  %7475 = vst [vmem:[#allocation136_spill] sm:$0xff] %v4957_v19  ;;  %v4965_v4 = vadd.f32 %v4599_v38, %v7478_v1  ;;  %v4973_v62 = vadd.f32 %v4611_v17, %v7482_v25  ;;  %v7484_v12 = vld [vmem:[#allocation99_spill] sm:$0xff]  ;;  %v7486_v31 = vld [vmem:[#allocation17_spill] sm:$0xff] }
 0x163   :  { %7467 = vst [vmem:[#allocation120_spill] sm:$0xff] %v4941_v3  ;;  %7477 = vst [vmem:[#allocation140_spill] sm:$0xff] %v4961_v7  ;;  %v4977_v36 = vadd.f32 %v4617_v34, %v7484_v12  ;;  %v4981_v11 = vadd.f32 %v4623_v8, %v7486_v31  ;;  %v7488_v35 = vld [vmem:[#allocation102_spill] sm:$0xff]  ;;  %v7490_v1 = vld [vmem:[#allocation105_spill] sm:$0xff] }
 0x164   :  { %7479 = vst [vmem:[#allocation167_spill] sm:$0xff] %v4965_v4  ;;  %7481 = vst [vmem:[#allocation82_spill] sm:$0xff] %v4969_v40  ;;  %v4985_v38 = vadd.f32 %v4629_v22, %v7488_v35  ;;  %v4989_v23 = vadd.f32 %v4635_v60, %v7490_v1  ;;  %v7492_v32 = vld [vmem:[#allocation18_spill] sm:$0xff]  ;;  %v7494_v25 = vld [vmem:[#allocation112_spill] sm:$0xff] }
 0x165   :  { %7483 = vst [vmem:[#allocation169_spill] sm:$0xff] %v4973_v62  ;;  %7485 = vst [vmem:[#allocation144_spill] sm:$0xff] %v4977_v36  ;;  %v4993_v17 = vadd.f32 %v4641_v5, %v7492_v32  ;;  %v4997_v34 = vadd.f32 %v4647_v53, %v7494_v25  ;;  %v7496_v12 = vld [vmem:[#allocation115_spill] sm:$0xff]  ;;  %v7497_v36 = vld [vmem:[#allocation34_spill] sm:$0xff] }
 0x166   :  { %7487 = vst [vmem:[#allocation170_spill] sm:$0xff] %v4981_v11  ;;  %7489 = vst [vmem:[#allocation148_spill] sm:$0xff] %v4985_v38  ;;  %v5001_v8 = vadd.f32 %v7497_v36, %v7496_v12  ;;  %v7499_v31 = vld [vmem:[#allocation19_spill] sm:$0xff]  ;;  %v7501_v35 = vld [vmem:[#allocation121_spill] sm:$0xff] }
 0x167   :  { %7491 = vst [vmem:[#allocation171_spill] sm:$0xff] %v4989_v23  ;;  %7493 = vst [vmem:[#allocation152_spill] sm:$0xff] %v4993_v17  ;;  %v5005_v22 = vadd.f32 %v4659_v48, %v7499_v31  ;;  %v5009_v60 = vadd.f32 %v4665_v57, %v7501_v35  ;;  %v7503_v1 = vld [vmem:[#allocation125_spill] sm:$0xff]  ;;  %v7507_v25 = vld [vmem:[#allocation20_spill] sm:$0xff] }
 0x168   :  { %7495 = vst [vmem:[#allocation108_spill] sm:$0xff] %v4997_v34  ;;  %7498 = vst [vmem:[#allocation156_spill] sm:$0xff] %v5001_v8  ;;  %v5013_v5 = vadd.f32 %v4671_v52, %v7503_v1  ;;  %v7505_v32 = vld [vmem:[#allocation129_spill] sm:$0xff]  ;;  %v5021_v36 = vadd.f32 %v4683_v16, %v7507_v25  ;;  %v7519_v25 = vld [vmem:[#allocation22_spill] sm:$0xff] }
 0x169   :  { %7500 = vst [vmem:[#allocation172_spill] sm:$0xff] %v5005_v22  ;;  %7502 = vst [vmem:[#allocation159_spill] sm:$0xff] %v5009_v60  ;;  %v5017_v53 = vadd.f32 %v4677_v13, %v7505_v32  ;;  %v7509_v12 = vld [vmem:[#allocation133_spill] sm:$0xff]  ;;  %v289_v11 = vld [vmem:[#allocation9 + $0x10] sm:$0xff] }
 0x16a   :  { %7504 = vst [vmem:[#allocation173_spill] sm:$0xff] %v5013_v5  ;;  %7508 = vst [vmem:[#allocation118_spill] sm:$0xff] %v5021_v36  ;;  %v5025_v48 = vadd.f32 %v4689_v44, %v7509_v12  ;;  %v7511_v31 = vld [vmem:[#allocation141_spill] sm:$0xff]  ;;  %v5045_v44 = vadd.f32 %v4719_v10, %v7519_v25  ;;  %v7521_v12 = vld [vmem:[#allocation176_spill] sm:$0xff] }
 0x16b   :  { %7506 = vst [vmem:[#allocation162_spill] sm:$0xff] %v5017_v53  ;;  %v5029_v57 = vadd.f32 %v4695_v61, %v7511_v31  ;;  %v7513_v35 = vld [vmem:[#allocation21_spill] sm:$0xff]  ;;  %v5049_v61 = vadd.f32 %v4725_v15, %v7521_v12  ;;  %v7523_v31 = vld [vmem:[#allocation23_spill] sm:$0xff]  ;;  %v7533_v25 = vld [vmem:[#allocation184_spill] sm:$0xff] }
 0x16c   :  { %7510 = vst [vmem:[#allocation110_spill] sm:$0xff] %v5025_v48  ;;  %v5033_v52 = vadd.f32 %v4701_v46, %v7513_v35  ;;  %v7515_v1 = vld [vmem:[#allocation145_spill] sm:$0xff]  ;;  %7520 = vst [vmem:[#allocation139_spill] sm:$0xff] %v5045_v44  ;;  %v5053_v46 = vadd.f32 %v4731_v47, %v7523_v31  ;;  %v7525_v35 = vld [vmem:[#allocation180_spill] sm:$0xff] }
 0x16d   :  { %7512 = vst [vmem:[#allocation123_spill] sm:$0xff] %v5029_v57  ;;  %v5037_v13 = vadd.f32 %v4707_v28, %v7515_v1  ;;  %v7517_v32 = vld [vmem:[#allocation153_spill] sm:$0xff]  ;;  %7522 = vst [vmem:[#allocation143_spill] sm:$0xff] %v5049_v61  ;;  %v5057_v28 = vadd.f32 %v4737_v42, %v7525_v35  ;;  %v7537_v61 = vld [vmem:[#allocation36_spill] sm:$0xff] }
 0x16e   :  { %7514 = vst [vmem:[#allocation127_spill] sm:$0xff] %v5033_v52  ;;  %v5041_v16 = vadd.f32 %v4713_v63, %v7517_v32  ;;  %7524 = vst [vmem:[#allocation147_spill] sm:$0xff] %v5053_v46  ;;  %v7527_v1 = vld [vmem:[#allocation181_spill] sm:$0xff]  ;;  %v7530_v32 = vld [vmem:[#allocation24_spill] sm:$0xff] }
 0x16f   :  { %7516 = vst [vmem:[#allocation131_spill] sm:$0xff] %v5037_v13  ;;  %7526 = vst [vmem:[#allocation149_spill] sm:$0xff] %v5057_v28  ;;  %v7528_v13 = vld [vmem:[#allocation60_spill] sm:$0xff]  ;;  %v7534_v44 = vld [vmem:[#allocation65_spill] sm:$0xff] }
 0x170   :  { %7518 = vst [vmem:[#allocation135_spill] sm:$0xff] %v5041_v16  ;;  %v5061_v63 = vadd.f32 %v7528_v13, %v7527_v1  ;;  %v7531_v16 = vld [vmem:[#allocation35_spill] sm:$0xff]  ;;  %v5069_v15 = vadd.f32 %v7534_v44, %v7533_v25  ;;  %v7536_v12 = vld [vmem:[#allocation185_spill] sm:$0xff]  ;;  %v7542_v28 = vld [vmem:[#allocation70_spill] sm:$0xff] }
 0x171   :  { %v5065_v10 = vadd.f32 %v7531_v16, %v7530_v32  ;;  %v5073_v47 = vadd.f32 %v7537_v61, %v7536_v12  ;;  %v7539_v31 = vld [vmem:[#allocation25_spill] sm:$0xff]  ;;  %v7544_v1 = vld [vmem:[#allocation26_spill] sm:$0xff]  ;;  %v7546_v32 = vld [vmem:[#allocation192_spill] sm:$0xff] }
 0x172   :  { %7529 = vst [vmem:[#allocation174_spill] sm:$0xff] %v5061_v63  ;;  %7535 = vst [vmem:[#allocation151_spill] sm:$0xff] %v5069_v15  ;;  %v5077_v42 = vadd.f32 %v4767_v21, %v7539_v31  ;;  %v7541_v35 = vld [vmem:[#allocation189_spill] sm:$0xff]  ;;  %v5085_v16 = vadd.f32 %v4779_v2, %v7544_v1  ;;  %v7549_v25 = vld [vmem:[#allocation27_spill] sm:$0xff] }
 0x173   :  { %7532 = vst [vmem:[#allocation177_spill] sm:$0xff] %v5065_v10  ;;  %7538 = vst [vmem:[#allocation178_spill] sm:$0xff] %v5073_v47  ;;  %v5081_v13 = vadd.f32 %v7542_v28, %v7541_v35  ;;  %v7547_v10 = vld [vmem:[#allocation37_spill] sm:$0xff]  ;;  %v5093_v61 = vadd.f32 %v4791_v37, %v7549_v25  ;;  %v7551_v12 = vld [vmem:[#allocation28_spill] sm:$0xff] }
 0x174   :  { %7540 = vst [vmem:[#allocation179_spill] sm:$0xff] %v5077_v42  ;;  %7545 = vst [vmem:[#allocation182_spill] sm:$0xff] %v5085_v16  ;;  %v5089_v44 = vadd.f32 %v7547_v10, %v7546_v32  ;;  %v7552_v47 = vld [vmem:[#allocation75_spill] sm:$0xff]  ;;  %v7555_v28 = vld [vmem:[#allocation80_spill] sm:$0xff] }
 0x175   :  { %7543 = vst [vmem:[#allocation175_spill] sm:$0xff] %v5081_v13  ;;  %7550 = vst [vmem:[#allocation183_spill] sm:$0xff] %v5093_v61  ;;  %v5097_v21 = vadd.f32 %v7552_v47, %v7551_v12  ;;  %v7557_v2 = vld [vmem:[#allocation85_spill] sm:$0xff]  ;;  %v7559_v10 = vld [vmem:[#allocation87_spill] sm:$0xff] }
 0x176   :  { %7548 = vst [vmem:[#allocation155_spill] sm:$0xff] %v5089_v44  ;;  %v7561_v47 = vld [vmem:[#allocation43_spill] sm:$0xff]  ;;  %v7562_v31 = vld [vmem:[#allocation44_spill] sm:$0xff]  ;;  %v7563_v13 = vld [vmem:[#allocation45_spill] sm:$0xff] }
 0x177   :  { %7553 = vst [vmem:[#allocation158_spill] sm:$0xff] %v5097_v21  ;;  %v7564_v16 = vld [vmem:[#allocation98_spill] sm:$0xff]  ;;  %v287_v45 = vld [vmem:[#allocation9] sm:$0xff]  ;;  %v290_v46 = vld [vmem:[#allocation9 + $0x18] sm:$0xff] }
 0x178   :  { %v7565_v44 = vld [vmem:[#allocation46_spill] sm:$0xff]  ;;  %v291_v8 = vld [vmem:[#allocation9 + $0x20] sm:$0xff]  ;;  %v293_v22 = vld [vmem:[#allocation9 + $0x30] sm:$0xff] }
 0x179   :  { %v288_v32 = vld [vmem:[#allocation9 + $0x8] sm:$0xff]  ;;  %v294_v15 = vld [vmem:[#allocation9 + $0x38] sm:$0xff]  ;;  %v295_v38 = vld [vmem:[#allocation9 + $0x40] sm:$0xff] }
 0x17a   :  { %v292_v35 = vld [vmem:[#allocation9 + $0x28] sm:$0xff]  ;;  %v297_v36 = vld [vmem:[#allocation9 + $0x50] sm:$0xff]  ;;  %v298_v25 = vld [vmem:[#allocation9 + $0x58] sm:$0xff] }
 0x17b   :  { %v296_v37 = vld [vmem:[#allocation9 + $0x48] sm:$0xff]  ;;  %v299_v7 = vld [vmem:[#allocation9 + $0x60] sm:$0xff]  ;;  %v301_v60 = vld [vmem:[#allocation9 + $0x70] sm:$0xff] }
 0x17c   :  { %v300_v1 = vld [vmem:[#allocation9 + $0x68] sm:$0xff]  ;;  %v302_v63 = vld [vmem:[#allocation9 + $0x78] sm:$0xff]  ;;  %v303_v56 = vld [vmem:[#allocation9 + $0x80] sm:$0xff] }
 0x17d   :  { %v304_v12 = vld [vmem:[#allocation9 + $0x88] sm:$0xff]  ;;  %v5170_v48 = vld [vmem:[#allocation9 + $0x90] sm:$0xff]  ;;  %v5172_v42 = vld [vmem:[#allocation9 + $0x98] sm:$0xff]  ;;  %v5288_v0 = vmul.f32 %v5285_v55, %v302_v63 }
 0x17e   :  { %v5178_v5 = vld [vmem:[#allocation9 + $0xa0] sm:$0xff]  ;;  %v5180_v23 = vld [vmem:[#allocation9 + $0xa8] sm:$0xff]  ;;  %v5182_v19 = vld [vmem:[#allocation9 + $0xb0] sm:$0xff] }
 0x17f   :  { %v5184_v6 = vld [vmem:[#allocation9 + $0xb8] sm:$0xff]  ;;  %v5186_v20 = vld [vmem:[#allocation4] sm:$0xff]  ;;  %v5191_v4 = vld [vmem:[#allocation4 + $0x8] sm:$0xff] }
 0x180   :  { %7583 = vst [vmem:[#allocation186_spill] sm:$0xff] %v5186_v20  ;;  %v5189_v17 = vmul.f32 %v5186_v20, %v287_v45  ;;  %7584 = vst [vmem:[#allocation137_spill] sm:$0xff] %v5191_v4  ;;  %v5194_v52 = vmul.f32 %v5191_v4, %v288_v32  ;;  %v5196_v57 = vld [vmem:[#allocation4 + $0x10] sm:$0xff]  ;;  %v5201_v62 = vld [vmem:[#allocation4 + $0x18] sm:$0xff] }
 0x181   :  { %7585 = vst [vmem:[#allocation187_spill] sm:$0xff] %v5196_v57  ;;  %v5199_v34 = vmul.f32 %v5196_v57, %v289_v11  ;;  %7586 = vst [vmem:[#allocation190_spill] sm:$0xff] %v5201_v62  ;;  %v5204_v21 = vmul.f32 %v5201_v62, %v290_v46  ;;  %v5206_v61 = vld [vmem:[#allocation9 + $0xc0] sm:$0xff]  ;;  %v5208_v40 = vld [vmem:[#allocation9 + $0xc8] sm:$0xff] }
 0x182   :  { %v5210_v45 = vld [vmem:[#allocation9 + $0xd0] sm:$0xff]  ;;  %v5212_v20 = vld [vmem:[#allocation9 + $0xd8] sm:$0xff]  ;;  %v5214_v32 = vld [vmem:[#allocation4 + $0x20] sm:$0xff] }
 0x183   :  { %7587 = vst [vmem:[#allocation194_spill] sm:$0xff] %v5214_v32  ;;  %v5217_v4 = vmul.f32 %v5214_v32, %v291_v8  ;;  %v5219_v11 = vld [vmem:[#allocation4 + $0x28] sm:$0xff]  ;;  %v5224_v46 = vld [vmem:[#allocation4 + $0x30] sm:$0xff]  ;;  %v5229_v53 = vld [vmem:[#allocation4 + $0x38] sm:$0xff] }
 0x184   :  { %7588 = vst [vmem:[#allocation193_spill] sm:$0xff] %v5219_v11  ;;  %v5222_v57 = vmul.f32 %v5219_v11, %v292_v35  ;;  %7589 = vst [vmem:[#allocation51_spill] sm:$0xff] %v5224_v46  ;;  %v5227_v62 = vmul.f32 %v5224_v46, %v293_v22  ;;  %v5232_v3 = vmul.f32 %v5229_v53, %v294_v15  ;;  %v5234_v59 = vld [vmem:[#allocation9 + $0xe0] sm:$0xff]  ;;  %v5236_v24 = vld [vmem:[#allocation9 + $0xe8] sm:$0xff] }
 0x185   :  { %7590 = vst [vmem:[#allocation161_spill] sm:$0xff] %v5229_v53  ;;  %v5238_v8 = vld [vmem:[#allocation9 + $0xf0] sm:$0xff]  ;;  %v5240_v32 = vld [vmem:[#allocation9 + $0xf8] sm:$0xff]  ;;  %v5242_v35 = vld [vmem:[#allocation4 + $0x40] sm:$0xff] }
 0x186   :  { %7591 = vst [vmem:[#allocation54_spill] sm:$0xff] %v5242_v35  ;;  %v5245_v11 = vmul.f32 %v5242_v35, %v295_v38  ;;  %v5247_v22 = vld [vmem:[#allocation4 + $0x48] sm:$0xff]  ;;  %v5252_v15 = vld [vmem:[#allocation4 + $0x50] sm:$0xff]  ;;  %v5257_v26 = vld [vmem:[#allocation4 + $0x58] sm:$0xff] }
 0x187   :  { %7592 = vst [vmem:[#allocation188_spill] sm:$0xff] %v5247_v22  ;;  %v5250_v46 = vmul.f32 %v5247_v22, %v296_v37  ;;  %7593 = vst [vmem:[#allocation56_spill] sm:$0xff] %v5252_v15  ;;  %v5255_v53 = vmul.f32 %v5252_v15, %v297_v36  ;;  %v5260_v33 = vmul.f32 %v5257_v26, %v298_v25  ;;  %v5264_v41 = vld [vmem:[#allocation9 + $0x108] sm:$0xff]  ;;  %v5266_v38 = vld [vmem:[#allocation9 + $0x110] sm:$0xff] }
 0x188   :  { %7594 = vst [vmem:[#allocation49_spill] sm:$0xff] %v5257_v26  ;;  %v5268_v35 = vld [vmem:[#allocation9 + $0x118] sm:$0xff]  ;;  %v5270_v37 = vld [vmem:[#allocation4 + $0x60] sm:$0xff]  ;;  %v5275_v36 = vld [vmem:[#allocation4 + $0x68] sm:$0xff] }
 0x189   :  { %7595 = vst [vmem:[#allocation66_spill] sm:$0xff] %v5270_v37  ;;  %v5273_v22 = vmul.f32 %v5270_v37, %v299_v7  ;;  %7596 = vst [vmem:[#allocation191_spill] sm:$0xff] %v5275_v36  ;;  %v5278_v15 = vmul.f32 %v5275_v36, %v300_v1  ;;  %v5280_v25 = vld [vmem:[#allocation4 + $0x70] sm:$0xff]  ;;  %v5290_v14 = vld [vmem:[#allocation9 + $0x128] sm:$0xff]  ;;  %v5299_v1 = vmul.f32 %v5296_v18, %v303_v56 }
 0x18a   :  { %7597 = vst [vmem:[#allocation71_spill] sm:$0xff] %v5280_v25  ;;  %v5283_v26 = vmul.f32 %v5280_v25, %v301_v60  ;;  %v5292_v7 = vld [vmem:[#allocation9 + $0x130] sm:$0xff]  ;;  %v5294_v37 = vld [vmem:[#allocation9 + $0x138] sm:$0xff]  ;;  %v5301_v36 = vld [vmem:[#allocation4 + $0x88] sm:$0xff] }
 0x18b   :  { %7600 = vst [vmem:[#allocation53_spill] sm:$0xff] %v5301_v36  ;;  %v5304_v60 = vmul.f32 %v5301_v36, %v304_v12  ;;  %v5306_v25 = vld [vmem:[#allocation4 + $0x90] sm:$0xff]  ;;  %v5312_v55 = vld [vmem:[#allocation4 + $0x98] sm:$0xff]  ;;  %v328_v56 = vld [vmem:[#allocation9 + $0x148] sm:$0xff] }
 0x18c   :  { %7601 = vst [vmem:[#allocation81_spill] sm:$0xff] %v5306_v25  ;;  %v5310_v63 = vmul.f32 %v5306_v25, %v5170_v48  ;;  %7603 = vst [vmem:[#allocation86_spill] sm:$0xff] %v5312_v55  ;;  %v5316_v51 = vmul.f32 %v5312_v55, %v5172_v42  ;;  %v5318_v18 = vld [vmem:[#allocation9 + $0x150] sm:$0xff]  ;;  %v5322_v12 = vld [vmem:[#allocation4 + $0xa0] sm:$0xff] }
 0x18d   :  { %7605 = vst [vmem:[#allocation59_spill] sm:$0xff] %v5322_v12  ;;  %v5326_v36 = vmul.f32 %v5322_v12, %v5178_v5  ;;  %v5328_v48 = vld [vmem:[#allocation4 + $0xa8] sm:$0xff]  ;;  %v5334_v42 = vld [vmem:[#allocation4 + $0xb0] sm:$0xff]  ;;  %v5340_v43 = vld [vmem:[#allocation4 + $0xb8] sm:$0xff] }
 0x18e   :  { %7602 = vst [vmem:[#allocation195_spill] sm:$0xff] %v5310_v63  ;;  %7604 = vst [vmem:[#allocation63_spill] sm:$0xff] %v5316_v51  ;;  %v5332_v25 = vmul.f32 %v5328_v48, %v5180_v23  ;;  %v5338_v55 = vmul.f32 %v5334_v42, %v5182_v19  ;;  %v5344_v51 = vmul.f32 %v5340_v43, %v5184_v6  ;;  %v331_v5 = vld [vmem:[#allocation9 + $0x160] sm:$0xff]  ;;  %v332_v12 = vld [vmem:[#allocation9 + $0x168] sm:$0xff] }
 0x18f   :  { %7606 = vst [vmem:[#allocation196_spill] sm:$0xff] %v5326_v36  ;;  %7607 = vst [vmem:[#allocation61_spill] sm:$0xff] %v5328_v48  ;;  %v333_v36 = vld [vmem:[#allocation9 + $0x170] sm:$0xff]  ;;  %v5346_v58 = vld [vmem:[#allocation9 + $0x178] sm:$0xff] }
 0x190   :  { %7608 = vst [vmem:[#allocation68_spill] sm:$0xff] %v5334_v42  ;;  %7609 = vst [vmem:[#allocation64_spill] sm:$0xff] %v5338_v55  ;;  %v5348_v63 = vld [vmem:[#allocation4 + $0xc0] sm:$0xff]  ;;  %v5354_v48 = vld [vmem:[#allocation4 + $0xc8] sm:$0xff] }
 0x191   :  { %7610 = vst [vmem:[#allocation29_spill] sm:$0xff] %v5340_v43  ;;  %7611 = vst [vmem:[#allocation69_spill] sm:$0xff] %v5344_v51  ;;  %v5352_v23 = vmul.f32 %v5348_v63, %v5206_v61  ;;  %v5358_v19 = vmul.f32 %v5354_v48, %v5208_v40  ;;  %v5360_v42 = vld [vmem:[#allocation4 + $0xd0] sm:$0xff]  ;;  %v5366_v43 = vld [vmem:[#allocation4 + $0xd8] sm:$0xff] }
 0x192   :  { %7612 = vst [vmem:[#allocation73_spill] sm:$0xff] %v5348_v63  ;;  %7614 = vst [vmem:[#allocation30_spill] sm:$0xff] %v5354_v48  ;;  %v5364_v6 = vmul.f32 %v5360_v42, %v5210_v45  ;;  %v5370_v51 = vmul.f32 %v5366_v43, %v5212_v20  ;;  %v335_v61 = vld [vmem:[#allocation9 + $0x180] sm:$0xff]  ;;  %v336_v63 = vld [vmem:[#allocation9 + $0x188] sm:$0xff] }
 0x193   :  { %7613 = vst [vmem:[#allocation74_spill] sm:$0xff] %v5352_v23  ;;  %7615 = vst [vmem:[#allocation79_spill] sm:$0xff] %v5360_v42  ;;  %v337_v23 = vld [vmem:[#allocation9 + $0x190] sm:$0xff]  ;;  %v5372_v55 = vld [vmem:[#allocation4 + $0xe0] sm:$0xff] }
 0x194   :  { %7616 = vst [vmem:[#allocation84_spill] sm:$0xff] %v5364_v6  ;;  %7617 = vst [vmem:[#allocation88_spill] sm:$0xff] %v5366_v43  ;;  %v5376_v40 = vmul.f32 %v5372_v55, %v5234_v59  ;;  %v5378_v48 = vld [vmem:[#allocation4 + $0xe8] sm:$0xff]  ;;  %v5384_v42 = vld [vmem:[#allocation4 + $0xf0] sm:$0xff] }
 0x195   :  { %7618 = vst [vmem:[#allocation78_spill] sm:$0xff] %v5370_v51  ;;  %7619 = vst [vmem:[#allocation90_spill] sm:$0xff] %v5372_v55  ;;  %v5382_v45 = vmul.f32 %v5378_v48, %v5236_v24  ;;  %v5388_v20 = vmul.f32 %v5384_v42, %v5238_v8  ;;  %v5390_v43 = vld [vmem:[#allocation4 + $0xf8] sm:$0xff]  ;;  %v339_v55 = vld [vmem:[#allocation9 + $0x1a0] sm:$0xff] }
 0x196   :  { %7620 = vst [vmem:[#allocation92_spill] sm:$0xff] %v5376_v40  ;;  %7621 = vst [vmem:[#allocation31_spill] sm:$0xff] %v5378_v48  ;;  %v5394_v51 = vmul.f32 %v5390_v43, %v5240_v32  ;;  %v338_v59 = vld [vmem:[#allocation9 + $0x198] sm:$0xff]  ;;  %v340_v40 = vld [vmem:[#allocation9 + $0x1a8] sm:$0xff] }
 0x197   :  { %7622 = vst [vmem:[#allocation94_spill] sm:$0xff] %v5384_v42  ;;  %7623 = vst [vmem:[#allocation97_spill] sm:$0xff] %v5388_v20  ;;  %v5396_v6 = vld [vmem:[#allocation4 + $0x100] sm:$0xff]  ;;  %v5402_v48 = vld [vmem:[#allocation4 + $0x108] sm:$0xff] }
 0x198   :  { %7624 = vst [vmem:[#allocation83_spill] sm:$0xff] %v5390_v43  ;;  %7625 = vst [vmem:[#allocation100_spill] sm:$0xff] %v5394_v51  ;;  %v5400_v24 = vmul.f32 %v5396_v6, %v5262_v49  ;;  %v5406_v8 = vmul.f32 %v5402_v48, %v5264_v41  ;;  %v5408_v42 = vld [vmem:[#allocation4 + $0x110] sm:$0xff]  ;;  %v5414_v43 = vld [vmem:[#allocation4 + $0x118] sm:$0xff] }
 0x199   :  { %7626 = vst [vmem:[#allocation103_spill] sm:$0xff] %v5396_v6  ;;  %7628 = vst [vmem:[#allocation106_spill] sm:$0xff] %v5402_v48  ;;  %v5412_v32 = vmul.f32 %v5408_v42, %v5266_v38  ;;  %v5418_v51 = vmul.f32 %v5414_v43, %v5268_v35  ;;  %v341_v49 = vld [vmem:[#allocation9 + $0x1b0] sm:$0xff]  ;;  %v342_v6 = vld [vmem:[#allocation9 + $0x1b8] sm:$0xff] }
 0x19a   :  { %7627 = vst [vmem:[#allocation32_spill] sm:$0xff] %v5400_v24  ;;  %7629 = vst [vmem:[#allocation109_spill] sm:$0xff] %v5408_v42  ;;  %v343_v24 = vld [vmem:[#allocation9 + $0x1c0] sm:$0xff]  ;;  %v5425_v48 = vld [vmem:[#allocation4 + $0x128] sm:$0xff] }
 0x19b   :  { %7630 = vst [vmem:[#allocation55_spill] sm:$0xff] %v5412_v32  ;;  %7631 = vst [vmem:[#allocation113_spill] sm:$0xff] %v5414_v43  ;;  %v5420_v20 = vld [vmem:[#allocation4 + $0x120] sm:$0xff]  ;;  %v5429_v38 = vmul.f32 %v5425_v48, %v5290_v14  ;;  %v5431_v42 = vld [vmem:[#allocation4 + $0x130] sm:$0xff] }
 0x19c   :  { %7632 = vst [vmem:[#allocation116_spill] sm:$0xff] %v5418_v51  ;;  %7633 = vst [vmem:[#allocation33_spill] sm:$0xff] %v5420_v20  ;;  %v5423_v41 = vmul.f32 %v5420_v20, %v323_v27  ;;  %v5435_v35 = vmul.f32 %v5431_v42, %v5292_v7  ;;  %v5437_v43 = vld [vmem:[#allocation4 + $0x138] sm:$0xff]  ;;  %v344_v27 = vld [vmem:[#allocation9 + $0x1c8] sm:$0xff] }
 0x19d   :  { %7635 = vst [vmem:[#allocation122_spill] sm:$0xff] %v5425_v48  ;;  %7636 = vst [vmem:[#allocation58_spill] sm:$0xff] %v5429_v38  ;;  %v5441_v51 = vmul.f32 %v5437_v43, %v5294_v37  ;;  %v345_v20 = vld [vmem:[#allocation9 + $0x1d0] sm:$0xff]  ;;  %v5443_v32 = vld [vmem:[#allocation4 + $0x140] sm:$0xff] }
 0x19e   :  { %7634 = vst [vmem:[#allocation119_spill] sm:$0xff] %v5423_v41  ;;  %7637 = vst [vmem:[#allocation126_spill] sm:$0xff] %v5431_v42  ;;  %v346_v41 = vld [vmem:[#allocation9 + $0x1d8] sm:$0xff]  ;;  %v5446_v14 = vmul.f32 %v5443_v32, %v327_v54  ;;  %v5448_v48 = vld [vmem:[#allocation4 + $0x148] sm:$0xff] }
 0x19f   :  { %7638 = vst [vmem:[#allocation130_spill] sm:$0xff] %v5437_v43  ;;  %7639 = vst [vmem:[#allocation134_spill] sm:$0xff] %v5441_v51  ;;  %v5451_v38 = vmul.f32 %v5448_v48, %v328_v56  ;;  %v5453_v7 = vld [vmem:[#allocation4 + $0x150] sm:$0xff]  ;;  %v5459_v37 = vld [vmem:[#allocation4 + $0x158] sm:$0xff] }
 0x1a0   :  { %7640 = vst [vmem:[#allocation138_spill] sm:$0xff] %v5443_v32  ;;  %7641 = vst [vmem:[#allocation142_spill] sm:$0xff] %v5446_v14  ;;  %v5457_v42 = vmul.f32 %v5453_v7, %v5318_v18  ;;  %v5463_v43 = vmul.f32 %v5459_v37, %v5320_v50  ;;  %v347_v51 = vld [vmem:[#allocation9 + $0x1e0] sm:$0xff]  ;;  %v348_v54 = vld [vmem:[#allocation9 + $0x1e8] sm:$0xff] }
 0x1a1   :  { %7642 = vst [vmem:[#allocation146_spill] sm:$0xff] %v5448_v48  ;;  %7643 = vst [vmem:[#allocation150_spill] sm:$0xff] %v5451_v38  ;;  %v349_v32 = vld [vmem:[#allocation9 + $0x1f0] sm:$0xff]  ;;  %v5465_v14 = vld [vmem:[#allocation4 + $0x160] sm:$0xff] }
 0x1a2   :  { %7644 = vst [vmem:[#allocation154_spill] sm:$0xff] %v5453_v7  ;;  %7645 = vst [vmem:[#allocation157_spill] sm:$0xff] %v5457_v42  ;;  %v5468_v56 = vmul.f32 %v5465_v14, %v331_v5  ;;  %v5470_v48 = vld [vmem:[#allocation4 + $0x168] sm:$0xff]  ;;  %v5475_v18 = vld [vmem:[#allocation4 + $0x170] sm:$0xff] }
 0x1a3   :  { %7646 = vst [vmem:[#allocation160_spill] sm:$0xff] %v5459_v37  ;;  %7647 = vst [vmem:[#allocation163_spill] sm:$0xff] %v5463_v43  ;;  %v5473_v38 = vmul.f32 %v5470_v48, %v332_v12  ;;  %v5478_v7 = vmul.f32 %v5475_v18, %v333_v36  ;;  %v5480_v50 = vld [vmem:[#allocation4 + $0x178] sm:$0xff]  ;;  %v351_v42 = vld [vmem:[#allocation9 + $0x200] sm:$0xff] }
 0x1a4   :  { %7648 = vst [vmem:[#allocation164_spill] sm:$0xff] %v5465_v14  ;;  %7649 = vst [vmem:[#allocation165_spill] sm:$0xff] %v5468_v56  ;;  %v5484_v37 = vmul.f32 %v5480_v50, %v5346_v58  ;;  %v350_v43 = vld [vmem:[#allocation9 + $0x1f8] sm:$0xff]  ;;  %v352_v5 = vld [vmem:[#allocation9 + $0x208] sm:$0xff] }
 0x1a5   :  { %7650 = vst [vmem:[#allocation166_spill] sm:$0xff] %v5470_v48  ;;  %7651 = vst [vmem:[#allocation168_spill] sm:$0xff] %v5473_v38  ;;  %v5486_v14 = vld [vmem:[#allocation4 + $0x180] sm:$0xff]  ;;  %v5491_v12 = vld [vmem:[#allocation4 + $0x188] sm:$0xff] }
 0x1a6   :  { %7652 = vst [vmem:[#allocation96_spill] sm:$0xff] %v5475_v18  ;;  %7653 = vst [vmem:[#allocation99_spill] sm:$0xff] %v5478_v7  ;;  %v5489_v56 = vmul.f32 %v5486_v14, %v335_v61  ;;  %v5494_v48 = vmul.f32 %v5491_v12, %v336_v63  ;;  %v5496_v36 = vld [vmem:[#allocation4 + $0x190] sm:$0xff]  ;;  %v5501_v58 = vld [vmem:[#allocation4 + $0x198] sm:$0xff] }
 0x1a7   :  { %7654 = vst [vmem:[#allocation17_spill] sm:$0xff] %v5480_v50  ;;  %7655 = vst [vmem:[#allocation102_spill] sm:$0xff] %v5484_v37  ;;  %v5499_v18 = vmul.f32 %v5496_v36, %v337_v23  ;;  %v5504_v50 = vmul.f32 %v5501_v58, %v338_v59  ;;  %v353_v37 = vld [vmem:[#allocation9 + $0x210] sm:$0xff]  ;;  %v354_v7 = vld [vmem:[#allocation9 + $0x218] sm:$0xff] }
 0x1a8   :  { %7656 = vst [vmem:[#allocation105_spill] sm:$0xff] %v5486_v14  ;;  %7657 = vst [vmem:[#allocation18_spill] sm:$0xff] %v5491_v12  ;;  %v355_v38 = vld [vmem:[#allocation9 + $0x220] sm:$0xff]  ;;  %v5511_v63 = vld [vmem:[#allocation4 + $0x1a8] sm:$0xff] }
 0x1a9   :  { %7658 = vst [vmem:[#allocation112_spill] sm:$0xff] %v5494_v48  ;;  %7659 = vst [vmem:[#allocation115_spill] sm:$0xff] %v5496_v36  ;;  %v5506_v61 = vld [vmem:[#allocation4 + $0x1a0] sm:$0xff]  ;;  %v5514_v12 = vmul.f32 %v5511_v63, %v340_v40  ;;  %v5516_v23 = vld [vmem:[#allocation4 + $0x1b0] sm:$0xff] }
 0x1aa   :  { %7660 = vst [vmem:[#allocation34_spill] sm:$0xff] %v5499_v18  ;;  %7661 = vst [vmem:[#allocation19_spill] sm:$0xff] %v5501_v58  ;;  %v5509_v14 = vmul.f32 %v5506_v61, %v339_v55  ;;  %v5519_v36 = vmul.f32 %v5516_v23, %v341_v49  ;;  %v5521_v59 = vld [vmem:[#allocation4 + $0x1b8] sm:$0xff]  ;;  %v357_v18 = vld [vmem:[#allocation9 + $0x230] sm:$0xff] }
 0x1ab   :  { %7662 = vst [vmem:[#allocation121_spill] sm:$0xff] %v5504_v50  ;;  %7663 = vst [vmem:[#allocation125_spill] sm:$0xff] %v5506_v61  ;;  %v5524_v58 = vmul.f32 %v5521_v59, %v342_v6  ;;  %v356_v50 = vld [vmem:[#allocation9 + $0x228] sm:$0xff]  ;;  %v358_v48 = vld [vmem:[#allocation9 + $0x238] sm:$0xff] }
 0x1ac   :  { %7664 = vst [vmem:[#allocation129_spill] sm:$0xff] %v5511_v63  ;;  %7665 = vst [vmem:[#allocation20_spill] sm:$0xff] %v5514_v12  ;;  %v5526_v55 = vld [vmem:[#allocation4 + $0x1c0] sm:$0xff]  ;;  %v5531_v40 = vld [vmem:[#allocation4 + $0x1c8] sm:$0xff] }
 0x1ad   :  { %7666 = vst [vmem:[#allocation133_spill] sm:$0xff] %v5516_v23  ;;  %7667 = vst [vmem:[#allocation141_spill] sm:$0xff] %v5519_v36  ;;  %v5529_v61 = vmul.f32 %v5526_v55, %v343_v24  ;;  %v5534_v63 = vmul.f32 %v5531_v40, %v344_v27  ;;  %v5536_v49 = vld [vmem:[#allocation4 + $0x1d0] sm:$0xff]  ;;  %v5541_v6 = vld [vmem:[#allocation4 + $0x1d8] sm:$0xff] }
 0x1ae   :  { %7668 = vst [vmem:[#allocation21_spill] sm:$0xff] %v5521_v59  ;;  %7669 = vst [vmem:[#allocation145_spill] sm:$0xff] %v5524_v58  ;;  %v5539_v23 = vmul.f32 %v5536_v49, %v345_v20  ;;  %v5544_v59 = vmul.f32 %v5541_v6, %v346_v41  ;;  %v359_v58 = vld [vmem:[#allocation9 + $0x240] sm:$0xff]  ;;  %v360_v36 = vld [vmem:[#allocation9 + $0x248] sm:$0xff] }
 0x1af   :  { %7670 = vst [vmem:[#allocation153_spill] sm:$0xff] %v5526_v55  ;;  %7671 = vst [vmem:[#allocation22_spill] sm:$0xff] %v5531_v40  ;;  %v361_v12 = vld [vmem:[#allocation9 + $0x250] sm:$0xff]  ;;  %v5546_v24 = vld [vmem:[#allocation4 + $0x1e0] sm:$0xff] }
 0x1b0   :  { %7672 = vst [vmem:[#allocation176_spill] sm:$0xff] %v5536_v49  ;;  %7673 = vst [vmem:[#allocation23_spill] sm:$0xff] %v5541_v6  ;;  %v5549_v55 = vmul.f32 %v5546_v24, %v347_v51  ;;  %v5551_v27 = vld [vmem:[#allocation4 + $0x1e8] sm:$0xff]  ;;  %v5556_v20 = vld [vmem:[#allocation4 + $0x1f0] sm:$0xff] }
 0x1b1   :  { %7674 = vst [vmem:[#allocation180_spill] sm:$0xff] %v5544_v59  ;;  %7675 = vst [vmem:[#allocation181_spill] sm:$0xff] %v5546_v24  ;;  %v5554_v40 = vmul.f32 %v5551_v27, %v348_v54  ;;  %v5559_v49 = vmul.f32 %v5556_v20, %v349_v32  ;;  %v5561_v41 = vld [vmem:[#allocation4 + $0x1f8] sm:$0xff]  ;;  %v5566_v59 = vld [vmem:[#allocation4 + $0x200] sm:$0xff] }
 0x1b2   :  { %7676 = vst [vmem:[#allocation60_spill] sm:$0xff] %v5551_v27  ;;  %7677 = vst [vmem:[#allocation24_spill] sm:$0xff] %v5556_v20  ;;  %v5564_v6 = vmul.f32 %v5561_v41, %v350_v43  ;;  %v5569_v51 = vmul.f32 %v5566_v59, %v351_v42  ;;  %v5571_v24 = vld [vmem:[#allocation4 + $0x208] sm:$0xff]  ;;  %v5576_v27 = vld [vmem:[#allocation4 + $0x210] sm:$0xff] }
 0x1b3   :  { %7678 = vst [vmem:[#allocation35_spill] sm:$0xff] %v5561_v41  ;;  %7679 = vst [vmem:[#allocation184_spill] sm:$0xff] %v5566_v59  ;;  %v5574_v54 = vmul.f32 %v5571_v24, %v352_v5  ;;  %v5579_v32 = vmul.f32 %v5576_v27, %v353_v37  ;;  %v5581_v20 = vld [vmem:[#allocation4 + $0x218] sm:$0xff]  ;;  %v5586_v41 = vld [vmem:[#allocation4 + $0x220] sm:$0xff] }
 0x1b4   :  { %7680 = vst [vmem:[#allocation65_spill] sm:$0xff] %v5571_v24  ;;  %7681 = vst [vmem:[#allocation185_spill] sm:$0xff] %v5576_v27  ;;  %v5584_v43 = vmul.f32 %v5581_v20, %v354_v7  ;;  %v5589_v42 = vmul.f32 %v5586_v41, %v355_v38  ;;  %v5591_v59 = vld [vmem:[#allocation4 + $0x228] sm:$0xff]  ;;  %v5596_v24 = vld [vmem:[#allocation4 + $0x230] sm:$0xff] }
 0x1b5   :  { %7682 = vst [vmem:[#allocation36_spill] sm:$0xff] %v5581_v20  ;;  %7683 = vst [vmem:[#allocation25_spill] sm:$0xff] %v5586_v41  ;;  %v5594_v5 = vmul.f32 %v5591_v59, %v356_v50  ;;  %v5599_v37 = vmul.f32 %v5596_v24, %v357_v18  ;;  %v5601_v27 = vld [vmem:[#allocation4 + $0x238] sm:$0xff]  ;;  %v5606_v20 = vld [vmem:[#allocation4 + $0x240] sm:$0xff] }
 0x1b6   :  { %7684 = vst [vmem:[#allocation189_spill] sm:$0xff] %v5591_v59  ;;  %7685 = vst [vmem:[#allocation70_spill] sm:$0xff] %v5596_v24  ;;  %v5604_v7 = vmul.f32 %v5601_v27, %v358_v48  ;;  %v5609_v38 = vmul.f32 %v5606_v20, %v359_v58  ;;  %v5611_v41 = vld [vmem:[#allocation4 + $0x248] sm:$0xff]  ;;  %v5616_v59 = vld [vmem:[#allocation4 + $0x250] sm:$0xff] }
 0x1b7   :  { %7686 = vst [vmem:[#allocation26_spill] sm:$0xff] %v5599_v37  ;;  %7687 = vst [vmem:[#allocation192_spill] sm:$0xff] %v5601_v27  ;;  %v5614_v50 = vmul.f32 %v5611_v41, %v360_v36  ;;  %v5619_v18 = vmul.f32 %v5616_v59, %v361_v12  ;;  %v7692_v24 = vld [vmem:[#allocation38_spill] sm:$0xff]  ;;  %v7694_v27 = vsub.f32 0.0, %v7555_v28  ;;  %v7700_v28 = vsub.f32 0.0, %v7559_v10 }
 0x1b8   :  { %7688 = vst [vmem:[#allocation37_spill] sm:$0xff] %v5604_v7  ;;  %7689 = vst [vmem:[#allocation27_spill] sm:$0xff] %v5606_v20  ;;  %v7693_v37 = vsub.f32 0.0, %v7692_v24  ;;  %v7695_v20 = vld [vmem:[#allocation39_spill] sm:$0xff]  ;;  %v7706_v10 = vsub.f32 0.0, %v7561_v47  ;;  %v7711_v47 = vsub.f32 0.0, %v7563_v13 }
 0x1b9   :  { %7690 = vst [vmem:[#allocation28_spill] sm:$0xff] %v5611_v41  ;;  %7691 = vst [vmem:[#allocation75_spill] sm:$0xff] %v5616_v59  ;;  %v5629_v58 = vsub.f32 %v7694_v27, %v5194_v52  ;;  %v7696_v7 = vsub.f32 0.0, %v7695_v20  ;;  %v7697_v41 = vsub.f32 0.0, %v7557_v2  ;;  %v7698_v59 = vld [vmem:[#allocation40_spill] sm:$0xff]  ;;  %v5649_v52 = vsub.f32 %v7700_v28, %v5222_v57  ;;  %v7701_v27 = vld [vmem:[#allocation41_spill] sm:$0xff] }
 0x1ba   :  { %v5624_v48 = vsub.f32 %v7693_v37, %v5189_v17  ;;  %v7699_v24 = vsub.f32 0.0, %v7698_v59  ;;  %v7702_v20 = vsub.f32 0.0, %v7701_v27  ;;  %v7703_v2 = vsub.f32 0.0, %v4829_v30  ;;  %v7707_v37 = vld [vmem:[#allocation93_spill] sm:$0xff]  ;;  %v7716_v27 = vld [vmem:[#allocation195_spill] sm:$0xff] }
 0x1bb   :  { %v5634_v36 = vsub.f32 %v7696_v7, %v5199_v34  ;;  %v5639_v12 = vsub.f32 %v7697_v41, %v5204_v21  ;;  %v7704_v41 = vld [vmem:[#allocation42_spill] sm:$0xff]  ;;  %v5669_v57 = vsub.f32 %v7706_v10, %v5250_v46  ;;  %v7708_v7 = vsub.f32 0.0, %v7707_v37  ;;  %v7723_v10 = vld [vmem:[#allocation47_spill] sm:$0xff] }
 0x1bc   :  { %v5644_v17 = vsub.f32 %v7699_v24, %v5217_v4  ;;  %v5654_v34 = vsub.f32 %v7702_v20, %v5227_v62  ;;  %v5659_v21 = vsub.f32 %v7703_v2, %v5232_v3  ;;  %v7705_v59 = vsub.f32 0.0, %v7704_v41  ;;  %v7717_v20 = vld [vmem:[#allocation89_spill] sm:$0xff]  ;;  %v7719_v2 = vld [vmem:[#allocation63_spill] sm:$0xff]  ;;  %v7720_v41 = vld [vmem:[#allocation104_spill] sm:$0xff] }
 0x1bd   :  { %v5674_v62 = vsub.f32 %v7708_v7, %v5255_v53  ;;  %v7709_v30 = vsub.f32 0.0, %v7562_v31  ;;  %v7710_v24 = vsub.f32 0.0, %v4849_v29  ;;  %v5689_v46 = vsub.f32 %v7711_v47, %v5278_v15  ;;  %v7725_v37 = vld [vmem:[#allocation91_spill] sm:$0xff]  ;;  %v7727_v7 = vld [vmem:[#allocation64_spill] sm:$0xff] }
 0x1be   :  { %v5664_v4 = vsub.f32 %v7705_v59, %v5245_v11  ;;  %v7712_v28 = vsub.f32 0.0, %v4857_v39  ;;  %v7713_v31 = vsub.f32 0.0, %v7564_v16  ;;  %v7714_v29 = vsub.f32 0.0, %v4865_v9  ;;  %v7722_v59 = vld [vmem:[#allocation196_spill] sm:$0xff] }
 0x1bf   :  { %v5679_v3 = vsub.f32 %v7709_v30, %v5260_v33  ;;  %v5684_v11 = vsub.f32 %v7710_v24, %v5273_v22  ;;  %v7715_v13 = vsub.f32 0.0, %v7565_v44  ;;  %v7718_v39 = vsub.f32 0.0, %v7717_v20  ;;  %v7728_v30 = vld [vmem:[#allocation111_spill] sm:$0xff] }
 0x1c0   :  { %v5694_v53 = vsub.f32 %v7712_v28, %v5283_v26  ;;  %v5699_v33 = vsub.f32 %v7713_v31, %v5288_v0  ;;  %v5704_v22 = vsub.f32 %v7714_v29, %v5299_v1  ;;  %v7721_v16 = vsub.f32 0.0, %v7720_v41  ;;  %v7730_v28 = vld [vmem:[#allocation69_spill] sm:$0xff]  ;;  %v7731_v31 = vld [vmem:[#allocation48_spill] sm:$0xff]  ;;  %v7734_v20 = vld [vmem:[#allocation95_spill] sm:$0xff] }
 0x1c1   :  { %v5709_v15 = vsub.f32 %v7715_v13, %v5304_v60  ;;  %v5714_v26 = vsub.f32 %v7718_v39, %v7716_v27  ;;  %v7724_v9 = vsub.f32 0.0, %v7723_v10  ;;  %v7726_v44 = vsub.f32 0.0, %v7725_v37  ;;  %v7733_v27 = vld [vmem:[#allocation74_spill] sm:$0xff]  ;;  %v7736_v41 = vld [vmem:[#allocation117_spill] sm:$0xff]  ;;  %v7739_v10 = vld [vmem:[#allocation52_spill] sm:$0xff] }
 0x1c2   :  { %v5719_v0 = vsub.f32 %v7721_v16, %v7719_v2  ;;  %v7729_v24 = vsub.f32 0.0, %v7728_v30  ;;  %v7732_v29 = vsub.f32 0.0, %v7731_v31  ;;  %v7735_v39 = vsub.f32 0.0, %v7734_v20  ;;  %v7747_v31 = vld [vmem:[#allocation124_spill] sm:$0xff]  ;;  %v7749_v20 = vld [vmem:[#allocation57_spill] sm:$0xff] }
 0x1c3   :  { %v5724_v1 = vsub.f32 %v7724_v9, %v7722_v59  ;;  %v5729_v60 = vsub.f32 %v7726_v44, %v5332_v25  ;;  %v7737_v16 = vsub.f32 0.0, %v7736_v41  ;;  %v7738_v59 = vld [vmem:[#allocation84_spill] sm:$0xff]  ;;  %v7740_v9 = vsub.f32 0.0, %v7739_v10  ;;  %v7742_v44 = vld [vmem:[#allocation78_spill] sm:$0xff]  ;;  %v7752_v41 = vld [vmem:[#allocation97_spill] sm:$0xff] }
 0x1c4   :  { %v5734_v47 = vsub.f32 %v7729_v24, %v7727_v7  ;;  %v5739_v13 = vsub.f32 %v7732_v29, %v7730_v28  ;;  %v5744_v2 = vsub.f32 %v7735_v39, %v7733_v27  ;;  %v7743_v7 = vld [vmem:[#allocation101_spill] sm:$0xff]  ;;  %v7746_v28 = vld [vmem:[#allocation92_spill] sm:$0xff]  ;;  %v7748_v29 = vsub.f32 0.0, %v7747_v31 }
 0x1c5   :  { %v5749_v25 = vsub.f32 %v7737_v16, %v5358_v19  ;;  %v5754_v37 = vsub.f32 %v7740_v9, %v7738_v59  ;;  %v7744_v30 = vsub.f32 0.0, %v7743_v7  ;;  %v7750_v39 = vsub.f32 0.0, %v7749_v20  ;;  %v7753_v16 = vld [vmem:[#allocation107_spill] sm:$0xff]  ;;  %v7756_v9 = vld [vmem:[#allocation100_spill] sm:$0xff] }
 0x1c6   :  { %v5764_v27 = vsub.f32 %v7748_v29, %v7746_v28  ;;  %v7754_v10 = vsub.f32 0.0, %v7753_v16  ;;  %v7764_v29 = vld [vmem:[#allocation114_spill] sm:$0xff] }
 0x1c7   :  { %7741 = vst [vmem:[#allocation80_spill] sm:$0xff] %v5754_v37  ;;  %v5759_v24 = vsub.f32 %v7744_v30, %v7742_v44  ;;  %v5769_v19 = vsub.f32 %v7750_v39, %v5382_v45  ;;  %v7757_v37 = vld [vmem:[#allocation132_spill] sm:$0xff]  ;;  %v7765_v20 = vsub.f32 0.0, %v7764_v29  ;;  %v7766_v39 = vld [vmem:[#allocation55_spill] sm:$0xff] }
 0x1c8   :  { %v5774_v59 = vsub.f32 %v7754_v10, %v7752_v41  ;;  %v7758_v7 = vsub.f32 0.0, %v7757_v37  ;;  %v7760_v30 = vld [vmem:[#allocation32_spill] sm:$0xff] }
 0x1c9   :  { %7745 = vst [vmem:[#allocation85_spill] sm:$0xff] %v5759_v24  ;;  %7751 = vst [vmem:[#allocation87_spill] sm:$0xff] %v5769_v19  ;;  %v7761_v24 = vld [vmem:[#allocation62_spill] sm:$0xff]  ;;  %v5789_v45 = vsub.f32 %v7765_v20, %v5406_v8  ;;  %v7767_v19 = vld [vmem:[#allocation67_spill] sm:$0xff] }
 0x1ca   :  { %7755 = vst [vmem:[#allocation43_spill] sm:$0xff] %v5774_v59  ;;  %v5779_v44 = vsub.f32 %v7758_v7, %v7756_v9  ;;  %v7762_v31 = vsub.f32 0.0, %v7761_v24  ;;  %v7768_v16 = vsub.f32 0.0, %v7767_v19  ;;  %v7770_v10 = vld [vmem:[#allocation116_spill] sm:$0xff]  ;;  %v7774_v7 = vld [vmem:[#allocation119_spill] sm:$0xff]  ;;  %v7782_v20 = vld [vmem:[#allocation77_spill] sm:$0xff] }
 0x1cb   :  { %v7771_v59 = vld [vmem:[#allocation120_spill] sm:$0xff]  ;;  %v7783_v19 = vsub.f32 0.0, %v7782_v20 }
 0x1cc   :  { %7759 = vst [vmem:[#allocation44_spill] sm:$0xff] %v5779_v44  ;;  %v5784_v28 = vsub.f32 %v7762_v31, %v7760_v30  ;;  %v5794_v41 = vsub.f32 %v7768_v16, %v7766_v39  ;;  %v7772_v37 = vsub.f32 0.0, %v7771_v59  ;;  %v7775_v44 = vld [vmem:[#allocation72_spill] sm:$0xff]  ;;  %v7778_v31 = vld [vmem:[#allocation58_spill] sm:$0xff] }
 0x1cd   :  { %v7776_v24 = vsub.f32 0.0, %v7775_v44  ;;  %v5814_v39 = vsub.f32 %v7783_v19, %v5435_v35  ;;  %v7785_v16 = vld [vmem:[#allocation134_spill] sm:$0xff]  ;;  %v7801_v19 = vld [vmem:[#allocation163_spill] sm:$0xff] }
 0x1ce   :  { %7763 = vst [vmem:[#allocation45_spill] sm:$0xff] %v5784_v28  ;;  %7769 = vst [vmem:[#allocation98_spill] sm:$0xff] %v5794_v41  ;;  %v5799_v9 = vsub.f32 %v7772_v37, %v7770_v10  ;;  %v7779_v28 = vld [vmem:[#allocation128_spill] sm:$0xff]  ;;  %v7789_v37 = vld [vmem:[#allocation142_spill] sm:$0xff] }
 0x1cf   :  { %v5804_v30 = vsub.f32 %v7776_v24, %v7774_v7  ;;  %v7780_v29 = vsub.f32 0.0, %v7779_v28  ;;  %7784 = vst [vmem:[#allocation40_spill] sm:$0xff] %v5814_v39  ;;  %v7786_v41 = vld [vmem:[#allocation136_spill] sm:$0xff]  ;;  %v7793_v24 = vld [vmem:[#allocation150_spill] sm:$0xff]  ;;  %v7802_v39 = vld [vmem:[#allocation169_spill] sm:$0xff] }
 0x1d0   :  { %7773 = vst [vmem:[#allocation46_spill] sm:$0xff] %v5799_v9  ;;  %v7787_v59 = vsub.f32 0.0, %v7786_v41  ;;  %v7790_v9 = vld [vmem:[#allocation140_spill] sm:$0xff]  ;;  %v7803_v41 = vsub.f32 0.0, %v7802_v39 }
 0x1d1   :  { %7777 = vst [vmem:[#allocation38_spill] sm:$0xff] %v5804_v30  ;;  %v5809_v8 = vsub.f32 %v7780_v29, %v7778_v31  ;;  %v7791_v44 = vsub.f32 0.0, %v7790_v9  ;;  %v7794_v30 = vld [vmem:[#allocation167_spill] sm:$0xff]  ;;  %v7797_v29 = vld [vmem:[#allocation157_spill] sm:$0xff] }
 0x1d2   :  { %v5819_v10 = vsub.f32 %v7787_v59, %v7785_v16  ;;  %v7795_v28 = vsub.f32 0.0, %v7794_v30  ;;  %v5839_v16 = vsub.f32 %v7803_v41, %v7801_v19  ;;  %v7804_v59 = vld [vmem:[#allocation165_spill] sm:$0xff]  ;;  %v7819_v41 = vld [vmem:[#allocation152_spill] sm:$0xff] }
 0x1d3   :  { %7781 = vst [vmem:[#allocation39_spill] sm:$0xff] %v5809_v8  ;;  %v5824_v7 = vsub.f32 %v7791_v44, %v7789_v37  ;;  %v7798_v8 = vld [vmem:[#allocation82_spill] sm:$0xff]  ;;  %v7808_v44 = vld [vmem:[#allocation168_spill] sm:$0xff] }
 0x1d4   :  { %7788 = vst [vmem:[#allocation41_spill] sm:$0xff] %v5819_v10  ;;  %v5829_v31 = vsub.f32 %v7795_v28, %v7793_v24  ;;  %v7799_v20 = vsub.f32 0.0, %v7798_v8  ;;  %v7805_v10 = vld [vmem:[#allocation144_spill] sm:$0xff]  ;;  %v7812_v28 = vld [vmem:[#allocation99_spill] sm:$0xff] }
 0x1d5   :  { %7792 = vst [vmem:[#allocation42_spill] sm:$0xff] %v5824_v7  ;;  %v7806_v9 = vsub.f32 0.0, %v7805_v10  ;;  %v7809_v7 = vld [vmem:[#allocation170_spill] sm:$0xff]  ;;  %v7820_v10 = vsub.f32 0.0, %v7819_v41 }
 0x1d6   :  { %7796 = vst [vmem:[#allocation93_spill] sm:$0xff] %v5829_v31  ;;  %v5834_v35 = vsub.f32 %v7799_v20, %v7797_v29  ;;  %v7810_v30 = vsub.f32 0.0, %v7809_v7  ;;  %v7813_v31 = vld [vmem:[#allocation148_spill] sm:$0xff]  ;;  %v7816_v20 = vld [vmem:[#allocation102_spill] sm:$0xff] }
 0x1d7   :  { %v5844_v37 = vsub.f32 %v7806_v9, %v7804_v59  ;;  %v7814_v8 = vsub.f32 0.0, %v7813_v31  ;;  %v5864_v59 = vsub.f32 %v7820_v10, %v5489_v56  ;;  %v7822_v9 = vld [vmem:[#allocation112_spill] sm:$0xff] }
 0x1d8   :  { %7800 = vst [vmem:[#allocation195_spill] sm:$0xff] %v5834_v35  ;;  %v5849_v24 = vsub.f32 %v7810_v30, %v7808_v44  ;;  %v7817_v35 = vld [vmem:[#allocation171_spill] sm:$0xff]  ;;  %v7826_v30 = vld [vmem:[#allocation34_spill] sm:$0xff]  ;;  %v7835_v10 = vld [vmem:[#allocation20_spill] sm:$0xff] }
 0x1d9   :  { %7807 = vst [vmem:[#allocation89_spill] sm:$0xff] %v5844_v37  ;;  %v5854_v29 = vsub.f32 %v7814_v8, %v7812_v28  ;;  %v7818_v39 = vsub.f32 0.0, %v7817_v35  ;;  %7821 = vst [vmem:[#allocation196_spill] sm:$0xff] %v5864_v59  ;;  %v7823_v37 = vld [vmem:[#allocation108_spill] sm:$0xff]  ;;  %v7830_v8 = vld [vmem:[#allocation121_spill] sm:$0xff] }
 0x1da   :  { %7811 = vst [vmem:[#allocation63_spill] sm:$0xff] %v5849_v24  ;;  %v7824_v7 = vsub.f32 0.0, %v7823_v37  ;;  %v7827_v24 = vld [vmem:[#allocation156_spill] sm:$0xff]  ;;  %v7836_v59 = vld [vmem:[#allocation173_spill] sm:$0xff] }
 0x1db   :  { %7815 = vst [vmem:[#allocation104_spill] sm:$0xff] %v5854_v29  ;;  %v5859_v19 = vsub.f32 %v7818_v39, %v7816_v20  ;;  %v7828_v31 = vsub.f32 0.0, %v7827_v24  ;;  %v7831_v29 = vld [vmem:[#allocation172_spill] sm:$0xff]  ;;  %v7833_v39 = vld [vmem:[#allocation159_spill] sm:$0xff]  ;;  %v7837_v37 = vsub.f32 0.0, %v7836_v59 }
 0x1dc   :  { %v5869_v44 = vsub.f32 %v7824_v7, %v7822_v9  ;;  %v7832_v35 = vsub.f32 0.0, %v7831_v29  ;;  %v7834_v41 = vsub.f32 0.0, %v7833_v39  ;;  %v7838_v7 = vld [vmem:[#allocation141_spill] sm:$0xff] }
 0x1dd   :  { %v5874_v28 = vsub.f32 %v7828_v31, %v7826_v30  ;;  %v5889_v9 = vsub.f32 %v7837_v37, %v7835_v10  ;;  %v7842_v31 = vld [vmem:[#allocation145_spill] sm:$0xff]  ;;  %v7849_v37 = vld [vmem:[#allocation127_spill] sm:$0xff] }
 0x1de   :  { %7825 = vst [vmem:[#allocation47_spill] sm:$0xff] %v5869_v44  ;;  %v5879_v20 = vsub.f32 %v7832_v35, %v7830_v8  ;;  %v5884_v56 = vsub.f32 %v7834_v41, %v5509_v14  ;;  %v7839_v44 = vld [vmem:[#allocation162_spill] sm:$0xff]  ;;  %v7847_v41 = vld [vmem:[#allocation123_spill] sm:$0xff] }
 0x1df   :  { %7829 = vst [vmem:[#allocation91_spill] sm:$0xff] %v5874_v28  ;;  %v7840_v24 = vsub.f32 0.0, %v7839_v44  ;;  %v7843_v28 = vld [vmem:[#allocation118_spill] sm:$0xff]  ;;  %v7848_v59 = vsub.f32 0.0, %v7847_v41  ;;  %v7850_v44 = vsub.f32 0.0, %v7849_v37 }
 0x1e0   :  { %v7844_v29 = vsub.f32 0.0, %v7843_v28  ;;  %v7845_v35 = vld [vmem:[#allocation110_spill] sm:$0xff] }
 0x1e1   :  { %v5894_v30 = vsub.f32 %v7840_v24, %v7838_v7  ;;  %v7846_v39 = vsub.f32 0.0, %v7845_v35  ;;  %v5909_v10 = vsub.f32 %v7848_v59, %v5534_v63  ;;  %v5914_v7 = vsub.f32 %v7850_v44, %v5539_v23  ;;  %v7851_v24 = vld [vmem:[#allocation180_spill] sm:$0xff]  ;;  %v7858_v59 = vld [vmem:[#allocation143_spill] sm:$0xff] }
 0x1e2   :  { %v5899_v8 = vsub.f32 %v7844_v29, %v7842_v31  ;;  %v7854_v29 = vld [vmem:[#allocation135_spill] sm:$0xff]  ;;  %v7859_v37 = vsub.f32 0.0, %v7858_v59 }
 0x1e3   :  { %7841 = vst [vmem:[#allocation64_spill] sm:$0xff] %v5894_v30  ;;  %v5904_v14 = vsub.f32 %v7846_v39, %v5529_v61  ;;  %v7852_v30 = vld [vmem:[#allocation131_spill] sm:$0xff]  ;;  %v7855_v35 = vsub.f32 0.0, %v7854_v29 }
 0x1e4   :  { %v7853_v28 = vsub.f32 0.0, %v7852_v30  ;;  %v7856_v39 = vld [vmem:[#allocation139_spill] sm:$0xff]  ;;  %v5934_v23 = vsub.f32 %v7859_v37, %v5559_v49 }
 0x1e5   :  { %v5924_v61 = vsub.f32 %v7855_v35, %v5549_v55  ;;  %v7857_v41 = vsub.f32 0.0, %v7856_v39  ;;  %v7860_v44 = vld [vmem:[#allocation147_spill] sm:$0xff]  ;;  %v7865_v35 = vld [vmem:[#allocation174_spill] sm:$0xff] }
 0x1e6   :  { %v5919_v31 = vsub.f32 %v7853_v28, %v7851_v24  ;;  %v7861_v30 = vsub.f32 0.0, %v7860_v44  ;;  %v7863_v28 = vld [vmem:[#allocation149_spill] sm:$0xff]  ;;  %v7866_v39 = vsub.f32 0.0, %v7865_v35  ;;  %v7869_v37 = vld [vmem:[#allocation151_spill] sm:$0xff] }
 0x1e7   :  { %v5929_v63 = vsub.f32 %v7857_v41, %v5554_v40  ;;  %v7864_v29 = vsub.f32 0.0, %v7863_v28  ;;  %v7867_v41 = vld [vmem:[#allocation177_spill] sm:$0xff]  ;;  %v7870_v44 = vsub.f32 0.0, %v7869_v37 }
 0x1e8   :  { %v5939_v24 = vsub.f32 %v7861_v30, %v5564_v6  ;;  %v5949_v40 = vsub.f32 %v7866_v39, %v5574_v54  ;;  %v7868_v59 = vsub.f32 0.0, %v7867_v41  ;;  %v7871_v30 = vld [vmem:[#allocation178_spill] sm:$0xff] }
 0x1e9   :  { %v5944_v55 = vsub.f32 %v7864_v29, %v5569_v51  ;;  %v5959_v6 = vsub.f32 %v7870_v44, %v5584_v43  ;;  %v7872_v28 = vsub.f32 0.0, %v7871_v30  ;;  %v7873_v29 = vld [vmem:[#allocation179_spill] sm:$0xff]  ;;  %v7875_v39 = vld [vmem:[#allocation26_spill] sm:$0xff] }
 0x1ea   :  { %7862 = vst [vmem:[#allocation111_spill] sm:$0xff] %v5939_v24  ;;  %v5954_v49 = vsub.f32 %v7868_v59, %v5579_v32  ;;  %v7874_v35 = vsub.f32 0.0, %v7873_v29  ;;  %v7876_v24 = vld [vmem:[#allocation175_spill] sm:$0xff] }
 0x1eb   :  { %v5964_v51 = vsub.f32 %v7872_v28, %v5589_v42  ;;  %v7877_v41 = vsub.f32 0.0, %v7876_v24  ;;  %v7878_v59 = vld [vmem:[#allocation155_spill] sm:$0xff]  ;;  %v7882_v28 = vld [vmem:[#allocation158_spill] sm:$0xff]  ;;  %v2044_v24 = vadd.f32 %v5664_v4, %v5624_v48  ;;  %v2051_v48 = vadd.f32 %v5699_v33, %v5659_v21 }
 0x1ec   :  { %v5969_v54 = vsub.f32 %v7874_v35, %v5594_v5  ;;  %v7879_v37 = vsub.f32 0.0, %v7878_v59  ;;  %v7880_v44 = vld [vmem:[#allocation183_spill] sm:$0xff]  ;;  %v7883_v29 = vsub.f32 0.0, %v7882_v28  ;;  %v2045_v35 = vadd.f32 %v5669_v57, %v5629_v58  ;;  %v7889_v59 = vld [vmem:[#allocation45_spill] sm:$0xff] }
 0x1ed   :  { %v5974_v32 = vsub.f32 %v7877_v41, %v7875_v39  ;;  %v7881_v30 = vsub.f32 0.0, %v7880_v44  ;;  %v2047_v39 = vadd.f32 %v5679_v3, %v5639_v12  ;;  %v2049_v41 = vadd.f32 %v5689_v46, %v5649_v52  ;;  %v7884_v3 = vld [vmem:[#allocation80_spill] sm:$0xff]  ;;  %v7885_v46 = vld [vmem:[#allocation85_spill] sm:$0xff]  ;;  %v7891_v44 = vld [vmem:[#allocation46_spill] sm:$0xff] }
 0x1ee   :  { %v5979_v43 = vsub.f32 %v7879_v37, %v5609_v38  ;;  %v5989_v5 = vsub.f32 %v7883_v29, %v5619_v18  ;;  %v2046_v38 = vadd.f32 %v5674_v62, %v5634_v36  ;;  %v2050_v18 = vadd.f32 %v5694_v53, %v5654_v34  ;;  %v7890_v37 = vld [vmem:[#allocation98_spill] sm:$0xff]  ;;  %v7893_v29 = vld [vmem:[#allocation39_spill] sm:$0xff] }
 0x1ef   :  { %v5984_v42 = vsub.f32 %v7881_v30, %v5614_v50  ;;  %v2048_v50 = vadd.f32 %v5684_v11, %v5644_v17  ;;  %v2060_v58 = vadd.f32 %v2044_v24, %v5704_v22  ;;  %v2061_v4 = vadd.f32 %v2045_v35, %v5709_v15  ;;  %v7886_v22 = vld [vmem:[#allocation87_spill] sm:$0xff]  ;;  %v7892_v30 = vld [vmem:[#allocation38_spill] sm:$0xff]  ;;  %v7894_v35 = vld [vmem:[#allocation40_spill] sm:$0xff] }
 0x1f0   :  { %v2062_v36 = vadd.f32 %v2046_v38, %v5714_v26  ;;  %v2063_v12 = vadd.f32 %v2047_v39, %v5719_v0  ;;  %v2065_v17 = vadd.f32 %v2049_v41, %v5729_v60  ;;  %v2066_v52 = vadd.f32 %v2050_v18, %v5734_v47  ;;  %v7887_v26 = vld [vmem:[#allocation43_spill] sm:$0xff]  ;;  %v7895_v38 = vld [vmem:[#allocation41_spill] sm:$0xff] }
 0x1f1   :  { %v2064_v57 = vadd.f32 %v2048_v50, %v5724_v1  ;;  %v2067_v62 = vadd.f32 %v2051_v48, %v5739_v13  ;;  %v2076_v34 = vadd.f32 %v2060_v58, %v5744_v2  ;;  %v2077_v21 = vadd.f32 %v2061_v4, %v5749_v25  ;;  %v7888_v1 = vld [vmem:[#allocation44_spill] sm:$0xff]  ;;  %v7896_v50 = vld [vmem:[#allocation42_spill] sm:$0xff]  ;;  %v7897_v18 = vld [vmem:[#allocation93_spill] sm:$0xff] }
 0x1f2   :  { %v2078_v11 = vadd.f32 %v2062_v36, %v7884_v3  ;;  %v2079_v53 = vadd.f32 %v2063_v12, %v7885_v46  ;;  %v2081_v15 = vadd.f32 %v2065_v17, %v7886_v22  ;;  %v2082_v0 = vadd.f32 %v2066_v52, %v7887_v26  ;;  %v7898_v58 = vld [vmem:[#allocation195_spill] sm:$0xff]  ;;  %v7899_v36 = vld [vmem:[#allocation89_spill] sm:$0xff]  ;;  %v7901_v52 = vld [vmem:[#allocation104_spill] sm:$0xff] }
 0x1f3   :  { %v2080_v33 = vadd.f32 %v2064_v57, %v5764_v27  ;;  %v2083_v60 = vadd.f32 %v2067_v62, %v7888_v1  ;;  %v2092_v47 = vadd.f32 %v2076_v34, %v7889_v59  ;;  %v2093_v13 = vadd.f32 %v2077_v21, %v5789_v45  ;;  %v7900_v57 = vld [vmem:[#allocation63_spill] sm:$0xff]  ;;  %v7902_v21 = vld [vmem:[#allocation196_spill] sm:$0xff] }
 0x1f4   :  { %v2094_v2 = vadd.f32 %v2078_v11, %v7890_v37  ;;  %v2095_v25 = vadd.f32 %v2079_v53, %v7891_v44  ;;  %v2097_v24 = vadd.f32 %v2081_v15, %v7893_v29  ;;  %v2098_v27 = vadd.f32 %v2082_v0, %v7894_v35  ;;  %v7903_v11 = vld [vmem:[#allocation47_spill] sm:$0xff]  ;;  %v7905_v26 = vld [vmem:[#allocation64_spill] sm:$0xff]  ;;  %v7906_v37 = vld [vmem:[#allocation37_spill] sm:$0xff] }
 0x1f5   :  { %v2096_v28 = vadd.f32 %v2080_v33, %v7892_v30  ;;  %v2099_v39 = vadd.f32 %v2083_v60, %v7895_v38  ;;  %v2108_v41 = vadd.f32 %v2092_v47, %v7896_v50  ;;  %v2109_v48 = vadd.f32 %v2093_v13, %v7897_v18  ;;  %v7904_v53 = vld [vmem:[#allocation91_spill] sm:$0xff]  ;;  %v7910_v29 = vld [vmem:[#allocation186_spill] sm:$0xff]  ;;  %v7913_v35 = vld [vmem:[#allocation188_spill] sm:$0xff] }
 0x1f6   :  { %v2110_v4 = vadd.f32 %v2094_v2, %v7898_v58  ;;  %v2111_v45 = vadd.f32 %v2095_v25, %v5839_v16  ;;  %v2113_v17 = vadd.f32 %v2097_v24, %v7900_v57  ;;  %v2114_v62 = vadd.f32 %v2098_v27, %v7901_v52  ;;  %v7909_v25 = vld [vmem:[#allocation111_spill] sm:$0xff]  ;;  %v7917_v50 = vld [vmem:[#allocation49_spill] sm:$0xff]  ;;  %v7919_v18 = vld [vmem:[#allocation66_spill] sm:$0xff] }
 0x1f7   :  { %v2112_v12 = vadd.f32 %v2096_v28, %v7899_v36  ;;  %v2115_v34 = vadd.f32 %v2099_v39, %v5859_v19  ;;  %v2124_v3 = vadd.f32 %v2108_v41, %v7902_v21  ;;  %v2125_v46 = vadd.f32 %v2109_v48, %v7903_v11  ;;  %v7914_v38 = vld [vmem:[#allocation187_spill] sm:$0xff]  ;;  %v7920_v48 = vld [vmem:[#allocation193_spill] sm:$0xff] }
 0x1f8   :  { %v2126_v33 = vadd.f32 %v2110_v4, %v7904_v53  ;;  %v2127_v22 = vadd.f32 %v2111_v45, %v5879_v20  ;;  %v2129_v16 = vadd.f32 %v2113_v17, %v5889_v9  ;;  %v2130_v0 = vadd.f32 %v2114_v62, %v7905_v26  ;;  %v7907_v9 = vld [vmem:[#allocation182_spill] sm:$0xff]  ;;  %v7923_v4 = vld [vmem:[#allocation71_spill] sm:$0xff]  ;;  %v7924_v36 = vld [vmem:[#allocation161_spill] sm:$0xff] }
 0x1f9   :  { %v2128_v15 = vadd.f32 %v2112_v12, %v5884_v56  ;;  %v2131_v1 = vadd.f32 %v2115_v34, %v5899_v8  ;;  %v2140_v60 = vadd.f32 %v2124_v3, %v5904_v14  ;;  %v2141_v19 = vadd.f32 %v2125_v46, %v5909_v10  ;;  %v7925_v12 = vld [vmem:[#allocation50_spill] sm:$0xff]  ;;  %v7926_v17 = vld [vmem:[#allocation76_spill] sm:$0xff]  ;;  %v7927_v62 = vld [vmem:[#allocation53_spill] sm:$0xff] }
 0x1fa   :  { %v2142_v59 = vadd.f32 %v2126_v33, %v5914_v7  ;;  %v2143_v47 = vadd.f32 %v2127_v22, %v5919_v31  ;;  %v2145_v20 = vadd.f32 %v2129_v16, %v5929_v63  ;;  %v2146_v56 = vadd.f32 %v2130_v0, %v5934_v23  ;;  %v7928_v21 = vld [vmem:[#allocation81_spill] sm:$0xff]  ;;  %v7929_v46 = vld [vmem:[#allocation86_spill] sm:$0xff]  ;;  %v7930_v33 = vld [vmem:[#allocation59_spill] sm:$0xff] }
 0x1fb   :  { %v2144_v13 = vadd.f32 %v2128_v15, %v5924_v61  ;;  %v7908_v2 = vsub.f32 0.0, %v7907_v9  ;;  %v2156_v8 = vadd.f32 %v2140_v60, %v5944_v55  ;;  %v2157_v14 = vadd.f32 %v2141_v19, %v5949_v40  ;;  %v7911_v40 = vld [vmem:[#allocation54_spill] sm:$0xff]  ;;  %v7931_v15 = vld [vmem:[#allocation61_spill] sm:$0xff]  ;;  %v7932_v26 = vld [vmem:[#allocation68_spill] sm:$0xff] }
 0x1fc   :  { %v2158_v10 = vadd.f32 %v2142_v59, %v5954_v49  ;;  %v2147_v7 = vadd.f32 %v2131_v1, %v7909_v25  ;;  %v2159_v31 = vadd.f32 %v2143_v47, %v5959_v6  ;;  %v2161_v63 = vadd.f32 %v2145_v20, %v5969_v54  ;;  %v7912_v49 = vld [vmem:[#allocation137_spill] sm:$0xff]  ;;  %v7915_v6 = vld [vmem:[#allocation56_spill] sm:$0xff]  ;;  %v7935_v47 = vld [vmem:[#allocation30_spill] sm:$0xff] }
 0x1fd   :  { %v1478_v44 = vsub.f32 %v7908_v2, %v7906_v37  ;;  %v2160_v61 = vadd.f32 %v2144_v13, %v5964_v51  ;;  %v2162_v23 = vadd.f32 %v2146_v56, %v5974_v32  ;;  %v2172_v30 = vadd.f32 %v2156_v8, %v5979_v43  ;;  %v7916_v51 = vld [vmem:[#allocation190_spill] sm:$0xff]  ;;  %v7933_v1 = vld [vmem:[#allocation29_spill] sm:$0xff]  ;;  %v7936_v56 = vld [vmem:[#allocation79_spill] sm:$0xff] }
 0x1fe   :  { %v2173_v28 = vadd.f32 %v2157_v14, %v5984_v42  ;;  %v2174_v55 = vadd.f32 %v2158_v10, %v5989_v5  ;;  %v2052_v24 = vadd.f32 %v7911_v40, %v7910_v29  ;;  %v2053_v27 = vadd.f32 %v7913_v35, %v7912_v49  ;;  %v7918_v32 = vld [vmem:[#allocation194_spill] sm:$0xff]  ;;  %v7921_v42 = vld [vmem:[#allocation191_spill] sm:$0xff]  ;;  %v7934_v19 = vld [vmem:[#allocation73_spill] sm:$0xff] }
 0x1ff   :  { %v2054_v39 = vadd.f32 %v7915_v6, %v7914_v38  ;;  %v2055_v54 = vadd.f32 %v7917_v50, %v7916_v51  ;;  %v2056_v43 = vadd.f32 %v7919_v18, %v7918_v32  ;;  %v2057_v58 = vadd.f32 %v7921_v42, %v7920_v48  ;;  %v7922_v5 = vld [vmem:[#allocation51_spill] sm:$0xff]  ;;  %v7937_v9 = vld [vmem:[#allocation88_spill] sm:$0xff]  ;;  %v7938_v8 = vld [vmem:[#allocation90_spill] sm:$0xff] }
 0x200   :  { %v2215_v41 = vadd.f32 %v2173_v28, %v2172_v30  ;;  %v2058_v45 = vadd.f32 %v7923_v4, %v7922_v5  ;;  %v2059_v57 = vadd.f32 %v7925_v12, %v7924_v36  ;;  %v2068_v52 = vadd.f32 %v7926_v17, %v2052_v24  ;;  %v7939_v10 = vld [vmem:[#allocation31_spill] sm:$0xff]  ;;  %v7940_v30 = vld [vmem:[#allocation94_spill] sm:$0xff]  ;;  %v7944_v38 = vld [vmem:[#allocation109_spill] sm:$0xff] }
 0x201   :  { %v2069_v34 = vadd.f32 %v7927_v62, %v2053_v27  ;;  %v2070_v3 = vadd.f32 %v7928_v21, %v2054_v39  ;;  %v2071_v53 = vadd.f32 %v7929_v46, %v2055_v54  ;;  %v2072_v22 = vadd.f32 %v7930_v33, %v2056_v43  ;;  %v7942_v40 = vld [vmem:[#allocation103_spill] sm:$0xff]  ;;  %v7943_v35 = vld [vmem:[#allocation106_spill] sm:$0xff]  ;;  %v7946_v50 = vld [vmem:[#allocation33_spill] sm:$0xff] }
 0x202   :  { %v2216_v11 = vadd.f32 %v2215_v41, %v2174_v55  ;;  %v2073_v16 = vadd.f32 %v7931_v15, %v2057_v58  ;;  %v2074_v0 = vadd.f32 %v7932_v26, %v2058_v45  ;;  %v2075_v60 = vadd.f32 %v7933_v1, %v2059_v57  ;;  %v7941_v55 = vld [vmem:[#allocation83_spill] sm:$0xff]  ;;  %v7947_v41 = vld [vmem:[#allocation122_spill] sm:$0xff]  ;;  %v7952_v36 = vld [vmem:[#allocation160_spill] sm:$0xff] }
 0x203   :  { %v2084_v59 = vadd.f32 %v7934_v19, %v2068_v52  ;;  %v2085_v13 = vadd.f32 %v7935_v47, %v2069_v34  ;;  %v2086_v37 = vadd.f32 %v7936_v56, %v2070_v3  ;;  %v2087_v2 = vadd.f32 %v7937_v9, %v2071_v53  ;;  %v7948_v43 = vld [vmem:[#allocation138_spill] sm:$0xff]  ;;  %v7953_v57 = vld [vmem:[#allocation164_spill] sm:$0xff]  ;;  %v7958_v46 = vld [vmem:[#allocation115_spill] sm:$0xff] }
 0x204   :  { %v2217_v20 = vadd.f32 %v2216_v11, %v2159_v31  ;;  %v2088_v14 = vadd.f32 %v7938_v8, %v2072_v22  ;;  %v2089_v25 = vadd.f32 %v7939_v10, %v2073_v16  ;;  %v2090_v28 = vadd.f32 %v7940_v30, %v2074_v0  ;;  %v7945_v31 = vld [vmem:[#allocation113_spill] sm:$0xff]  ;;  %v7949_v42 = vld [vmem:[#allocation146_spill] sm:$0xff]  ;;  %v7959_v33 = vld [vmem:[#allocation19_spill] sm:$0xff] }
 0x205   :  { %v2091_v29 = vadd.f32 %v7941_v55, %v2075_v60  ;;  %v2100_v24 = vadd.f32 %v7942_v40, %v2084_v59  ;;  %v2101_v27 = vadd.f32 %v7943_v35, %v2085_v13  ;;  %v2102_v6 = vadd.f32 %v7944_v38, %v2086_v37  ;;  %v7950_v5 = vld [vmem:[#allocation154_spill] sm:$0xff]  ;;  %v7960_v16 = vld [vmem:[#allocation153_spill] sm:$0xff]  ;;  %v7961_v0 = vld [vmem:[#allocation96_spill] sm:$0xff] }
 0x206   :  { %v2218_v49 = vadd.f32 %v2217_v20, %v2160_v61  ;;  %v2103_v39 = vadd.f32 %v7945_v31, %v2087_v2  ;;  %v2163_v51 = vadd.f32 %v2147_v7, %v1478_v44  ;;  %v2104_v54 = vadd.f32 %v7946_v50, %v2088_v14  ;;  %v7951_v45 = vld [vmem:[#allocation126_spill] sm:$0xff]  ;;  %v7955_v7 = vld [vmem:[#allocation105_spill] sm:$0xff]  ;;  %v7964_v47 = vld [vmem:[#allocation176_spill] sm:$0xff] }
 0x207   :  { %v2105_v32 = vadd.f32 %v7947_v41, %v2089_v25  ;;  %v2116_v48 = vadd.f32 %v7948_v43, %v2100_v24  ;;  %v2117_v58 = vadd.f32 %v7949_v42, %v2101_v27  ;;  %v2118_v4 = vadd.f32 %v7950_v5, %v2102_v6  ;;  %v7954_v62 = vld [vmem:[#allocation130_spill] sm:$0xff]  ;;  %v7962_v60 = vld [vmem:[#allocation125_spill] sm:$0xff]  ;;  %v7966_v37 = vld [vmem:[#allocation184_spill] sm:$0xff] }
 0x208   :  { %v2219_v18 = vadd.f32 %v2218_v49, %v2161_v63  ;;  %v2106_v61 = vadd.f32 %v7951_v45, %v2090_v28  ;;  %v2119_v12 = vadd.f32 %v7952_v36, %v2103_v39  ;;  %v2120_v17 = vadd.f32 %v7953_v57, %v2104_v54  ;;  %v7956_v21 = vld [vmem:[#allocation18_spill] sm:$0xff]  ;;  %v7965_v20 = vld [vmem:[#allocation17_spill] sm:$0xff]  ;;  %v7968_v14 = vld [vmem:[#allocation23_spill] sm:$0xff] }
 0x209   :  { %v2107_v44 = vadd.f32 %v7954_v62, %v2091_v29  ;;  %v2132_v34 = vadd.f32 %v7955_v7, %v2116_v48  ;;  %v2133_v3 = vadd.f32 %v7956_v21, %v2117_v58  ;;  %v7957_v63 = vld [vmem:[#allocation166_spill] sm:$0xff]  ;;  %v2134_v53 = vadd.f32 %v7958_v46, %v2118_v4  ;;  %v7967_v2 = vld [vmem:[#allocation129_spill] sm:$0xff]  ;;  %v7971_v29 = vld [vmem:[#allocation27_spill] sm:$0xff] }
 0x20a   :  { %v2220_v52 = vadd.f32 %v2219_v18, %v2162_v23  ;;  %v2121_v11 = vadd.f32 %v7957_v63, %v2105_v32  ;;  %v2135_v22 = vadd.f32 %v7959_v33, %v2119_v12  ;;  %v2122_v1 = vadd.f32 %v7961_v0, %v2106_v61  ;;  %v7963_v23 = vld [vmem:[#allocation22_spill] sm:$0xff]  ;;  %v7969_v25 = vld [vmem:[#allocation65_spill] sm:$0xff]  ;;  %v7974_v38 = vld [vmem:[#allocation28_spill] sm:$0xff] }
 0x20b   :  { %v2148_v26 = vadd.f32 %v7960_v16, %v2132_v34  ;;  %v2136_v19 = vadd.f32 %v7962_v60, %v2120_v17  ;;  %v2149_v59 = vadd.f32 %v7963_v23, %v2133_v3  ;;  %v2150_v13 = vadd.f32 %v7964_v47, %v2134_v53  ;;  %v7970_v28 = vld [vmem:[#allocation185_spill] sm:$0xff]  ;;  %v7975_v31 = vld [vmem:[#allocation75_spill] sm:$0xff]  ;;  %v7977_v54 = vld [vmem:[#allocation60_spill] sm:$0xff] }
 0x20c   :  { %v2221_v15 = vadd.f32 %v2220_v52, %v2163_v51  ;;  %v2123_v56 = vadd.f32 %v7965_v20, %v2107_v44  ;;  %v2137_v8 = vadd.f32 %v7967_v2, %v2121_v11  ;;  %v2151_v10 = vadd.f32 %v7968_v14, %v2135_v22  ;;  %v7972_v24 = vld [vmem:[#allocation133_spill] sm:$0xff]  ;;  %v7978_v32 = vld [vmem:[#allocation36_spill] sm:$0xff]  ;;  %v7981_v45 = vld [vmem:[#allocation35_spill] sm:$0xff] }
 0x20d   :  { %v2164_v9 = vadd.f32 %v7966_v37, %v2148_v26  ;;  %v2165_v30 = vadd.f32 %v7969_v25, %v2149_v59  ;;  %v2166_v55 = vadd.f32 %v7970_v28, %v2150_v13  ;;  %v2138_v49 = vadd.f32 %v7972_v24, %v2122_v1  ;;  %v7973_v35 = vld [vmem:[#allocation181_spill] sm:$0xff]  ;;  %v7979_v48 = vld [vmem:[#allocation24_spill] sm:$0xff]  ;;  %v7983_v17 = vld [vmem:[#allocation70_spill] sm:$0xff] }
 0x20e   :  { %2222 = vadd.xlane.f32.xlu0 %v2221_v15  ;;  %v2152_v27 = vadd.f32 %v7973_v35, %v2136_v19  ;;  %v7976_v51 = vld [vmem:[#allocation21_spill] sm:$0xff]  ;;  %v2153_v41 = vadd.f32 %v7977_v54, %v2137_v8  ;;  %v2167_v18 = vadd.f32 %v7978_v32, %v2151_v10  ;;  %v7984_v44 = vld [vmem:[#allocation192_spill] sm:$0xff] }
 0x20f   :  { %v2180_v40 = vadd.f32 %v7971_v29, %v2164_v9  ;;  %v2181_v6 = vadd.f32 %v7974_v38, %v2165_v30  ;;  %v2182_v39 = vadd.f32 %v7975_v31, %v2166_v55  ;;  %v2139_v50 = vadd.f32 %v7976_v51, %v2123_v56  ;;  %v7980_v58 = vld [vmem:[#allocation25_spill] sm:$0xff] }
 0x210   :  { %v2154_v42 = vadd.f32 %v7979_v48, %v2138_v49  ;;  %v2168_v5 = vadd.f32 %v7980_v58, %v2152_v27  ;;  %v7982_v36 = vld [vmem:[#allocation189_spill] sm:$0xff] }
 0x211   :  { %v2241_v43 = vadd.f32 %v2181_v6, %v2180_v40  ;;  %v2155_v61 = vadd.f32 %v7981_v45, %v2139_v50  ;;  %v2169_v12 = vadd.f32 %v7982_v36, %v2153_v41 }
 0x212   :  { %v2170_v52 = vadd.f32 %v7983_v17, %v2154_v42 }
 0x213   :  { %v2242_v4 = vadd.f32 %v2241_v43, %v2182_v39  ;;  %v2171_v7 = vadd.f32 %v7984_v44, %v2155_v61 }
 0x215   :  { %v2243_v57 = vadd.f32 %v2242_v4, %v2167_v18 }
 0x217   :  { %v2244_v62 = vadd.f32 %v2243_v57, %v2168_v5 }
 0x219   :  { %v2245_v34 = vadd.f32 %v2244_v62, %v2169_v12 }
 0x21b   :  { %v2246_v21 = vadd.f32 %v2245_v34, %v2170_v52 }
 0x21d   :  { %v2247_v3 = vadd.f32 %v2246_v21, %v2171_v7 }
 0x21f   :  { %2248 = vadd.xlane.f32.xlu0 %v2247_v3 }
 0x29b   :  { %v2223_v63 = vpop.xlane.xlu0 %2222 }
 0x29c   :  { %v2224_v11 = vrot.slane %v2223_v63, 4 }
 0x29e   :  { %v2225_v46 = vadd.f32 %v2224_v11, %v2223_v63 }
 0x2a0   :  { %v2226_v53 = vrot.slane %v2225_v46, 2 }
 0x2a2   :  { %v2227_v33 = vadd.f32 %v2226_v53, %v2225_v46 }
 0x2a4   :  { %v2228_v22 = vrot.slane %v2227_v33, 1 }
 0x2a6   :  { %v2229_v15 = vadd.f32 %v2228_v22, %v2227_v33 }
 0x2a8   :  { %2292 = vpush %v2229_v15 }
 0x2ac   :  { %v2249_v16 = vpop.xlane.xlu0 %2248 }
 0x2ad   :  { %v2250_v26 = vrot.slane %v2249_v16, 4 }
 0x2af   :  { %v2251_v0 = vadd.f32 %v2250_v26, %v2249_v16 }
 0x2b1   :  { %v2252_v1 = vrot.slane %v2251_v0, 2 }
 0x2b3   :  { %v2253_v60 = vadd.f32 %v2252_v1, %v2251_v0 }
 0x2b5   :  { %v2254_v19 = vrot.slane %v2253_v60, 1 }
 0x2b7   :  { %v2255_v23 = vadd.f32 %v2254_v19, %v2253_v60 }
 0x2b9   :  { %2294 = vpush %v2255_v23 }
 0x2d9   :  { %s2293_s2 = spop %2292 }
 0x2da   :  { %2232 = sst [smem:[#allocation10]] %s2293_s2 }
 0x2db   :  { %2753 = shalt.err (!%p2750_p12)
}
 0x2dc   :  { %s2777_s9 = smov [#allocation10]   ;;  %s2754_s14 = scalar_lea.hbm %s6171_s4, 16 }
 0x2dd   :  { %2266 = dma.smem_to_hbm %s2777_s9, 16, %s6170_s3, [#allocation6]  }
 0x2de   :  { %p2755_p13 = scmp.ne.s32.totalorder %s6171_s4, %s2754_s14  ;;  %p2758_p0 = scmp.lt.u32.totalorder %s2754_s14, %s6171_s4 }
 0x2e0   :  { %p2760_p1 = pnand %p2758_p0, %p2755_p13 }
 0x2ea   :  { %s2295_s12 = spop %2294 }
 0x2eb   :  { %2258 = sst [smem:[#allocation11]] %s2295_s12 }
 0x2ec   :  { %2763 = shalt.err (!%p2760_p1)
}
 0x2ed   :  { %s2778_s19 = smov [#allocation11]  }
 0x2ee   :  { %2274 = dma.smem_to_hbm %s2778_s19, 16, %s6171_s4, [#allocation12]  }
 0x2ef   :  { %2768 = dma.done.wait [#allocation6], 16  }
 0x2f0   :  { %2769 = vsyncadd [#allocation6], 4294967280 }
 0x2f1   :  { %2770 = dma.done.wait [#allocation12], 16  }
 0x2f2   :  { %2771 = vsyncadd [#allocation12], 4294967280 }
 0x2f3   :  { %2281 = sfence }
 0x2f4   :  { %2282 = vsyncpa [#allocation5], 1 }
 0x2f5   :  { %2283 = vsyncpa [#allocation8], 1 }
 0x2f6   :  { %2284 = vsyncpa [#allocation6], 1 }
 0x2f7   :  { %2285 = vsyncpa [#allocation12], 1 }

</bundles_post_ra>
